<compile_context>
chip_gen: v7x
topology: tpu7x:2x2x1
jax: 0.10.0
libtpu: 0.0.40
codegen_flags: <defaults>
</compile_context>

<pallas_src>
import jax
import jax.numpy as jnp
import numpy as np
from jax.experimental import pallas as pl
from jax.experimental.pallas import tpu as pltpu

EPS = 1e-5


def _resblock_kernel(p1_ref, xres_ref, w1_ref, w2t_ref,
                     g1_ref, b1_ref, g2_ref, b2_ref, o_ref, pad_ref):
    # p1_ref  : (M, 9*Cin)        im2col of padded x (built by the wrapper)
    # xres_ref: (Cout, M)         residual input, channel-major (lane-dense)
    # w1_ref  : (9*Cin, Cout)     conv1 weights, im2col order (dy, dx, cin)
    # w2t_ref : (9, Cout, Cin)    conv2 weights, per-tap, (out, in) order
    # g*/b*   : (1, Cout) for BN1, (Cout, 1) for BN2
    # o_ref   : (Cout, M)         lane-dense output (M = N*H*W, multiple of 128)
    # pad_ref : (N, H+2, W+2, Cout) VMEM scratch for the conv2 halo
    N, Hp, Wp, C = pad_ref.shape
    H, W = Hp - 2, Wp - 2
    M = N * H * W
    inv_m = 1.0 / float(M)

    # ---- conv1: single im2col matmul on the MXU (K = 9*Cin) ----
    acc1 = jnp.dot(p1_ref[...], w1_ref[...],
                   preferred_element_type=jnp.float32)          # (M, C)

    # ---- BN1: one-pass batch stats + folded affine + ReLU ----
    mean1 = jnp.sum(acc1, axis=0, keepdims=True) * inv_m        # (1, C)
    msq1 = jnp.sum(acc1 * acc1, axis=0, keepdims=True) * inv_m
    var1 = msq1 - mean1 * mean1
    scale1 = g1_ref[...] * jax.lax.rsqrt(var1 + EPS)            # (1, C)
    shift1 = b1_ref[...] - mean1 * scale1
    out1 = jnp.maximum(acc1 * scale1 + shift1, 0.0)             # (M, C)

    # ---- padded scratch for conv2: zero only the 1-pixel halo, write interior ----
    zrow = jnp.zeros((N, 1, Wp, C), jnp.float32)
    zcol = jnp.zeros((N, H, 1, C), jnp.float32)
    pad_ref[:, 0:1, :, :] = zrow
    pad_ref[:, Hp - 1:Hp, :, :] = zrow
    pad_ref[:, 1:Hp - 1, 0:1, :] = zcol
    pad_ref[:, 1:Hp - 1, Wp - 1:Wp, :] = zcol
    pad_ref[:, 1:Hp - 1, 1:Wp - 1, :] = out1.reshape(N, H, W, C)

    # ---- conv2: 9 taps, each as A @ B^T (contract minor dims) so the
    #      accumulator is lane-dense (C, M) straight off the MXU ----
    acc2t = None
    for dy in range(3):
        for dx in range(3):
            tap = pad_ref[:, dy:dy + H, dx:dx + W, :].reshape(M, C)
            d = jax.lax.dot_general(
                w2t_ref[dy * 3 + dx], tap,
                dimension_numbers=(((1,), (1,)), ((), ())),
                preferred_element_type=jnp.float32)             # (C, M)
            acc2t = d if acc2t is None else acc2t + d

    # ---- BN2 (one-pass stats along lanes) + ReLU, all lane-dense ----
    mean2 = jnp.sum(acc2t, axis=1, keepdims=True) * inv_m       # (C, 1)
    msq2 = jnp.sum(acc2t * acc2t, axis=1, keepdims=True) * inv_m
    var2 = msq2 - mean2 * mean2
    scale2 = g2_ref[...] * jax.lax.rsqrt(var2 + EPS)            # (C, 1)
    shift2 = b2_ref[...] - mean2 * scale2
    out2t = jnp.maximum(acc2t * scale2 + shift2, 0.0)           # (C, M)

    # ---- residual add + final ReLU, 128-wide unmasked stores ----
    o_ref[...] = jnp.maximum(xres_ref[...] + out2t, 0.0)


@jax.jit
def residual_block_forward(x_nchw, w1_oihw, g1, b1, w2_oihw, g2, b2):
    """same_shape=True residual block. x_nchw: (N, C, H, W) float32."""
    N, Cin, H, W = x_nchw.shape
    Cout = w1_oihw.shape[0]
    # same_shape=True requires in_channel == out_channel for the residual add.
    assert Cin == Cout, "same_shape=True needs in_channel == out_channel"
    M = N * H * W

    # ---- wrapper-side layout glue (all fused by XLA around the kernel) ----
    x_nhwc = jnp.transpose(x_nchw, (0, 2, 3, 1))
    x_pad = jnp.pad(x_nhwc, ((0, 0), (1, 1), (1, 1), (0, 0)))

    # im2col for conv1: (M, 9*Cin), column order (dy, dx, cin)
    patches1 = jnp.concatenate(
        [x_pad[:, dy:dy + H, dx:dx + W, :].reshape(M, Cin)
         for dy in range(3) for dx in range(3)], axis=1)

    # conv1 weights -> (9*Cin, Cout) matching the im2col column order
    w1r = jnp.transpose(w1_oihw, (2, 3, 1, 0)).reshape(9 * Cin, Cout)
    # conv2 weights -> per-tap (Cout, Cin) matrices, tap index = dy*3+dx
    w2t = jnp.transpose(w2_oihw, (2, 3, 0, 1)).reshape(9, Cout, Cout)

    # residual input in channel-major, lane-dense layout (Cout, M)
    xres_t = jnp.transpose(x_nchw, (1, 0, 2, 3)).reshape(Cin, M)

    conv_flops = 2 * M * (9 * Cin) * Cout + 2 * M * (9 * Cout) * Cout
    ew_flops = 16 * M * Cout
    bytes_accessed = 4 * (patches1.size + xres_t.size + w1r.size + w2t.size
                          + 4 * Cout + Cout * M)

    out_t = pl.pallas_call(
        _resblock_kernel,
        out_shape=jax.ShapeDtypeStruct((Cout, M), jnp.float32),
        in_specs=[pl.BlockSpec(memory_space=pltpu.MemorySpace.VMEM)] * 8,
        out_specs=pl.BlockSpec(memory_space=pltpu.MemorySpace.VMEM),
        scratch_shapes=[pltpu.VMEM((N, H + 2, W + 2, Cout), jnp.float32)],
        cost_estimate=pl.CostEstimate(flops=conv_flops + ew_flops,
                                      transcendentals=2 * Cout,
                                      bytes_accessed=bytes_accessed),
    )(patches1, xres_t, w1r, w2t,
      g1.reshape(1, Cout), b1.reshape(1, Cout),
      g2.reshape(Cout, 1), b2.reshape(Cout, 1))

    # (Cout, M) -> (Cout, N, H, W) -> NCHW
    return jnp.transpose(out_t.reshape(Cout, N, H, W), (1, 0, 2, 3))


def _reference_forward(x, w1, g1, b1, w2, g2, b2):
    """Pure-JAX reference (lax conv, NCHW/OIHW) for validation."""
    def conv(inp, w):
        return jax.lax.conv_general_dilated(
            inp, w, window_strides=(1, 1), padding="SAME",
            dimension_numbers=("NCHW", "OIHW", "NCHW"))

    def bn(o, g, b):
        mean = o.mean(axis=(0, 2, 3), keepdims=True)
        var = ((o - mean) ** 2).mean(axis=(0, 2, 3), keepdims=True)
        return ((o - mean) * jax.lax.rsqrt(var + EPS)
                * g.reshape(1, -1, 1, 1) + b.reshape(1, -1, 1, 1))

    out = jnp.maximum(bn(conv(x, w1), g1, b1), 0.0)
    out = jnp.maximum(bn(conv(out, w2), g2, b2), 0.0)
    return jnp.maximum(x + out, 0.0)


if __name__ == "__main__":
    # small shapes consistent with the module: batch=2, channels=4, spatial=16
    N, C, H, W = 2, 4, 16, 16
    Cout = C  # same_shape=True => in_channel == out_channel

    key = jax.random.PRNGKey(0)
    kx, k1, k2, kg1, kb1, kg2, kb2 = jax.random.split(key, 7)

    x = jax.random.normal(kx, (N, C, H, W), jnp.float32)
    w1 = 0.2 * jax.random.normal(k1, (Cout, C, 3, 3), jnp.float32)      # OIHW
    w2 = 0.2 * jax.random.normal(k2, (Cout, Cout, 3, 3), jnp.float32)   # OIHW
    g1 = 1.0 + 0.1 * jax.random.normal(kg1, (Cout,), jnp.float32)
    b1 = 0.1 * jax.random.normal(kb1, (Cout,), jnp.float32)
    g2 = 1.0 + 0.1 * jax.random.normal(kg2, (Cout,), jnp.float32)
    b2 = 0.1 * jax.random.normal(kb2, (Cout,), jnp.float32)

    y = residual_block_forward(x, w1, g1, b1, w2, g2, b2)
    y = jax.block_until_ready(y)

    y_ref = _reference_forward(x, w1, g1, b1, w2, g2, b2)
    np.testing.assert_allclose(np.asarray(y), np.asarray(y_ref),
                               rtol=2e-3, atol=2e-3)

    print("KERNEL_OK")
</pallas_src>

<mosaic_0001>
module attributes {stable_mosaic.version = 11 : i64} {
  func.func @_resblock_kernel(%arg0: memref<512x36xf32, #tpu.memory_space<vmem>>, %arg1: memref<4x512xf32, #tpu.memory_space<vmem>>, %arg2: memref<36x4xf32, #tpu.memory_space<vmem>>, %arg3: memref<9x4x4xf32, #tpu.memory_space<vmem>>, %arg4: memref<1x4xf32, #tpu.memory_space<vmem>>, %arg5: memref<1x4xf32, #tpu.memory_space<vmem>>, %arg6: memref<4x1xf32, #tpu.memory_space<vmem>>, %arg7: memref<4x1xf32, #tpu.memory_space<vmem>>, %arg8: memref<4x512xf32, #tpu.memory_space<vmem>>, %arg9: memref<2x18x18x4xf32, #tpu.memory_space<vmem>>) attributes {dimension_semantics = [], scalar_prefetch = 0 : i64, scratch_operands = 1 : i64, tpu.core_type = #tpu.core_type<tc>} {
    %c0 = arith.constant 0 : index
    %c0_0 = arith.constant 0 : index
    %0 = vector.load %arg0[%c0, %c0_0] : memref<512x36xf32, #tpu.memory_space<vmem>>, vector<512x36xf32>
    %c0_1 = arith.constant 0 : index
    %c0_2 = arith.constant 0 : index
    %1 = vector.load %arg2[%c0_1, %c0_2] : memref<36x4xf32, #tpu.memory_space<vmem>>, vector<36x4xf32>
    %cst = arith.constant dense<0.000000e+00> : vector<512x4xf32>
    %2 = tpu.matmul %0, %1, %cst {dimension_numbers = #tpu.dot_dimension_numbers<[1], [0], [0], [1], [0, 0, 1, 1], [], []>} : vector<512x36xf32>, vector<36x4xf32>, vector<512x4xf32> -> vector<512x4xf32>
    %cst_3 = arith.constant dense<0.000000e+00> : vector<4xf32>
    %3 = vector.multi_reduction <add>, %2, %cst_3 [0] : vector<512x4xf32> to vector<4xf32>
    %4 = vector.shape_cast %3 : vector<4xf32> to vector<1x4xf32>
    %cst_4 = arith.constant 0.001953125 : f32
    %5 = vector.broadcast %cst_4 : f32 to vector<1x4xf32>
    %6 = arith.mulf %4, %5 : vector<1x4xf32>
    %7 = arith.mulf %2, %2 : vector<512x4xf32>
    %cst_5 = arith.constant dense<0.000000e+00> : vector<4xf32>
    %8 = vector.multi_reduction <add>, %7, %cst_5 [0] : vector<512x4xf32> to vector<4xf32>
    %9 = vector.shape_cast %8 : vector<4xf32> to vector<1x4xf32>
    %cst_6 = arith.constant 0.001953125 : f32
    %10 = vector.broadcast %cst_6 : f32 to vector<1x4xf32>
    %11 = arith.mulf %9, %10 : vector<1x4xf32>
    %12 = arith.mulf %6, %6 : vector<1x4xf32>
    %13 = arith.subf %11, %12 : vector<1x4xf32>
    %c0_7 = arith.constant 0 : index
    %c0_8 = arith.constant 0 : index
    %14 = vector.load %arg4[%c0_7, %c0_8] : memref<1x4xf32, #tpu.memory_space<vmem>>, vector<1x4xf32>
    %cst_9 = arith.constant 9.99999974E-6 : f32
    %15 = vector.broadcast %cst_9 : f32 to vector<1x4xf32>
    %16 = arith.addf %13, %15 : vector<1x4xf32>
    %17 = math.rsqrt %16 : vector<1x4xf32>
    %18 = arith.mulf %14, %17 : vector<1x4xf32>
    %c0_10 = arith.constant 0 : index
    %c0_11 = arith.constant 0 : index
    %19 = vector.load %arg5[%c0_10, %c0_11] : memref<1x4xf32, #tpu.memory_space<vmem>>, vector<1x4xf32>
    %20 = arith.mulf %6, %18 : vector<1x4xf32>
    %21 = arith.subf %19, %20 : vector<1x4xf32>
    %22 = vector.broadcast %18 : vector<1x4xf32> to vector<512x4xf32>
    %23 = arith.mulf %2, %22 : vector<512x4xf32>
    %24 = vector.broadcast %21 : vector<1x4xf32> to vector<512x4xf32>
    %25 = arith.addf %23, %24 : vector<512x4xf32>
    %cst_12 = arith.constant 0.000000e+00 : f32
    %26 = vector.broadcast %cst_12 : f32 to vector<512x4xf32>
    %27 = arith.maximumf %25, %26 : vector<512x4xf32>
    %cst_13 = arith.constant 0.000000e+00 : f32
    %28 = vector.broadcast %cst_13 : f32 to vector<2x1x18x4xf32>
    %cst_14 = arith.constant 0.000000e+00 : f32
    %29 = vector.broadcast %cst_14 : f32 to vector<2x16x1x4xf32>
    %c0_15 = arith.constant 0 : index
    %c0_16 = arith.constant 0 : index
    %c0_17 = arith.constant 0 : index
    %c0_18 = arith.constant 0 : index
    %30 = vector.load %arg9[%c0_15, %c0_16, %c0_17, %c0_18] : memref<2x18x18x4xf32, #tpu.memory_space<vmem>>, vector<2x1x18x4xf32>
    tpu.vector_store %arg9[%c0_15, %c0_16, %c0_17, %c0_18], %28 {strides = array<i32>} : memref<2x18x18x4xf32, #tpu.memory_space<vmem>>, vector<2x1x18x4xf32>,
    %c0_19 = arith.constant 0 : index
    %c17 = arith.constant 17 : index
    %c0_20 = arith.constant 0 : index
    %c0_21 = arith.constant 0 : index
    %31 = vector.load %arg9[%c0_19, %c17, %c0_20, %c0_21] : memref<2x18x18x4xf32, #tpu.memory_space<vmem>>, vector<2x1x18x4xf32>
    tpu.vector_store %arg9[%c0_19, %c17, %c0_20, %c0_21], %28 {strides = array<i32>} : memref<2x18x18x4xf32, #tpu.memory_space<vmem>>, vector<2x1x18x4xf32>,
    %c0_22 = arith.constant 0 : index
    %c1 = arith.constant 1 : index
    %c0_23 = arith.constant 0 : index
    %c0_24 = arith.constant 0 : index
    %32 = vector.load %arg9[%c0_22, %c1, %c0_23, %c0_24] : memref<2x18x18x4xf32, #tpu.memory_space<vmem>>, vector<2x16x1x4xf32>
    tpu.vector_store %arg9[%c0_22, %c1, %c0_23, %c0_24], %29 {strides = array<i32>} : memref<2x18x18x4xf32, #tpu.memory_space<vmem>>, vector<2x16x1x4xf32>,
    %c0_25 = arith.constant 0 : index
    %c1_26 = arith.constant 1 : index
    %c17_27 = arith.constant 17 : index
    %c0_28 = arith.constant 0 : index
    %33 = vector.load %arg9[%c0_25, %c1_26, %c17_27, %c0_28] : memref<2x18x18x4xf32, #tpu.memory_space<vmem>>, vector<2x16x1x4xf32>
    tpu.vector_store %arg9[%c0_25, %c1_26, %c17_27, %c0_28], %29 {strides = array<i32>} : memref<2x18x18x4xf32, #tpu.memory_space<vmem>>, vector<2x16x1x4xf32>,
    %34 = vector.shape_cast %27 : vector<512x4xf32> to vector<2x16x16x4xf32>
    %c0_29 = arith.constant 0 : index
    %c1_30 = arith.constant 1 : index
    %c1_31 = arith.constant 1 : index
    %c0_32 = arith.constant 0 : index
    %35 = vector.load %arg9[%c0_29, %c1_30, %c1_31, %c0_32] : memref<2x18x18x4xf32, #tpu.memory_space<vmem>>, vector<2x16x16x4xf32>
    tpu.vector_store %arg9[%c0_29, %c1_30, %c1_31, %c0_32], %34 {strides = array<i32>} : memref<2x18x18x4xf32, #tpu.memory_space<vmem>>, vector<2x16x16x4xf32>,
    %c0_33 = arith.constant 0 : index
    %c0_34 = arith.constant 0 : index
    %c0_35 = arith.constant 0 : index
    %c0_36 = arith.constant 0 : index
    %36 = vector.load %arg9[%c0_33, %c0_34, %c0_35, %c0_36] : memref<2x18x18x4xf32, #tpu.memory_space<vmem>>, vector<2x16x16x4xf32>
    %37 = vector.shape_cast %36 : vector<2x16x16x4xf32> to vector<512x4xf32>
    %c0_37 = arith.constant 0 : index
    %c0_38 = arith.constant 0 : index
    %c0_39 = arith.constant 0 : index
    %38 = vector.load %arg3[%c0_37, %c0_38, %c0_39] : memref<9x4x4xf32, #tpu.memory_space<vmem>>, vector<1x4x4xf32>
    %39 = vector.shape_cast %38 : vector<1x4x4xf32> to vector<4x4xf32>
    %cst_40 = arith.constant dense<0.000000e+00> : vector<4x512xf32>
    %40 = tpu.matmul %39, %37, %cst_40 {dimension_numbers = #tpu.dot_dimension_numbers<[1], [1], [0], [0], [0, 0, 1, 0], [], []>} : vector<4x4xf32>, vector<512x4xf32>, vector<4x512xf32> -> vector<4x512xf32>
    %c0_41 = arith.constant 0 : index
    %c0_42 = arith.constant 0 : index
    %c1_43 = arith.constant 1 : index
    %c0_44 = arith.constant 0 : index
    %41 = vector.load %arg9[%c0_41, %c0_42, %c1_43, %c0_44] : memref<2x18x18x4xf32, #tpu.memory_space<vmem>>, vector<2x16x16x4xf32>
    %42 = vector.shape_cast %41 : vector<2x16x16x4xf32> to vector<512x4xf32>
    %c1_45 = arith.constant 1 : index
    %c0_46 = arith.constant 0 : index
    %c0_47 = arith.constant 0 : index
    %43 = vector.load %arg3[%c1_45, %c0_46, %c0_47] : memref<9x4x4xf32, #tpu.memory_space<vmem>>, vector<1x4x4xf32>
    %44 = vector.shape_cast %43 : vector<1x4x4xf32> to vector<4x4xf32>
    %cst_48 = arith.constant dense<0.000000e+00> : vector<4x512xf32>
    %45 = tpu.matmul %44, %42, %cst_48 {dimension_numbers = #tpu.dot_dimension_numbers<[1], [1], [0], [0], [0, 0, 1, 0], [], []>} : vector<4x4xf32>, vector<512x4xf32>, vector<4x512xf32> -> vector<4x512xf32>
    %46 = arith.addf %40, %45 : vector<4x512xf32>
    %c0_49 = arith.constant 0 : index
    %c0_50 = arith.constant 0 : index
    %c2 = arith.constant 2 : index
    %c0_51 = arith.constant 0 : index
    %47 = vector.load %arg9[%c0_49, %c0_50, %c2, %c0_51] : memref<2x18x18x4xf32, #tpu.memory_space<vmem>>, vector<2x16x16x4xf32>
    %48 = vector.shape_cast %47 : vector<2x16x16x4xf32> to vector<512x4xf32>
    %c2_52 = arith.constant 2 : index
    %c0_53 = arith.constant 0 : index
    %c0_54 = arith.constant 0 : index
    %49 = vector.load %arg3[%c2_52, %c0_53, %c0_54] : memref<9x4x4xf32, #tpu.memory_space<vmem>>, vector<1x4x4xf32>
    %50 = vector.shape_cast %49 : vector<1x4x4xf32> to vector<4x4xf32>
    %cst_55 = arith.constant dense<0.000000e+00> : vector<4x512xf32>
    %51 = tpu.matmul %50, %48, %cst_55 {dimension_numbers = #tpu.dot_dimension_numbers<[1], [1], [0], [0], [0, 0, 1, 0], [], []>} : vector<4x4xf32>, vector<512x4xf32>, vector<4x512xf32> -> vector<4x512xf32>
    %52 = arith.addf %46, %51 : vector<4x512xf32>
    %c0_56 = arith.constant 0 : index
    %c1_57 = arith.constant 1 : index
    %c0_58 = arith.constant 0 : index
    %c0_59 = arith.constant 0 : index
    %53 = vector.load %arg9[%c0_56, %c1_57, %c0_58, %c0_59] : memref<2x18x18x4xf32, #tpu.memory_space<vmem>>, vector<2x16x16x4xf32>
    %54 = vector.shape_cast %53 : vector<2x16x16x4xf32> to vector<512x4xf32>
    %c3 = arith.constant 3 : index
    %c0_60 = arith.constant 0 : index
    %c0_61 = arith.constant 0 : index
    %55 = vector.load %arg3[%c3, %c0_60, %c0_61] : memref<9x4x4xf32, #tpu.memory_space<vmem>>, vector<1x4x4xf32>
    %56 = vector.shape_cast %55 : vector<1x4x4xf32> to vector<4x4xf32>
    %cst_62 = arith.constant dense<0.000000e+00> : vector<4x512xf32>
    %57 = tpu.matmul %56, %54, %cst_62 {dimension_numbers = #tpu.dot_dimension_numbers<[1], [1], [0], [0], [0, 0, 1, 0], [], []>} : vector<4x4xf32>, vector<512x4xf32>, vector<4x512xf32> -> vector<4x512xf32>
    %58 = arith.addf %52, %57 : vector<4x512xf32>
    %c0_63 = arith.constant 0 : index
    %c1_64 = arith.constant 1 : index
    %c1_65 = arith.constant 1 : index
    %c0_66 = arith.constant 0 : index
    %59 = vector.load %arg9[%c0_63, %c1_64, %c1_65, %c0_66] : memref<2x18x18x4xf32, #tpu.memory_space<vmem>>, vector<2x16x16x4xf32>
    %60 = vector.shape_cast %59 : vector<2x16x16x4xf32> to vector<512x4xf32>
    %c4 = arith.constant 4 : index
    %c0_67 = arith.constant 0 : index
    %c0_68 = arith.constant 0 : index
    %61 = vector.load %arg3[%c4, %c0_67, %c0_68] : memref<9x4x4xf32, #tpu.memory_space<vmem>>, vector<1x4x4xf32>
    %62 = vector.shape_cast %61 : vector<1x4x4xf32> to vector<4x4xf32>
    %cst_69 = arith.constant dense<0.000000e+00> : vector<4x512xf32>
    %63 = tpu.matmul %62, %60, %cst_69 {dimension_numbers = #tpu.dot_dimension_numbers<[1], [1], [0], [0], [0, 0, 1, 0], [], []>} : vector<4x4xf32>, vector<512x4xf32>, vector<4x512xf32> -> vector<4x512xf32>
    %64 = arith.addf %58, %63 : vector<4x512xf32>
    %c0_70 = arith.constant 0 : index
    %c1_71 = arith.constant 1 : index
    %c2_72 = arith.constant 2 : index
    %c0_73 = arith.constant 0 : index
    %65 = vector.load %arg9[%c0_70, %c1_71, %c2_72, %c0_73] : memref<2x18x18x4xf32, #tpu.memory_space<vmem>>, vector<2x16x16x4xf32>
    %66 = vector.shape_cast %65 : vector<2x16x16x4xf32> to vector<512x4xf32>
    %c5 = arith.constant 5 : index
    %c0_74 = arith.constant 0 : index
    %c0_75 = arith.constant 0 : index
    %67 = vector.load %arg3[%c5, %c0_74, %c0_75] : memref<9x4x4xf32, #tpu.memory_space<vmem>>, vector<1x4x4xf32>
    %68 = vector.shape_cast %67 : vector<1x4x4xf32> to vector<4x4xf32>
    %cst_76 = arith.constant dense<0.000000e+00> : vector<4x512xf32>
    %69 = tpu.matmul %68, %66, %cst_76 {dimension_numbers = #tpu.dot_dimension_numbers<[1], [1], [0], [0], [0, 0, 1, 0], [], []>} : vector<4x4xf32>, vector<512x4xf32>, vector<4x512xf32> -> vector<4x512xf32>
    %70 = arith.addf %64, %69 : vector<4x512xf32>
    %c0_77 = arith.constant 0 : index
    %c2_78 = arith.constant 2 : index
    %c0_79 = arith.constant 0 : index
    %c0_80 = arith.constant 0 : index
    %71 = vector.load %arg9[%c0_77, %c2_78, %c0_79, %c0_80] : memref<2x18x18x4xf32, #tpu.memory_space<vmem>>, vector<2x16x16x4xf32>
    %72 = vector.shape_cast %71 : vector<2x16x16x4xf32> to vector<512x4xf32>
    %c6 = arith.constant 6 : index
    %c0_81 = arith.constant 0 : index
    %c0_82 = arith.constant 0 : index
    %73 = vector.load %arg3[%c6, %c0_81, %c0_82] : memref<9x4x4xf32, #tpu.memory_space<vmem>>, vector<1x4x4xf32>
    %74 = vector.shape_cast %73 : vector<1x4x4xf32> to vector<4x4xf32>
    %cst_83 = arith.constant dense<0.000000e+00> : vector<4x512xf32>
    %75 = tpu.matmul %74, %72, %cst_83 {dimension_numbers = #tpu.dot_dimension_numbers<[1], [1], [0], [0], [0, 0, 1, 0], [], []>} : vector<4x4xf32>, vector<512x4xf32>, vector<4x512xf32> -> vector<4x512xf32>
    %76 = arith.addf %70, %75 : vector<4x512xf32>
    %c0_84 = arith.constant 0 : index
    %c2_85 = arith.constant 2 : index
    %c1_86 = arith.constant 1 : index
    %c0_87 = arith.constant 0 : index
    %77 = vector.load %arg9[%c0_84, %c2_85, %c1_86, %c0_87] : memref<2x18x18x4xf32, #tpu.memory_space<vmem>>, vector<2x16x16x4xf32>
    %78 = vector.shape_cast %77 : vector<2x16x16x4xf32> to vector<512x4xf32>
    %c7 = arith.constant 7 : index
    %c0_88 = arith.constant 0 : index
    %c0_89 = arith.constant 0 : index
    %79 = vector.load %arg3[%c7, %c0_88, %c0_89] : memref<9x4x4xf32, #tpu.memory_space<vmem>>, vector<1x4x4xf32>
    %80 = vector.shape_cast %79 : vector<1x4x4xf32> to vector<4x4xf32>
    %cst_90 = arith.constant dense<0.000000e+00> : vector<4x512xf32>
    %81 = tpu.matmul %80, %78, %cst_90 {dimension_numbers = #tpu.dot_dimension_numbers<[1], [1], [0], [0], [0, 0, 1, 0], [], []>} : vector<4x4xf32>, vector<512x4xf32>, vector<4x512xf32> -> vector<4x512xf32>
    %82 = arith.addf %76, %81 : vector<4x512xf32>
    %c0_91 = arith.constant 0 : index
    %c2_92 = arith.constant 2 : index
    %c2_93 = arith.constant 2 : index
    %c0_94 = arith.constant 0 : index
    %83 = vector.load %arg9[%c0_91, %c2_92, %c2_93, %c0_94] : memref<2x18x18x4xf32, #tpu.memory_space<vmem>>, vector<2x16x16x4xf32>
    %84 = vector.shape_cast %83 : vector<2x16x16x4xf32> to vector<512x4xf32>
    %c8 = arith.constant 8 : index
    %c0_95 = arith.constant 0 : index
    %c0_96 = arith.constant 0 : index
    %85 = vector.load %arg3[%c8, %c0_95, %c0_96] : memref<9x4x4xf32, #tpu.memory_space<vmem>>, vector<1x4x4xf32>
    %86 = vector.shape_cast %85 : vector<1x4x4xf32> to vector<4x4xf32>
    %cst_97 = arith.constant dense<0.000000e+00> : vector<4x512xf32>
    %87 = tpu.matmul %86, %84, %cst_97 {dimension_numbers = #tpu.dot_dimension_numbers<[1], [1], [0], [0], [0, 0, 1, 0], [], []>} : vector<4x4xf32>, vector<512x4xf32>, vector<4x512xf32> -> vector<4x512xf32>
    %88 = arith.addf %82, %87 : vector<4x512xf32>
    %cst_98 = arith.constant dense<0.000000e+00> : vector<4xf32>
    %89 = vector.multi_reduction <add>, %88, %cst_98 [1] : vector<4x512xf32> to vector<4xf32>
    %90 = vector.shape_cast %89 : vector<4xf32> to vector<4x1xf32>
    %cst_99 = arith.constant 0.001953125 : f32
    %91 = vector.broadcast %cst_99 : f32 to vector<4x1xf32>
    %92 = arith.mulf %90, %91 : vector<4x1xf32>
    %93 = arith.mulf %88, %88 : vector<4x512xf32>
    %cst_100 = arith.constant dense<0.000000e+00> : vector<4xf32>
    %94 = vector.multi_reduction <add>, %93, %cst_100 [1] : vector<4x512xf32> to vector<4xf32>
    %95 = vector.shape_cast %94 : vector<4xf32> to vector<4x1xf32>
    %cst_101 = arith.constant 0.001953125 : f32
    %96 = vector.broadcast %cst_101 : f32 to vector<4x1xf32>
    %97 = arith.mulf %95, %96 : vector<4x1xf32>
    %98 = arith.mulf %92, %92 : vector<4x1xf32>
    %99 = arith.subf %97, %98 : vector<4x1xf32>
    %c0_102 = arith.constant 0 : index
    %c0_103 = arith.constant 0 : index
    %100 = vector.load %arg6[%c0_102, %c0_103] : memref<4x1xf32, #tpu.memory_space<vmem>>, vector<4x1xf32>
    %cst_104 = arith.constant 9.99999974E-6 : f32
    %101 = vector.broadcast %cst_104 : f32 to vector<4x1xf32>
    %102 = arith.addf %99, %101 : vector<4x1xf32>
    %103 = math.rsqrt %102 : vector<4x1xf32>
    %104 = arith.mulf %100, %103 : vector<4x1xf32>
    %c0_105 = arith.constant 0 : index
    %c0_106 = arith.constant 0 : index
    %105 = vector.load %arg7[%c0_105, %c0_106] : memref<4x1xf32, #tpu.memory_space<vmem>>, vector<4x1xf32>
    %106 = arith.mulf %92, %104 : vector<4x1xf32>
    %107 = arith.subf %105, %106 : vector<4x1xf32>
    %108 = vector.broadcast %104 : vector<4x1xf32> to vector<4x512xf32>
    %109 = arith.mulf %88, %108 : vector<4x512xf32>
    %110 = vector.broadcast %107 : vector<4x1xf32> to vector<4x512xf32>
    %111 = arith.addf %109, %110 : vector<4x512xf32>
    %cst_107 = arith.constant 0.000000e+00 : f32
    %112 = vector.broadcast %cst_107 : f32 to vector<4x512xf32>
    %113 = arith.maximumf %111, %112 : vector<4x512xf32>
    %c0_108 = arith.constant 0 : index
    %c0_109 = arith.constant 0 : index
    %114 = vector.load %arg1[%c0_108, %c0_109] : memref<4x512xf32, #tpu.memory_space<vmem>>, vector<4x512xf32>
    %115 = arith.addf %114, %113 : vector<4x512xf32>
    %cst_110 = arith.constant 0.000000e+00 : f32
    %116 = vector.broadcast %cst_110 : f32 to vector<4x512xf32>
    %117 = arith.maximumf %115, %116 : vector<4x512xf32>
    %c0_111 = arith.constant 0 : index
    %c0_112 = arith.constant 0 : index
    %118 = vector.load %arg8[%c0_111, %c0_112] : memref<4x512xf32, #tpu.memory_space<vmem>>, vector<4x512xf32>
    tpu.vector_store %arg8[%c0_111, %c0_112], %117 {strides = array<i32>} : memref<4x512xf32, #tpu.memory_space<vmem>>, vector<4x512xf32>,
    return
  }
}

</mosaic_0001>

<bundles_post_ra>
// kernel: residual_block_forward.1
= control target key start
LH: loop header
LB: loop body
LE: loop exit
PB: predicated region body
PF: predicated region fallthrough
CT: control target
= control target key end

     0   :  { %vm98_vm0 = vcmask 293888   ;;  %vm291_vm1 = vcmask 1043456   ;;  %vm680_vm2 = vcmask 31744   ;;  %vm1228_vm3 = vcmask 25600   ;;  %s10012_s2 = inlined_call_operand.vmem [shape: f32[36,4], index: 2, kind: input, shape index: {}]   ;;  %s10013_s0 = inlined_call_operand.vmem [shape: f32[512,36], index: 0, kind: input, shape index: {}]   ;;  %s10014_s3 = inlined_call_operand.vmem [shape: f32[9,4,4], index: 3, kind: input, shape index: {}]   ;;  %s10015_s4 = inlined_call_operand.vmem [shape: f32[1,4], index: 4, kind: input, shape index: {}]   ;;  %s10016_s5 = inlined_call_operand.vmem [shape: f32[1,4], index: 5, kind: input, shape index: {}]   ;;  %s10017_s6 = inlined_call_operand.vmem [shape: f32[4,1], index: 6, kind: input, shape index: {}]   ;;  %s10018_s7 = inlined_call_operand.vmem [shape: f32[4,1], index: 7, kind: input, shape index: {}]   ;;  %s10019_s1 = inlined_call_operand.vmem [shape: f32[4,512], index: 1, kind: input, shape index: {}]   ;;  %s10020_s8 = inlined_call_operand.vmem [shape: f32[4,512], index: 8, kind: output, shape index: {}]  }
   0x1   :  { %v93_v0 = vld [vmem:[%s10012_s2] sm:$0xff]  ;;  %v94_v1 = vld [vmem:[%s10012_s2 + $0x8] sm:$0xff]  ;;  %v95_v2 = vld [vmem:[%s10012_s2 + $0x10] sm:$0xff]  ;;  %vm1241_vm4 = vcmask 24576  }
   0x2   :  { %v6554_v3 = vpack.c.bf16 %v94_v1, %v93_v0  ;;  %v96_v4 = vld [vmem:[%s10012_s2 + $0x18] sm:$0xff]  ;;  %v29_v5 = vld [vmem:[%s10013_s0] sm:$0xff]  ;;  %v30_v8 = vld [vmem:[%s10013_s0 + $0x8] sm:$0xff] }
   0x3   :  { %v6558_v6 = vpack.c.bf16 %v96_v4, %v95_v2  ;;  %6458 = vmatprep.mubr.msk.f32.mxu0 %vm98_vm0, %v29_v5  ;;  %v97_v7 = vld [vmem:[%s10012_s2 + $0x20] sm:$0xf]  ;;  %v31_v9 = vld [vmem:[%s10013_s0 + $0x10] sm:$0xff]  ;;  %v32_v10 = vld [vmem:[%s10013_s0 + $0x18] sm:$0xff] }
   0x4   :  { %6555 = vmatprep.subr.bf16.mxu0 %v6554_v3  ;;  %v33_v11 = vld [vmem:[%s10013_s0 + $0x20] sm:$0xff]  ;;  %v34_v12 = vld [vmem:[%s10013_s0 + $0x28] sm:$0xff]  ;;  %v35_v13 = vld [vmem:[%s10013_s0 + $0x30] sm:$0xff] }
   0x5   :  { %6557 = vmatpush3.bf16.msra.mxu0 %v6554_v3  ;;  %v36_v14 = vld [vmem:[%s10013_s0 + $0x38] sm:$0xff]  ;;  %v37_v15 = vld [vmem:[%s10013_s0 + $0x40] sm:$0xff]  ;;  %v38_v16 = vld [vmem:[%s10013_s0 + $0x48] sm:$0xff] }
   0x6   :  { %6559 = vmatprep.subr.bf16.mxu0 %v6558_v6  ;;  %v39_v17 = vld [vmem:[%s10013_s0 + $0x50] sm:$0xff]  ;;  %v40_v18 = vld [vmem:[%s10013_s0 + $0x58] sm:$0xff]  ;;  %v41_v19 = vld [vmem:[%s10013_s0 + $0x60] sm:$0xff] }
   0x7   :  { %v42_v20 = vld [vmem:[%s10013_s0 + $0x68] sm:$0xff]  ;;  %v43_v21 = vld [vmem:[%s10013_s0 + $0x70] sm:$0xff]  ;;  %v44_v22 = vld [vmem:[%s10013_s0 + $0x78] sm:$0xff] }
   0x8   :  { %v45_v23 = vld [vmem:[%s10013_s0 + $0x80] sm:$0xff]  ;;  %v46_v24 = vld [vmem:[%s10013_s0 + $0x88] sm:$0xff]  ;;  %v47_v25 = vld [vmem:[%s10013_s0 + $0x90] sm:$0xff] }
   0x9   :  { %6561 = vmatpush3.bf16.msra.mxu0 %v6558_v6  ;;  %v48_v26 = vld [vmem:[%s10013_s0 + $0x98] sm:$0xff]  ;;  %v49_v27 = vld [vmem:[%s10013_s0 + $0xa0] sm:$0xff]  ;;  %v50_v28 = vld [vmem:[%s10013_s0 + $0xa8] sm:$0xff] }
   0xa   :  { %6456 = vmatprep.subr.msk.mxu0 %vm291_vm1, %v97_v7  ;;  %v51_v29 = vld [vmem:[%s10013_s0 + $0xb0] sm:$0xff]  ;;  %v52_v30 = vld [vmem:[%s10013_s0 + $0xb8] sm:$0xff]  ;;  %v53_v31 = vld [vmem:[%s10013_s0 + $0xc0] sm:$0xff] }
   0xb   :  { %v54_v32 = vld [vmem:[%s10013_s0 + $0xc8] sm:$0xff]  ;;  %v55_v33 = vld [vmem:[%s10013_s0 + $0xd0] sm:$0xff]  ;;  %v56_v34 = vld [vmem:[%s10013_s0 + $0xd8] sm:$0xff] }
   0xc   :  { %v57_v35 = vld [vmem:[%s10013_s0 + $0xe0] sm:$0xff]  ;;  %v58_v36 = vld [vmem:[%s10013_s0 + $0xe8] sm:$0xff]  ;;  %v59_v37 = vld [vmem:[%s10013_s0 + $0xf0] sm:$0xff] }
   0xd   :  { %6457 = vmatpush3.msk.msra.mxu0 %vm291_vm1, %v97_v7  ;;  %v60_v38 = vld [vmem:[%s10013_s0 + $0xf8] sm:$0xff]  ;;  %v61_v39 = vld [vmem:[%s10013_s0 + $0x100] sm:$0xff]  ;;  %v62_v40 = vld [vmem:[%s10013_s0 + $0x108] sm:$0xff] }
   0xe   :  { %6459 = vmatmul.mubr.msk.f32.vlgmr.msra.gmra.mrb[0].mxu0 %vm98_vm0, %v30_v8  ;;  %v63_v41 = vld [vmem:[%s10013_s0 + $0x110] sm:$0xff]  ;;  %v64_v42 = vld [vmem:[%s10013_s0 + $0x118] sm:$0xff]  ;;  %v65_v43 = vld [vmem:[%s10013_s0 + $0x120] sm:$0xff] }
   0xf   :  { %6461 = vmatprep.mubr.msk.f32.mxu0 %vm98_vm0, %v31_v9  ;;  %v66_v44 = vld [vmem:[%s10013_s0 + $0x128] sm:$0xff]  ;;  %v67_v45 = vld [vmem:[%s10013_s0 + $0x130] sm:$0xff]  ;;  %v68_v46 = vld [vmem:[%s10013_s0 + $0x138] sm:$0xff] }
  0x10   :  { %v69_v47 = vld [vmem:[%s10013_s0 + $0x140] sm:$0xff]  ;;  %v70_v48 = vld [vmem:[%s10013_s0 + $0x148] sm:$0xff]  ;;  %v71_v49 = vld [vmem:[%s10013_s0 + $0x150] sm:$0xff] }
  0x11   :  { %v72_v50 = vld [vmem:[%s10013_s0 + $0x158] sm:$0xff]  ;;  %v73_v51 = vld [vmem:[%s10013_s0 + $0x160] sm:$0xff]  ;;  %v74_v52 = vld [vmem:[%s10013_s0 + $0x168] sm:$0xff] }
  0x12   :  { %6462 = vmatmul.mubr.msk.f32.gmra.mrb[2].mxu0 %vm98_vm0, %v32_v10  ;;  %v75_v53 = vld [vmem:[%s10013_s0 + $0x170] sm:$0xff]  ;;  %v76_v54 = vld [vmem:[%s10013_s0 + $0x178] sm:$0xff]  ;;  %v77_v55 = vld [vmem:[%s10013_s0 + $0x180] sm:$0xff] }
  0x13   :  { %6464 = vmatprep.mubr.msk.f32.mxu0 %vm98_vm0, %v33_v11  ;;  %v78_v56 = vld [vmem:[%s10013_s0 + $0x188] sm:$0xff]  ;;  %v79_v57 = vld [vmem:[%s10013_s0 + $0x190] sm:$0xff]  ;;  %v80_v58 = vld [vmem:[%s10013_s0 + $0x198] sm:$0xff] }
  0x14   :  { %v81_v59 = vld [vmem:[%s10013_s0 + $0x1a0] sm:$0xff]  ;;  %v82_v60 = vld [vmem:[%s10013_s0 + $0x1a8] sm:$0xff]  ;;  %v83_v61 = vld [vmem:[%s10013_s0 + $0x1b0] sm:$0xff] }
  0x15   :  { %v84_v62 = vld [vmem:[%s10013_s0 + $0x1b8] sm:$0xff]  ;;  %v85_v63 = vld [vmem:[%s10013_s0 + $0x1c0] sm:$0xff]  ;;  %v86_v0 = vld [vmem:[%s10013_s0 + $0x1c8] sm:$0xff] }
  0x16   :  { %6465 = vmatmul.mubr.msk.f32.gmra.mrb[4].mxu0 %vm98_vm0, %v34_v12  ;;  %v87_v1 = vld [vmem:[%s10013_s0 + $0x1d0] sm:$0xff]  ;;  %v88_v2 = vld [vmem:[%s10013_s0 + $0x1d8] sm:$0xff]  ;;  %v89_v3 = vld [vmem:[%s10013_s0 + $0x1e0] sm:$0xff] }
  0x17   :  { %6467 = vmatprep.mubr.msk.f32.mxu0 %vm98_vm0, %v35_v13  ;;  %v90_v4 = vld [vmem:[%s10013_s0 + $0x1e8] sm:$0xff]  ;;  %v91_v5 = vld [vmem:[%s10013_s0 + $0x1f0] sm:$0xff]  ;;  %v92_v6 = vld [vmem:[%s10013_s0 + $0x1f8] sm:$0xff] }
  0x18   :  { %vm9042_vm5 = vmpackc.low %vm680_vm2, %vm680_vm2 }
  0x1a   :  { %6468 = vmatmul.mubr.msk.f32.gmra.mrb[6].mxu0 %vm98_vm0, %v36_v14 }
  0x1b   :  { %6470 = vmatprep.mubr.msk.f32.mxu0 %vm98_vm0, %v37_v15 }
  0x1e   :  { %6471 = vmatmul.mubr.msk.f32.gmra.mrb[8].mxu0 %vm98_vm0, %v38_v16 }
  0x1f   :  { %6473 = vmatprep.mubr.msk.f32.mxu0 %vm98_vm0, %v39_v17 }
  0x22   :  { %6474 = vmatmul.mubr.msk.f32.gmra.mrb[10].mxu0 %vm98_vm0, %v40_v18 }
  0x23   :  { %6476 = vmatprep.mubr.msk.f32.mxu0 %vm98_vm0, %v41_v19 }
  0x26   :  { %6477 = vmatmul.mubr.msk.f32.gmra.mrb[12].mxu0 %vm98_vm0, %v42_v20 }
  0x27   :  { %6479 = vmatprep.mubr.msk.f32.mxu0 %vm98_vm0, %v43_v21 }
  0x2a   :  { %6480 = vmatmul.mubr.msk.f32.gmra.mrb[14].mxu0 %vm98_vm0, %v44_v22 }
  0x2b   :  { %6482 = vmatprep.mubr.msk.f32.mxu0 %vm98_vm0, %v45_v23 }
  0x2e   :  { %6483 = vmatmul.mubr.msk.f32.gmra.mrb[16].mxu0 %vm98_vm0, %v46_v24 }
  0x2f   :  { %6485 = vmatprep.mubr.msk.f32.mxu0 %vm98_vm0, %v47_v25 }
  0x32   :  { %6486 = vmatmul.mubr.msk.f32.gmra.mrb[18].mxu0 %vm98_vm0, %v48_v26 }
  0x33   :  { %6488 = vmatprep.mubr.msk.f32.mxu0 %vm98_vm0, %v49_v27 }
  0x36   :  { %6489 = vmatmul.mubr.msk.f32.gmra.mrb[20].mxu0 %vm98_vm0, %v50_v28 }
  0x37   :  { %6491 = vmatprep.mubr.msk.f32.mxu0 %vm98_vm0, %v51_v29 }
  0x3a   :  { %6492 = vmatmul.mubr.msk.f32.gmra.mrb[22].mxu0 %vm98_vm0, %v52_v30 }
  0x3b   :  { %6494 = vmatprep.mubr.msk.f32.mxu0 %vm98_vm0, %v53_v31 }
  0x3e   :  { %6495 = vmatmul.mubr.msk.f32.gmra.mrb[24].mxu0 %vm98_vm0, %v54_v32 }
  0x3f   :  { %6497 = vmatprep.mubr.msk.f32.mxu0 %vm98_vm0, %v55_v33 }
  0x42   :  { %6498 = vmatmul.mubr.msk.f32.gmra.mrb[26].mxu0 %vm98_vm0, %v56_v34 }
  0x43   :  { %6500 = vmatprep.mubr.msk.f32.mxu0 %vm98_vm0, %v57_v35 }
  0x46   :  { %6501 = vmatmul.mubr.msk.f32.gmra.mrb[28].mxu0 %vm98_vm0, %v58_v36 }
  0x47   :  { %6503 = vmatprep.mubr.msk.f32.mxu0 %vm98_vm0, %v59_v37 }
  0x4a   :  { %6504 = vmatmul.mubr.msk.f32.gmra.mrb[30].mxu0 %vm98_vm0, %v60_v38 }
  0x4b   :  { %6506 = vmatprep.mubr.msk.f32.mxu0 %vm98_vm0, %v61_v39 }
  0x4e   :  { %6507 = vmatmul.mubr.msk.f32.gmra.mrb[32].mxu0 %vm98_vm0, %v62_v40 }
  0x4f   :  { %6509 = vmatprep.mubr.msk.f32.mxu0 %vm98_vm0, %v63_v41 }
  0x52   :  { %6510 = vmatmul.mubr.msk.f32.gmra.mrb[34].mxu0 %vm98_vm0, %v64_v42 }
  0x53   :  { %6512 = vmatprep.mubr.msk.f32.mxu0 %vm98_vm0, %v65_v43 }
  0x56   :  { %6513 = vmatmul.mubr.msk.f32.gmra.mrb[36].mxu0 %vm98_vm0, %v66_v44 }
  0x57   :  { %6515 = vmatprep.mubr.msk.f32.mxu0 %vm98_vm0, %v67_v45 }
  0x5a   :  { %6516 = vmatmul.mubr.msk.f32.gmra.mrb[38].mxu0 %vm98_vm0, %v68_v46 }
  0x5b   :  { %6518 = vmatprep.mubr.msk.f32.mxu0 %vm98_vm0, %v69_v47 }
  0x5e   :  { %6519 = vmatmul.mubr.msk.f32.gmra.mrb[40].mxu0 %vm98_vm0, %v70_v48 }
  0x5f   :  { %6521 = vmatprep.mubr.msk.f32.mxu0 %vm98_vm0, %v71_v49 }
  0x62   :  { %6522 = vmatmul.mubr.msk.f32.gmra.mrb[42].mxu0 %vm98_vm0, %v72_v50 }
  0x63   :  { %6524 = vmatprep.mubr.msk.f32.mxu0 %vm98_vm0, %v73_v51 }
  0x66   :  { %6525 = vmatmul.mubr.msk.f32.gmra.mrb[44].mxu0 %vm98_vm0, %v74_v52 }
  0x67   :  { %6527 = vmatprep.mubr.msk.f32.mxu0 %vm98_vm0, %v75_v53 }
  0x6a   :  { %6528 = vmatmul.mubr.msk.f32.gmra.mrb[46].mxu0 %vm98_vm0, %v76_v54 }
  0x6b   :  { %6530 = vmatprep.mubr.msk.f32.mxu0 %vm98_vm0, %v77_v55 }
  0x6e   :  { %6531 = vmatmul.mubr.msk.f32.gmra.mrb[48].mxu0 %vm98_vm0, %v78_v56 }
  0x6f   :  { %6533 = vmatprep.mubr.msk.f32.mxu0 %vm98_vm0, %v79_v57 }
  0x72   :  { %6534 = vmatmul.mubr.msk.f32.gmra.mrb[50].mxu0 %vm98_vm0, %v80_v58 }
  0x73   :  { %6536 = vmatprep.mubr.msk.f32.mxu0 %vm98_vm0, %v81_v59 }
  0x76   :  { %6537 = vmatmul.mubr.msk.f32.gmra.mrb[52].mxu0 %vm98_vm0, %v82_v60 }
  0x77   :  { %6539 = vmatprep.mubr.msk.f32.mxu0 %vm98_vm0, %v83_v61 }
  0x7a   :  { %6540 = vmatmul.mubr.msk.f32.gmra.mrb[54].mxu0 %vm98_vm0, %v84_v62 }
  0x7b   :  { %6542 = vmatprep.mubr.msk.f32.mxu0 %vm98_vm0, %v85_v63 }
  0x7e   :  { %6543 = vmatmul.mubr.msk.f32.gmra.mrb[56].mxu0 %vm98_vm0, %v86_v0 }
  0x7f   :  { %6545 = vmatprep.mubr.msk.f32.mxu0 %vm98_vm0, %v87_v1 }
  0x82   :  { %6546 = vmatmul.mubr.msk.f32.gmra.mrb[58].mxu0 %vm98_vm0, %v88_v2 }
  0x83   :  { %6548 = vmatprep.mubr.msk.f32.mxu0 %vm98_vm0, %v89_v3 }
  0x86   :  { %6549 = vmatmul.mubr.msk.f32.gmra.mrb[60].mxu0 %vm98_vm0, %v90_v4 }
  0x87   :  { %6551 = vmatprep.mubr.msk.f32.mxu0 %vm98_vm0, %v91_v5 }
  0x8a   :  { %6552 = vmatmul.mubr.msk.f32.gmra.mrb[62].mxu0 %vm98_vm0, %v92_v6 }
  0xe1   :  { %v7786_v7 = vpop.f32.mrb[0].mxu0 }
  0xe2   :  { %v682_v8 = vsel %vm680_vm2, %v7786_v7, 0.0  ;;  %v816_v9 = vmul.f32 %v7786_v7, %v7786_v7  ;;  %v7792_v10 = vpop.f32.mrb[1].mxu0 }
  0xe3   :  { %v681_v11 = vsel %vm680_vm2, %v7792_v10, 0.0  ;;  %v815_v12 = vmul.f32 %v7792_v10, %v7792_v10 }
  0xe4   :  { %v880_v13 = vsel %vm680_vm2, %v816_v9, 0.0  ;;  %v683_v14 = vadd.f32 %v682_v8, %v681_v11 }
  0xe5   :  { %v879_v15 = vsel %vm680_vm2, %v815_v12, 0.0  ;;  %v7800_v16 = vpop.f32.mrb[2].mxu0 }
  0xe6   :  { %v881_v17 = vadd.f32 %v880_v13, %v879_v15  ;;  %v7802_v18 = vpop.f32.mrb[3].mxu0  ;;  %v818_v19 = vmul.f32 %v7800_v16, %v7800_v16  ;;  %v686_v23 = vsel %vm680_vm2, %v7800_v16, 0.0 }
  0xe7   :  { %v684_v20 = vsel %vm680_vm2, %v7802_v18, 0.0  ;;  %v817_v21 = vmul.f32 %v7802_v18, %v7802_v18 }
  0xe8   :  { %v685_v22 = vadd.f32 %v684_v20, %v683_v14  ;;  %v884_v29 = vsel %vm680_vm2, %v818_v19, 0.0 }
  0xe9   :  { %v882_v24 = vsel %vm680_vm2, %v817_v21, 0.0  ;;  %v7813_v25 = vpop.f32.mrb[4].mxu0 }
  0xea   :  { %v687_v26 = vadd.f32 %v686_v23, %v685_v22  ;;  %v883_v27 = vadd.f32 %v882_v24, %v881_v17  ;;  %v7815_v28 = vpop.f32.mrb[5].mxu0  ;;  %v820_v30 = vmul.f32 %v7813_v25, %v7813_v25  ;;  %v690_v35 = vsel %vm680_vm2, %v7813_v25, 0.0 }
  0xeb   :  { %v688_v31 = vsel %vm680_vm2, %v7815_v28, 0.0  ;;  %v819_v32 = vmul.f32 %v7815_v28, %v7815_v28 }
  0xec   :  { %v885_v33 = vadd.f32 %v884_v29, %v883_v27  ;;  %v689_v34 = vadd.f32 %v688_v31, %v687_v26  ;;  %v888_v41 = vsel %vm680_vm2, %v820_v30, 0.0 }
  0xed   :  { %v886_v36 = vsel %vm680_vm2, %v819_v32, 0.0  ;;  %v7827_v37 = vpop.f32.mrb[6].mxu0 }
  0xee   :  { %v887_v38 = vadd.f32 %v886_v36, %v885_v33  ;;  %v7829_v39 = vpop.f32.mrb[7].mxu0  ;;  %v691_v40 = vadd.f32 %v690_v35, %v689_v34  ;;  %v822_v42 = vmul.f32 %v7827_v37, %v7827_v37  ;;  %v694_v47 = vsel %vm680_vm2, %v7827_v37, 0.0 }
  0xef   :  { %v692_v43 = vsel %vm680_vm2, %v7829_v39, 0.0  ;;  %v821_v44 = vmul.f32 %v7829_v39, %v7829_v39 }
  0xf0   :  { %v693_v45 = vadd.f32 %v692_v43, %v691_v40  ;;  %v889_v46 = vadd.f32 %v888_v41, %v887_v38  ;;  %v892_v53 = vsel %vm680_vm2, %v822_v42, 0.0 }
  0xf1   :  { %v890_v48 = vsel %vm680_vm2, %v821_v44, 0.0  ;;  %v7841_v49 = vpop.f32.mrb[8].mxu0 }
  0xf2   :  { %v891_v50 = vadd.f32 %v890_v48, %v889_v46  ;;  %v7843_v51 = vpop.f32.mrb[9].mxu0  ;;  %v695_v52 = vadd.f32 %v694_v47, %v693_v45  ;;  %v824_v54 = vmul.f32 %v7841_v49, %v7841_v49  ;;  %v698_v59 = vsel %vm680_vm2, %v7841_v49, 0.0 }
  0xf3   :  { %v696_v55 = vsel %vm680_vm2, %v7843_v51, 0.0  ;;  %v823_v56 = vmul.f32 %v7843_v51, %v7843_v51 }
  0xf4   :  { %v697_v57 = vadd.f32 %v696_v55, %v695_v52  ;;  %v893_v58 = vadd.f32 %v892_v53, %v891_v50  ;;  %v896_v1 = vsel %vm680_vm2, %v824_v54, 0.0 }
  0xf5   :  { %v894_v60 = vsel %vm680_vm2, %v823_v56, 0.0  ;;  %v7855_v61 = vpop.f32.mrb[10].mxu0 }
  0xf6   :  { %v895_v62 = vadd.f32 %v894_v60, %v893_v58  ;;  %v7857_v63 = vpop.f32.mrb[11].mxu0  ;;  %v699_v0 = vadd.f32 %v698_v59, %v697_v57  ;;  %v826_v2 = vmul.f32 %v7855_v61, %v7855_v61  ;;  %v702_v8 = vsel %vm680_vm2, %v7855_v61, 0.0 }
  0xf7   :  { %v700_v3 = vsel %vm680_vm2, %v7857_v63, 0.0  ;;  %v825_v4 = vmul.f32 %v7857_v63, %v7857_v63 }
  0xf8   :  { %v701_v5 = vadd.f32 %v700_v3, %v699_v0  ;;  %v897_v6 = vadd.f32 %v896_v1, %v895_v62  ;;  %v900_v15 = vsel %vm680_vm2, %v826_v2, 0.0 }
  0xf9   :  { %v898_v9 = vsel %vm680_vm2, %v825_v4, 0.0  ;;  %v7869_v11 = vpop.f32.mrb[12].mxu0 }
  0xfa   :  { %v899_v12 = vadd.f32 %v898_v9, %v897_v6  ;;  %v7871_v13 = vpop.f32.mrb[13].mxu0  ;;  %v703_v14 = vadd.f32 %v702_v8, %v701_v5  ;;  %v828_v17 = vmul.f32 %v7869_v11, %v7869_v11  ;;  %v706_v23 = vsel %vm680_vm2, %v7869_v11, 0.0 }
  0xfb   :  { %v704_v19 = vsel %vm680_vm2, %v7871_v13, 0.0  ;;  %v827_v20 = vmul.f32 %v7871_v13, %v7871_v13 }
  0xfc   :  { %v705_v21 = vadd.f32 %v704_v19, %v703_v14  ;;  %v901_v22 = vadd.f32 %v900_v15, %v899_v12  ;;  %v904_v31 = vsel %vm680_vm2, %v828_v17, 0.0 }
  0xfd   :  { %v902_v24 = vsel %vm680_vm2, %v827_v20, 0.0  ;;  %v7883_v26 = vpop.f32.mrb[14].mxu0 }
  0xfe   :  { %v903_v27 = vadd.f32 %v902_v24, %v901_v22  ;;  %v7885_v29 = vpop.f32.mrb[15].mxu0  ;;  %v707_v30 = vadd.f32 %v706_v23, %v705_v21  ;;  %v830_v32 = vmul.f32 %v7883_v26, %v7883_v26  ;;  %v710_v38 = vsel %vm680_vm2, %v7883_v26, 0.0 }
  0xff   :  { %v708_v33 = vsel %vm680_vm2, %v7885_v29, 0.0  ;;  %v829_v34 = vmul.f32 %v7885_v29, %v7885_v29 }
 0x100   :  { %v709_v35 = vadd.f32 %v708_v33, %v707_v30  ;;  %v905_v36 = vadd.f32 %v904_v31, %v903_v27  ;;  %v908_v45 = vsel %vm680_vm2, %v830_v32, 0.0 }
 0x101   :  { %v906_v40 = vsel %vm680_vm2, %v829_v34, 0.0  ;;  %v7897_v41 = vpop.f32.mrb[16].mxu0 }
 0x102   :  { %v907_v42 = vadd.f32 %v906_v40, %v905_v36  ;;  %v7899_v43 = vpop.f32.mrb[17].mxu0  ;;  %v711_v44 = vadd.f32 %v710_v38, %v709_v35  ;;  %v832_v46 = vmul.f32 %v7897_v41, %v7897_v41  ;;  %v714_v53 = vsel %vm680_vm2, %v7897_v41, 0.0 }
 0x103   :  { %v712_v47 = vsel %vm680_vm2, %v7899_v43, 0.0  ;;  %v831_v48 = vmul.f32 %v7899_v43, %v7899_v43 }
 0x104   :  { %v713_v50 = vadd.f32 %v712_v47, %v711_v44  ;;  %v909_v52 = vadd.f32 %v908_v45, %v907_v42  ;;  %v912_v59 = vsel %vm680_vm2, %v832_v46, 0.0 }
 0x105   :  { %v910_v54 = vsel %vm680_vm2, %v831_v48, 0.0  ;;  %v7911_v55 = vpop.f32.mrb[18].mxu0 }
 0x106   :  { %v911_v56 = vadd.f32 %v910_v54, %v909_v52  ;;  %v7913_v57 = vpop.f32.mrb[19].mxu0  ;;  %v715_v58 = vadd.f32 %v714_v53, %v713_v50  ;;  %v834_v60 = vmul.f32 %v7911_v55, %v7911_v55  ;;  %v718_v3 = vsel %vm680_vm2, %v7911_v55, 0.0 }
 0x107   :  { %v716_v62 = vsel %vm680_vm2, %v7913_v57, 0.0  ;;  %v833_v0 = vmul.f32 %v7913_v57, %v7913_v57 }
 0x108   :  { %v717_v1 = vadd.f32 %v716_v62, %v715_v58  ;;  %v913_v2 = vadd.f32 %v912_v59, %v911_v56  ;;  %v916_v12 = vsel %vm680_vm2, %v834_v60, 0.0 }
 0x109   :  { %v914_v4 = vsel %vm680_vm2, %v833_v0, 0.0  ;;  %v7925_v5 = vpop.f32.mrb[20].mxu0 }
 0x10a   :  { %v915_v6 = vadd.f32 %v914_v4, %v913_v2  ;;  %v7927_v8 = vpop.f32.mrb[21].mxu0  ;;  %v719_v9 = vadd.f32 %v718_v3, %v717_v1  ;;  %v836_v14 = vmul.f32 %v7925_v5, %v7925_v5  ;;  %v722_v21 = vsel %vm680_vm2, %v7925_v5, 0.0 }
 0x10b   :  { %v720_v15 = vsel %vm680_vm2, %v7927_v8, 0.0  ;;  %v835_v17 = vmul.f32 %v7927_v8, %v7927_v8 }
 0x10c   :  { %v721_v19 = vadd.f32 %v720_v15, %v719_v9  ;;  %v917_v20 = vadd.f32 %v916_v12, %v915_v6  ;;  %v920_v31 = vsel %vm680_vm2, %v836_v14, 0.0 }
 0x10d   :  { %v918_v22 = vsel %vm680_vm2, %v835_v17, 0.0  ;;  %v7939_v23 = vpop.f32.mrb[22].mxu0 }
 0x10e   :  { %v919_v24 = vadd.f32 %v918_v22, %v917_v20  ;;  %v7941_v27 = vpop.f32.mrb[23].mxu0  ;;  %v723_v30 = vadd.f32 %v722_v21, %v721_v19  ;;  %v838_v32 = vmul.f32 %v7939_v23, %v7939_v23  ;;  %v726_v38 = vsel %vm680_vm2, %v7939_v23, 0.0 }
 0x10f   :  { %v724_v33 = vsel %vm680_vm2, %v7941_v27, 0.0  ;;  %v837_v34 = vmul.f32 %v7941_v27, %v7941_v27 }
 0x110   :  { %v725_v35 = vadd.f32 %v724_v33, %v723_v30  ;;  %v921_v36 = vadd.f32 %v920_v31, %v919_v24  ;;  %v924_v47 = vsel %vm680_vm2, %v838_v32, 0.0 }
 0x111   :  { %v922_v40 = vsel %vm680_vm2, %v837_v34, 0.0  ;;  %v7953_v42 = vpop.f32.mrb[24].mxu0 }
 0x112   :  { %v923_v44 = vadd.f32 %v922_v40, %v921_v36  ;;  %v7955_v45 = vpop.f32.mrb[25].mxu0  ;;  %v727_v46 = vadd.f32 %v726_v38, %v725_v35  ;;  %v840_v48 = vmul.f32 %v7953_v42, %v7953_v42  ;;  %v730_v56 = vsel %vm680_vm2, %v7953_v42, 0.0 }
 0x113   :  { %v728_v50 = vsel %vm680_vm2, %v7955_v45, 0.0  ;;  %v839_v52 = vmul.f32 %v7955_v45, %v7955_v45 }
 0x114   :  { %v729_v53 = vadd.f32 %v728_v50, %v727_v46  ;;  %v925_v54 = vadd.f32 %v924_v47, %v923_v44  ;;  %v928_v1 = vsel %vm680_vm2, %v840_v48, 0.0 }
 0x115   :  { %v926_v58 = vsel %vm680_vm2, %v839_v52, 0.0  ;;  %v7967_v59 = vpop.f32.mrb[26].mxu0 }
 0x116   :  { %v927_v60 = vadd.f32 %v926_v58, %v925_v54  ;;  %v7969_v62 = vpop.f32.mrb[27].mxu0  ;;  %v731_v0 = vadd.f32 %v730_v56, %v729_v53  ;;  %v842_v2 = vmul.f32 %v7967_v59, %v7967_v59  ;;  %v734_v12 = vsel %vm680_vm2, %v7967_v59, 0.0 }
 0x117   :  { %v732_v3 = vsel %vm680_vm2, %v7969_v62, 0.0  ;;  %v841_v4 = vmul.f32 %v7969_v62, %v7969_v62 }
 0x118   :  { %v733_v6 = vadd.f32 %v732_v3, %v731_v0  ;;  %v929_v9 = vadd.f32 %v928_v1, %v927_v60  ;;  %v932_v21 = vsel %vm680_vm2, %v842_v2, 0.0 }
 0x119   :  { %v930_v14 = vsel %vm680_vm2, %v841_v4, 0.0  ;;  %v7981_v15 = vpop.f32.mrb[28].mxu0 }
 0x11a   :  { %v931_v17 = vadd.f32 %v930_v14, %v929_v9  ;;  %v7983_v19 = vpop.f32.mrb[29].mxu0  ;;  %v735_v20 = vadd.f32 %v734_v12, %v733_v6  ;;  %v844_v22 = vmul.f32 %v7981_v15, %v7981_v15  ;;  %v738_v33 = vsel %vm680_vm2, %v7981_v15, 0.0 }
 0x11b   :  { %v736_v24 = vsel %vm680_vm2, %v7983_v19, 0.0  ;;  %v843_v30 = vmul.f32 %v7983_v19, %v7983_v19 }
 0x11c   :  { %v737_v31 = vadd.f32 %v736_v24, %v735_v20  ;;  %v933_v32 = vadd.f32 %v932_v21, %v931_v17  ;;  %v936_v44 = vsel %vm680_vm2, %v844_v22, 0.0 }
 0x11d   :  { %v934_v34 = vsel %vm680_vm2, %v843_v30, 0.0  ;;  %v7995_v35 = vpop.f32.mrb[30].mxu0 }
 0x11e   :  { %v935_v36 = vadd.f32 %v934_v34, %v933_v32  ;;  %v7997_v38 = vpop.f32.mrb[31].mxu0  ;;  %v739_v40 = vadd.f32 %v738_v33, %v737_v31  ;;  %v846_v46 = vmul.f32 %v7995_v35, %v7995_v35  ;;  %v742_v53 = vsel %vm680_vm2, %v7995_v35, 0.0 }
 0x11f   :  { %v740_v47 = vsel %vm680_vm2, %v7997_v38, 0.0  ;;  %v845_v48 = vmul.f32 %v7997_v38, %v7997_v38 }
 0x120   :  { %v741_v50 = vadd.f32 %v740_v47, %v739_v40  ;;  %v937_v52 = vadd.f32 %v936_v44, %v935_v36  ;;  %v940_v1 = vsel %vm680_vm2, %v846_v46, 0.0 }
 0x121   :  { %v938_v54 = vsel %vm680_vm2, %v845_v48, 0.0  ;;  %v8009_v56 = vpop.f32.mrb[32].mxu0 }
 0x122   :  { %v939_v58 = vadd.f32 %v938_v54, %v937_v52  ;;  %v8011_v60 = vpop.f32.mrb[33].mxu0  ;;  %v743_v0 = vadd.f32 %v742_v53, %v741_v50  ;;  %v848_v2 = vmul.f32 %v8009_v56, %v8009_v56  ;;  %v746_v12 = vsel %vm680_vm2, %v8009_v56, 0.0 }
 0x123   :  { %v744_v3 = vsel %vm680_vm2, %v8011_v60, 0.0  ;;  %v847_v4 = vmul.f32 %v8011_v60, %v8011_v60 }
 0x124   :  { %v745_v6 = vadd.f32 %v744_v3, %v743_v0  ;;  %v941_v9 = vadd.f32 %v940_v1, %v939_v58  ;;  %v944_v24 = vsel %vm680_vm2, %v848_v2, 0.0 }
 0x125   :  { %v942_v14 = vsel %vm680_vm2, %v847_v4, 0.0  ;;  %v8023_v17 = vpop.f32.mrb[34].mxu0 }
 0x126   :  { %v943_v20 = vadd.f32 %v942_v14, %v941_v9  ;;  %v8025_v21 = vpop.f32.mrb[35].mxu0  ;;  %v747_v22 = vadd.f32 %v746_v12, %v745_v6  ;;  %v850_v30 = vmul.f32 %v8023_v17, %v8023_v17  ;;  %v750_v36 = vsel %vm680_vm2, %v8023_v17, 0.0 }
 0x127   :  { %v748_v31 = vsel %vm680_vm2, %v8025_v21, 0.0  ;;  %v849_v32 = vmul.f32 %v8025_v21, %v8025_v21 }
 0x128   :  { %v749_v33 = vadd.f32 %v748_v31, %v747_v22  ;;  %v945_v34 = vadd.f32 %v944_v24, %v943_v20  ;;  %v948_v50 = vsel %vm680_vm2, %v850_v30, 0.0 }
 0x129   :  { %v946_v40 = vsel %vm680_vm2, %v849_v32, 0.0  ;;  %v8037_v44 = vpop.f32.mrb[36].mxu0 }
 0x12a   :  { %v947_v46 = vadd.f32 %v946_v40, %v945_v34  ;;  %v8039_v47 = vpop.f32.mrb[37].mxu0  ;;  %v751_v48 = vadd.f32 %v750_v36, %v749_v33  ;;  %v852_v52 = vmul.f32 %v8037_v44, %v8037_v44  ;;  %v754_v1 = vsel %vm680_vm2, %v8037_v44, 0.0 }
 0x12b   :  { %v752_v53 = vsel %vm680_vm2, %v8039_v47, 0.0  ;;  %v851_v54 = vmul.f32 %v8039_v47, %v8039_v47 }
 0x12c   :  { %v753_v58 = vadd.f32 %v752_v53, %v751_v48  ;;  %v949_v0 = vadd.f32 %v948_v50, %v947_v46  ;;  %v952_v12 = vsel %vm680_vm2, %v852_v52, 0.0 }
 0x12d   :  { %v950_v2 = vsel %vm680_vm2, %v851_v54, 0.0  ;;  %v8051_v3 = vpop.f32.mrb[38].mxu0 }
 0x12e   :  { %10056 = vst [vmem:[#allocation3_spill] sm:$0xff] %v8051_v3  ;;  %v951_v4 = vadd.f32 %v950_v2, %v949_v0  ;;  %v8053_v6 = vpop.f32.mrb[39].mxu0  ;;  %v755_v9 = vadd.f32 %v754_v1, %v753_v58  ;;  %v854_v14 = vmul.f32 %v8051_v3, %v8051_v3  ;;  %v758_v31 = vsel %vm680_vm2, %v8051_v3, 0.0 }
 0x12f   :  { %v756_v20 = vsel %vm680_vm2, %v8053_v6, 0.0  ;;  %v853_v22 = vmul.f32 %v8053_v6, %v8053_v6 }
 0x130   :  { %v757_v24 = vadd.f32 %v756_v20, %v755_v9  ;;  %v953_v30 = vadd.f32 %v952_v12, %v951_v4  ;;  %v956_v46 = vsel %vm680_vm2, %v854_v14, 0.0 }
 0x131   :  { %v954_v32 = vsel %vm680_vm2, %v853_v22, 0.0  ;;  %v8065_v33 = vpop.f32.mrb[40].mxu0 }
 0x132   :  { %10057 = vst [vmem:[#allocation4_spill] sm:$0xff] %v8065_v33  ;;  %v955_v34 = vadd.f32 %v954_v32, %v953_v30  ;;  %v8067_v36 = vpop.f32.mrb[41].mxu0  ;;  %v759_v40 = vadd.f32 %v758_v31, %v757_v24  ;;  %v856_v48 = vmul.f32 %v8065_v33, %v8065_v33  ;;  %v762_v58 = vsel %vm680_vm2, %v8065_v33, 0.0 }
 0x133   :  { %10058 = vst [vmem:[#allocation5_spill] sm:$0xff] %v8067_v36  ;;  %v760_v50 = vsel %vm680_vm2, %v8067_v36, 0.0  ;;  %v855_v52 = vmul.f32 %v8067_v36, %v8067_v36 }
 0x134   :  { %v761_v53 = vadd.f32 %v760_v50, %v759_v40  ;;  %v957_v54 = vadd.f32 %v956_v46, %v955_v34  ;;  %v960_v12 = vsel %vm680_vm2, %v856_v48, 0.0  ;;  %v7466_v40 = vmov 0.0  }
 0x135   :  { %v958_v0 = vsel %vm680_vm2, %v855_v52, 0.0  ;;  %v8079_v1 = vpop.f32.mrb[42].mxu0  ;;  %1226 = vst.msk [vmem:[#allocation2] sm:$0xff] %vm680_vm2, %v7466_v40  ;;  %1227 = vst.msk [vmem:[#allocation2 + $0x8] sm:$0xff] %vm680_vm2, %v7466_v40 }
 0x136   :  { %10059 = vst [vmem:[#allocation6_spill] sm:$0xff] %v8079_v1  ;;  %v959_v2 = vadd.f32 %v958_v0, %v957_v54  ;;  %v8081_v4 = vpop.f32.mrb[43].mxu0  ;;  %v763_v9 = vadd.f32 %v762_v58, %v761_v53  ;;  %v858_v14 = vmul.f32 %v8079_v1, %v8079_v1  ;;  %v766_v31 = vsel %vm680_vm2, %v8079_v1, 0.0  ;;  %1230 = vst.msk [vmem:[#allocation2 + $0x1b0] sm:$0xff] %vm680_vm2, %v7466_v40 }
 0x137   :  { %10060 = vst [vmem:[#allocation7_spill] sm:$0xff] %v8081_v4  ;;  %v764_v20 = vsel %vm680_vm2, %v8081_v4, 0.0  ;;  %v857_v22 = vmul.f32 %v8081_v4, %v8081_v4  ;;  %1231 = vst.msk [vmem:[#allocation2 + $0x1b8] sm:$0xff] %vm680_vm2, %v7466_v40 }
 0x138   :  { %v765_v24 = vadd.f32 %v764_v20, %v763_v9  ;;  %v961_v30 = vadd.f32 %v960_v12, %v959_v2  ;;  %1234 = vst.msk [vmem:[#allocation2 + $0x198] sm:$0xff] %vm680_vm2, %v7466_v40  ;;  %1235 = vst.msk [vmem:[#allocation2 + $0x1a0] sm:$0xff] %vm680_vm2, %v7466_v40  ;;  %v964_v53 = vsel %vm680_vm2, %v858_v14, 0.0 }
 0x139   :  { %v962_v32 = vsel %vm680_vm2, %v857_v22, 0.0  ;;  %v8093_v34 = vpop.f32.mrb[44].mxu0  ;;  %1237 = vst.msk [vmem:[#allocation2 + $0x348] sm:$0xff] %vm680_vm2, %v7466_v40  ;;  %1238 = vst.msk [vmem:[#allocation2 + $0x350] sm:$0xff] %vm680_vm2, %v7466_v40 }
 0x13a   :  { %10061 = vst [vmem:[#allocation8_spill] sm:$0xff] %v8093_v34  ;;  %v963_v46 = vadd.f32 %v962_v32, %v961_v30  ;;  %v860_v48 = vmul.f32 %v8093_v34, %v8093_v34  ;;  %v8113_v50 = vpop.f32.mrb[45].mxu0  ;;  %v767_v52 = vadd.f32 %v766_v31, %v765_v24  ;;  %1229 = vst.msk [vmem:[#allocation2 + $0x10] sm:$0x3] %vm1228_vm3, %v7466_v40  ;;  %v770_v9 = vsel %vm680_vm2, %v8093_v34, 0.0 }
 0x13b   :  { %10062 = vst [vmem:[#allocation9_spill] sm:$0xff] %v8113_v50  ;;  %1232 = vst.msk [vmem:[#allocation2 + $0x1c0] sm:$0x3] %vm1228_vm3, %v7466_v40  ;;  %v768_v54 = vsel %vm680_vm2, %v8113_v50, 0.0  ;;  %v859_v58 = vmul.f32 %v8113_v50, %v8113_v50 }
 0x13c   :  { %1236 = vst.msk [vmem:[#allocation2 + $0x1a8] sm:$0x3] %vm1228_vm3, %v7466_v40  ;;  %1239 = vst.msk [vmem:[#allocation2 + $0x358] sm:$0x3] %vm1228_vm3, %v7466_v40  ;;  %v769_v0 = vadd.f32 %v768_v54, %v767_v52  ;;  %v965_v2 = vadd.f32 %v964_v53, %v963_v46  ;;  %v968_v22 = vsel %vm680_vm2, %v860_v48, 0.0 }
 0x13d   :  { %v966_v12 = vsel %vm680_vm2, %v859_v58, 0.0  ;;  %v8127_v20 = vpop.f32.mrb[46].mxu0  ;;  %1249 = vst.msk [vmem:[#allocation2 + $0xc0] sm:$0x1] %vm1241_vm4, %v7466_v40  ;;  %1242 = vst.msk [vmem:[#allocation2 + $0x18] sm:$0x1] %vm1241_vm4, %v7466_v40 }
 0x13e   :  { %10063 = vst [vmem:[#allocation10_spill] sm:$0xff] %v8127_v20  ;;  %v967_v24 = vadd.f32 %v966_v12, %v965_v2  ;;  %v8130_v30 = vpop.f32.mrb[47].mxu0  ;;  %v771_v14 = vadd.f32 %v770_v9, %v769_v0  ;;  %v8134_v31 = vmul.f32 %v8127_v20, %v8127_v20  ;;  %1243 = vst.msk [vmem:[#allocation2 + $0x30] sm:$0x1] %vm1241_vm4, %v7466_v40  ;;  %v774_v48 = vsel %vm680_vm2, %v8127_v20, 0.0 }
 0x13f   :  { %10064 = vst [vmem:[#allocation11_spill] sm:$0xff] %v8130_v30  ;;  %v772_v32 = vsel %vm680_vm2, %v8130_v30, 0.0  ;;  %v8140_v46 = vmul.f32 %v8130_v30, %v8130_v30  ;;  %1244 = vst.msk [vmem:[#allocation2 + $0x48] sm:$0x1] %vm1241_vm4, %v7466_v40 }
 0x140   :  { %v8142_v52 = vadd.f32 %v772_v32, %v771_v14  ;;  %v8144_v53 = vadd.f32 %v968_v22, %v967_v24  ;;  %1245 = vst.msk [vmem:[#allocation2 + $0x60] sm:$0x1] %vm1241_vm4, %v7466_v40  ;;  %1246 = vst.msk [vmem:[#allocation2 + $0x78] sm:$0x1] %vm1241_vm4, %v7466_v40  ;;  %v972_v12 = vsel %vm680_vm2, %v8134_v31, 0.0 }
 0x141   :  { %1247 = vst.msk [vmem:[#allocation2 + $0x90] sm:$0x1] %vm1241_vm4, %v7466_v40  ;;  %1248 = vst.msk [vmem:[#allocation2 + $0xa8] sm:$0x1] %vm1241_vm4, %v7466_v40  ;;  %v970_v54 = vsel %vm680_vm2, %v8140_v46, 0.0  ;;  %v8278_v58 = vpop.f32.mrb[48].mxu0 }
 0x142   :  { %1250 = vst.msk [vmem:[#allocation2 + $0xd8] sm:$0x1] %vm1241_vm4, %v7466_v40  ;;  %1251 = vst.msk [vmem:[#allocation2 + $0xf0] sm:$0x1] %vm1241_vm4, %v7466_v40  ;;  %v971_v0 = vadd.f32 %v970_v54, %v8144_v53  ;;  %v8281_v2 = vpop.f32.mrb[49].mxu0  ;;  %v775_v9 = vadd.f32 %v774_v48, %v8142_v52  ;;  %v778_v46 = vsel %vm680_vm2, %v8278_v58, 0.0 }
 0x143   :  { %1252 = vst.msk [vmem:[#allocation2 + $0x108] sm:$0x1] %vm1241_vm4, %v7466_v40  ;;  %1253 = vst.msk [vmem:[#allocation2 + $0x120] sm:$0x1] %vm1241_vm4, %v7466_v40  ;;  %v776_v22 = vsel %vm680_vm2, %v8281_v2, 0.0  ;;  %v863_v24 = vmul.f32 %v8281_v2, %v8281_v2 }
 0x144   :  { %1254 = vst.msk [vmem:[#allocation2 + $0x138] sm:$0x1] %vm1241_vm4, %v7466_v40  ;;  %1255 = vst.msk [vmem:[#allocation2 + $0x150] sm:$0x1] %vm1241_vm4, %v7466_v40  ;;  %v777_v14 = vadd.f32 %v776_v22, %v775_v9  ;;  %v973_v32 = vadd.f32 %v972_v12, %v971_v0 }
 0x145   :  { %1256 = vst.msk [vmem:[#allocation2 + $0x168] sm:$0x1] %vm1241_vm4, %v7466_v40  ;;  %1257 = vst.msk [vmem:[#allocation2 + $0x180] sm:$0x1] %vm1241_vm4, %v7466_v40  ;;  %v974_v53 = vsel %vm680_vm2, %v863_v24, 0.0  ;;  %v8295_v52 = vpop.f32.mrb[50].mxu0 }
 0x146   :  { %1258 = vst.msk [vmem:[#allocation2 + $0x1c8] sm:$0x1] %vm1241_vm4, %v7466_v40  ;;  %1259 = vst.msk [vmem:[#allocation2 + $0x1e0] sm:$0x1] %vm1241_vm4, %v7466_v40  ;;  %v975_v48 = vadd.f32 %v974_v53, %v973_v32  ;;  %v8297_v31 = vpop.f32.mrb[51].mxu0  ;;  %v779_v54 = vadd.f32 %v778_v46, %v777_v14  ;;  %v866_v30 = vmul.f32 %v8295_v52, %v8295_v52  ;;  %v782_v24 = vsel %vm680_vm2, %v8295_v52, 0.0 }
 0x147   :  { %1260 = vst.msk [vmem:[#allocation2 + $0x1f8] sm:$0x1] %vm1241_vm4, %v7466_v40  ;;  %1261 = vst.msk [vmem:[#allocation2 + $0x210] sm:$0x1] %vm1241_vm4, %v7466_v40  ;;  %v780_v9 = vsel %vm680_vm2, %v8297_v31, 0.0  ;;  %v865_v0 = vmul.f32 %v8297_v31, %v8297_v31 }
 0x148   :  { %1262 = vst.msk [vmem:[#allocation2 + $0x228] sm:$0x1] %vm1241_vm4, %v7466_v40  ;;  %1263 = vst.msk [vmem:[#allocation2 + $0x240] sm:$0x1] %vm1241_vm4, %v7466_v40  ;;  %v781_v12 = vadd.f32 %v780_v9, %v779_v54 }
 0x149   :  { %1264 = vst.msk [vmem:[#allocation2 + $0x258] sm:$0x1] %vm1241_vm4, %v7466_v40  ;;  %1265 = vst.msk [vmem:[#allocation2 + $0x270] sm:$0x1] %vm1241_vm4, %v7466_v40  ;;  %v978_v32 = vsel %vm680_vm2, %v865_v0, 0.0  ;;  %v8309_v53 = vpop.f32.mrb[52].mxu0 }
 0x14a   :  { %1266 = vst.msk [vmem:[#allocation2 + $0x288] sm:$0x1] %vm1241_vm4, %v7466_v40  ;;  %1267 = vst.msk [vmem:[#allocation2 + $0x2a0] sm:$0x1] %vm1241_vm4, %v7466_v40  ;;  %v783_v46 = vadd.f32 %v782_v24, %v781_v12  ;;  %v786_v0 = vsel %vm680_vm2, %v8309_v53, 0.0 }
 0x14b   :  { %1268 = vst.msk [vmem:[#allocation2 + $0x2b8] sm:$0x1] %vm1241_vm4, %v7466_v40  ;;  %1269 = vst.msk [vmem:[#allocation2 + $0x2d0] sm:$0x1] %vm1241_vm4, %v7466_v40 }
 0x14c   :  { %1270 = vst.msk [vmem:[#allocation2 + $0x2e8] sm:$0x1] %vm1241_vm4, %v7466_v40  ;;  %1271 = vst.msk [vmem:[#allocation2 + $0x300] sm:$0x1] %vm1241_vm4, %v7466_v40 }
 0x14d   :  { %1272 = vst.msk [vmem:[#allocation2 + $0x318] sm:$0x1] %vm1241_vm4, %v7466_v40  ;;  %1273 = vst.msk [vmem:[#allocation2 + $0x330] sm:$0x1] %vm1241_vm4, %v7466_v40 }
 0x14e   :  { %1274 = vst.msk [vmem:[#allocation2 + $0x29] sm:$0x1] %vm1241_vm4, %v7466_v40  ;;  %1275 = vst.msk [vmem:[#allocation2 + $0x41] sm:$0x1] %vm1241_vm4, %v7466_v40 }
 0x14f   :  { %1276 = vst.msk [vmem:[#allocation2 + $0x59] sm:$0x1] %vm1241_vm4, %v7466_v40  ;;  %1277 = vst.msk [vmem:[#allocation2 + $0x71] sm:$0x1] %vm1241_vm4, %v7466_v40 }
 0x150   :  { %1278 = vst.msk [vmem:[#allocation2 + $0x89] sm:$0x1] %vm1241_vm4, %v7466_v40  ;;  %1279 = vst.msk [vmem:[#allocation2 + $0xa1] sm:$0x1] %vm1241_vm4, %v7466_v40 }
 0x151   :  { %1280 = vst.msk [vmem:[#allocation2 + $0xb9] sm:$0x1] %vm1241_vm4, %v7466_v40  ;;  %1281 = vst.msk [vmem:[#allocation2 + $0xd1] sm:$0x1] %vm1241_vm4, %v7466_v40 }
 0x152   :  { %1282 = vst.msk [vmem:[#allocation2 + $0xe9] sm:$0x1] %vm1241_vm4, %v7466_v40  ;;  %1283 = vst.msk [vmem:[#allocation2 + $0x101] sm:$0x1] %vm1241_vm4, %v7466_v40 }
 0x153   :  { %1284 = vst.msk [vmem:[#allocation2 + $0x119] sm:$0x1] %vm1241_vm4, %v7466_v40  ;;  %1285 = vst.msk [vmem:[#allocation2 + $0x131] sm:$0x1] %vm1241_vm4, %v7466_v40 }
 0x154   :  { %1286 = vst.msk [vmem:[#allocation2 + $0x149] sm:$0x1] %vm1241_vm4, %v7466_v40  ;;  %1287 = vst.msk [vmem:[#allocation2 + $0x161] sm:$0x1] %vm1241_vm4, %v7466_v40 }
 0x155   :  { %1288 = vst.msk [vmem:[#allocation2 + $0x179] sm:$0x1] %vm1241_vm4, %v7466_v40  ;;  %1289 = vst.msk [vmem:[#allocation2 + $0x191] sm:$0x1] %vm1241_vm4, %v7466_v40 }
 0x156   :  { %1290 = vst.msk [vmem:[#allocation2 + $0x1d9] sm:$0x1] %vm1241_vm4, %v7466_v40  ;;  %1291 = vst.msk [vmem:[#allocation2 + $0x1f1] sm:$0x1] %vm1241_vm4, %v7466_v40 }
 0x157   :  { %1292 = vst.msk [vmem:[#allocation2 + $0x209] sm:$0x1] %vm1241_vm4, %v7466_v40  ;;  %1293 = vst.msk [vmem:[#allocation2 + $0x221] sm:$0x1] %vm1241_vm4, %v7466_v40 }
 0x158   :  { %1294 = vst.msk [vmem:[#allocation2 + $0x239] sm:$0x1] %vm1241_vm4, %v7466_v40  ;;  %1295 = vst.msk [vmem:[#allocation2 + $0x251] sm:$0x1] %vm1241_vm4, %v7466_v40 }
 0x159   :  { %1296 = vst.msk [vmem:[#allocation2 + $0x269] sm:$0x1] %vm1241_vm4, %v7466_v40  ;;  %1297 = vst.msk [vmem:[#allocation2 + $0x281] sm:$0x1] %vm1241_vm4, %v7466_v40 }
 0x15a   :  { %1298 = vst.msk [vmem:[#allocation2 + $0x299] sm:$0x1] %vm1241_vm4, %v7466_v40  ;;  %1299 = vst.msk [vmem:[#allocation2 + $0x2b1] sm:$0x1] %vm1241_vm4, %v7466_v40 }
 0x15b   :  { %1300 = vst.msk [vmem:[#allocation2 + $0x2c9] sm:$0x1] %vm1241_vm4, %v7466_v40  ;;  %1301 = vst.msk [vmem:[#allocation2 + $0x2e1] sm:$0x1] %vm1241_vm4, %v7466_v40 }
 0x15c   :  { %1302 = vst.msk [vmem:[#allocation2 + $0x2f9] sm:$0x1] %vm1241_vm4, %v7466_v40  ;;  %1303 = vst.msk [vmem:[#allocation2 + $0x311] sm:$0x1] %vm1241_vm4, %v7466_v40 }
 0x15d   :  { %1304 = vst.msk [vmem:[#allocation2 + $0x329] sm:$0x1] %vm1241_vm4, %v7466_v40  ;;  %1305 = vst.msk [vmem:[#allocation2 + $0x341] sm:$0x1] %vm1241_vm4, %v7466_v40  ;;  %v864_v40 = vmul.f32 %v8278_v58, %v8278_v58 }
 0x15e   :  { %10065 = vst [vmem:[#allocation12_spill] sm:$0xff] %v8278_v58  ;;  %10066 = vst [vmem:[#allocation13_spill] sm:$0xff] %v8281_v2  ;;  %v980_v58 = vsel %vm680_vm2, %v866_v30, 0.0  ;;  %v868_v2 = vmul.f32 %v8309_v53, %v8309_v53 }
 0x15f   :  { %10067 = vst [vmem:[#allocation14_spill] sm:$0xff] %v8295_v52  ;;  %10068 = vst [vmem:[#allocation15_spill] sm:$0xff] %v8297_v31  ;;  %v976_v20 = vsel %vm680_vm2, %v864_v40, 0.0  ;;  %v8311_v40 = vpop.f32.mrb[53].mxu0 }
 0x160   :  { %v977_v22 = vadd.f32 %v976_v20, %v975_v48  ;;  %10069 = vst [vmem:[#allocation16_spill] sm:$0xff] %v8309_v53  ;;  %10070 = vst [vmem:[#allocation17_spill] sm:$0xff] %v8311_v40  ;;  %v784_v54 = vsel %vm680_vm2, %v8311_v40, 0.0  ;;  %v867_v20 = vmul.f32 %v8311_v40, %v8311_v40  ;;  %v984_v52 = vsel %vm680_vm2, %v868_v2, 0.0 }
 0x161   :  { %v785_v48 = vadd.f32 %v784_v54, %v783_v46 }
 0x162   :  { %v979_v14 = vadd.f32 %v978_v32, %v977_v22  ;;  %v982_v22 = vsel %vm680_vm2, %v867_v20, 0.0  ;;  %v8323_v32 = vpop.f32.mrb[54].mxu0 }
 0x163   :  { %10071 = vst [vmem:[#allocation18_spill] sm:$0xff] %v8323_v32  ;;  %v8325_v30 = vpop.f32.mrb[55].mxu0  ;;  %v787_v24 = vadd.f32 %v786_v0, %v785_v48  ;;  %v870_v31 = vmul.f32 %v8323_v32, %v8323_v32  ;;  %v790_v20 = vsel %vm680_vm2, %v8323_v32, 0.0 }
 0x164   :  { %v981_v9 = vadd.f32 %v980_v58, %v979_v14  ;;  %10072 = vst [vmem:[#allocation19_spill] sm:$0xff] %v8325_v30  ;;  %v788_v46 = vsel %vm680_vm2, %v8325_v30, 0.0  ;;  %v869_v58 = vmul.f32 %v8325_v30, %v8325_v30 }
 0x165   :  { %v789_v14 = vadd.f32 %v788_v46, %v787_v24  ;;  %v988_v53 = vsel %vm680_vm2, %v870_v31, 0.0 }
 0x166   :  { %v983_v12 = vadd.f32 %v982_v22, %v981_v9  ;;  %v986_v9 = vsel %vm680_vm2, %v869_v58, 0.0  ;;  %v8337_v22 = vpop.f32.mrb[56].mxu0 }
 0x167   :  { %10073 = vst [vmem:[#allocation20_spill] sm:$0xff] %v8337_v22  ;;  %v8339_v2 = vpop.f32.mrb[57].mxu0  ;;  %v791_v0 = vadd.f32 %v790_v20, %v789_v14  ;;  %v872_v40 = vmul.f32 %v8337_v22, %v8337_v22  ;;  %v794_v58 = vsel %vm680_vm2, %v8337_v22, 0.0 }
 0x168   :  { %v985_v54 = vadd.f32 %v984_v52, %v983_v12  ;;  %10074 = vst [vmem:[#allocation21_spill] sm:$0xff] %v8339_v2  ;;  %v792_v24 = vsel %vm680_vm2, %v8339_v2, 0.0  ;;  %v871_v52 = vmul.f32 %v8339_v2, %v8339_v2 }
 0x169   :  { %v793_v12 = vadd.f32 %v792_v24, %v791_v0  ;;  %v992_v32 = vsel %vm680_vm2, %v872_v40, 0.0 }
 0x16a   :  { %v987_v48 = vadd.f32 %v986_v9, %v985_v54  ;;  %v990_v54 = vsel %vm680_vm2, %v871_v52, 0.0  ;;  %v8351_v9 = vpop.f32.mrb[58].mxu0 }
 0x16b   :  { %10075 = vst [vmem:[#allocation22_spill] sm:$0xff] %v8351_v9  ;;  %v8353_v31 = vpop.f32.mrb[59].mxu0  ;;  %v795_v20 = vadd.f32 %v794_v58, %v793_v12  ;;  %v874_v30 = vmul.f32 %v8351_v9, %v8351_v9  ;;  %v798_v52 = vsel %vm680_vm2, %v8351_v9, 0.0 }
 0x16c   :  { %v989_v46 = vadd.f32 %v988_v53, %v987_v48  ;;  %10076 = vst [vmem:[#allocation23_spill] sm:$0xff] %v8353_v31  ;;  %v796_v0 = vsel %vm680_vm2, %v8353_v31, 0.0  ;;  %v873_v53 = vmul.f32 %v8353_v31, %v8353_v31 }
 0x16d   :  { %v797_v48 = vadd.f32 %v796_v0, %v795_v20  ;;  %v996_v22 = vsel %vm680_vm2, %v874_v30, 0.0 }
 0x16e   :  { %v991_v14 = vadd.f32 %v990_v54, %v989_v46  ;;  %v994_v46 = vsel %vm680_vm2, %v873_v53, 0.0  ;;  %v8365_v54 = vpop.f32.mrb[60].mxu0 }
 0x16f   :  { %10077 = vst [vmem:[#allocation24_spill] sm:$0xff] %v8365_v54  ;;  %v8367_v40 = vpop.f32.mrb[61].mxu0  ;;  %v799_v58 = vadd.f32 %v798_v52, %v797_v48  ;;  %v876_v2 = vmul.f32 %v8365_v54, %v8365_v54  ;;  %v802_v53 = vsel %vm680_vm2, %v8365_v54, 0.0 }
 0x170   :  { %v993_v24 = vadd.f32 %v992_v32, %v991_v14  ;;  %10078 = vst [vmem:[#allocation25_spill] sm:$0xff] %v8367_v40  ;;  %v800_v20 = vsel %vm680_vm2, %v8367_v40, 0.0  ;;  %v875_v32 = vmul.f32 %v8367_v40, %v8367_v40 }
 0x171   :  { %v801_v14 = vadd.f32 %v800_v20, %v799_v58  ;;  %v1000_v9 = vsel %vm680_vm2, %v876_v2, 0.0 }
 0x172   :  { %v995_v12 = vadd.f32 %v994_v46, %v993_v24  ;;  %v998_v24 = vsel %vm680_vm2, %v875_v32, 0.0  ;;  %v8379_v46 = vpop.f32.mrb[62].mxu0 }
 0x173   :  { %10079 = vst [vmem:[#allocation26_spill] sm:$0xff] %v8379_v46  ;;  %v671_v30 = vpop.f32.mrb[63].mxu0  ;;  %v803_v52 = vadd.f32 %v802_v53, %v801_v14  ;;  %v878_v31 = vmul.f32 %v8379_v46, %v8379_v46 }
 0x174   :  { %v997_v0 = vadd.f32 %v996_v22, %v995_v12  ;;  %v804_v34 = vsel %vm680_vm2, %v671_v30, 0.0  ;;  %v877_v40 = vmul.f32 %v671_v30, %v671_v30  ;;  %v806_v12 = vsel %vm680_vm2, %v8379_v46, 0.0 }
 0x175   :  { %v805_v58 = vadd.f32 %v804_v34, %v803_v52 }
 0x176   :  { %v999_v48 = vadd.f32 %v998_v24, %v997_v0  ;;  %v1002_v20 = vsel %vm680_vm2, %v877_v40, 0.0  ;;  %v1004_v0 = vsel %vm680_vm2, %v878_v31, 0.0  ;;  %v8392_v31 = vld [vmem:[%s10014_s3 + $0x4] sm:$0xf] }
 0x177   :  { %v807_v32 = vadd.f32 %v806_v12, %v805_v58  ;;  %10080 = vst [vmem:[#allocation27_spill] sm:$0xff] %v8392_v31  ;;  %5868 = vmatprep.mubr.msk.f32.mxu0 %vm680_vm2, %v8392_v31  ;;  %v8408_v12 = vld [vmem:[#allocation2 + $0x9] sm:$0xff]  ;;  %v10102_v31 = vld [vmem:[#allocation19_spill] sm:$0xff] }
 0x178   :  { %v1001_v22 = vadd.f32 %v1000_v9, %v999_v48  ;;  %10083 = vst [vmem:[#allocation30_spill] sm:$0xff] %v8408_v12  ;;  %v10106_v12 = vld [vmem:[#allocation21_spill] sm:$0xff] }
 0x179   :  { %v808_v14 = vrot.slane %v807_v32, 4 }
 0x17a   :  { %v1003_v54 = vadd.f32 %v1002_v20, %v1001_v22  ;;  %v8406_v22 = vld [vmem:[#allocation2 + $0x1] sm:$0xff]  ;;  %v1019_v20 = vld [vmem:[%s10016_s5] sm:$0x1] }
 0x17b   :  { %v809_v2 = vadd.f32 %v808_v14, %v807_v32  ;;  %10082 = vst [vmem:[#allocation29_spill] sm:$0xff] %v8406_v22  ;;  %v10098_v14 = vld [vmem:[#allocation17_spill] sm:$0xff]  ;;  %v10104_v22 = vld [vmem:[#allocation18_spill] sm:$0xff] }
 0x17c   :  { %v1005_v53 = vadd.f32 %v1004_v0, %v1003_v54  ;;  %v8397_v54 = vld [vmem:[%s10014_s3 + $0x10] sm:$0xf] }
 0x17d   :  { %v810_v50 = vrot.slane %v809_v2, 2  ;;  %10081 = vst [vmem:[#allocation28_spill] sm:$0xff] %v8397_v54  ;;  %6140 = vmatprep.mubr.msk.f32.mxu1 %vm680_vm2, %v8397_v54  ;;  %v10100_v54 = vld [vmem:[#allocation16_spill] sm:$0xff] }
 0x17e   :  { %v1006_v24 = vrot.slane %v1005_v53, 4 }
 0x17f   :  { %v811_v4 = vadd.f32 %v810_v50, %v809_v2 }
 0x180   :  { %v1007_v1 = vadd.f32 %v1006_v24, %v1005_v53 }
 0x181   :  { %v812_v36 = vrot.slane %v811_v4, 1 }
 0x182   :  { %v1008_v33 = vrot.slane %v1007_v1, 2 }
 0x183   :  { %v813_v9 = vadd.f32 %v812_v36, %v811_v4  ;;  %v1023_v36 = vlaneseq }
 0x184   :  { %v1009_v34 = vadd.f32 %v1008_v33, %v1007_v1  ;;  %v1015_v1 = vld [vmem:[%s10015_s4] sm:$0x1] }
 0x185   :  { %v814_v52 = vmul.f32 0.001953125, %v813_v9 }
 0x186   :  { %v1010_v48 = vrot.slane %v1009_v34, 1 }
 0x187   :  { %v1013_v40 = vmul.f32 %v814_v52, %v814_v52 }
 0x188   :  { %v1011_v46 = vadd.f32 %v1010_v48, %v1009_v34 }
 0x18a   :  { %v1012_v3 = vmul.f32 0.001953125, %v1011_v46 }
 0x18c   :  { %v1014_v58 = vsub.f32 %v1012_v3, %v1013_v40  ;;  %v1024_v3 = vshrl.u32 %v1023_v36, 7  ;;  %v10085_v36 = vld [vmem:[#allocation5_spill] sm:$0xff] }
 0x18e   :  { %v1016_v33 = vadd.f32 1e-05, %v1014_v58  ;;  %v1025_v4 = vsub.s32 0, %v1024_v3  ;;  %v10086_v3 = vld [vmem:[#allocation4_spill] sm:$0xff] }
 0x190   :  { %7462 = vrsqrt.f32 %v1016_v33  ;;  %v10084_v33 = vld [vmem:[#allocation3_spill] sm:$0xff] }
 0x19a   :  { %v7463_v50 = vpop.eup %7462 }
 0x19b   :  { %v1018_v46 = vmul.f32 %v7463_v50, %v1015_v1  ;;  %v10087_v1 = vld [vmem:[#allocation7_spill] sm:$0xff]  ;;  %v10089_v50 = vld [vmem:[#allocation9_spill] sm:$0xff] }
 0x19d   :  { %v1020_v32 = vmul.f32 %v1018_v46, %v814_v52  ;;  %v8413_v0 = vrot.slane %v1018_v46, %v1025_v4 }
 0x19f   :  { %v1021_v53 = vsub.f32 %v1019_v20, %v1020_v32  ;;  %v1090_v2 = vmul.f32 %v8413_v0, %v671_v30  ;;  %v8420_v24 = vmul.f32 %v8413_v0, %v7792_v10  ;;  %v8424_v34 = vmul.f32 %v7786_v7, %v8413_v0  ;;  %v10090_v20 = vld [vmem:[#allocation8_spill] sm:$0xff] }
 0x1a0   :  { %v8428_v9 = vmul.f32 %v8413_v0, %v7802_v18  ;;  %v8432_v48 = vmul.f32 %v7800_v16, %v8413_v0  ;;  %v8436_v52 = vmul.f32 %v8413_v0, %v7815_v28  ;;  %v8440_v10 = vmul.f32 %v7813_v25, %v8413_v0 }
 0x1a1   :  { %v8442_v30 = vrot.slane %v1021_v53, %v1025_v4  ;;  %v8446_v7 = vmul.f32 %v8413_v0, %v7829_v39  ;;  %v8450_v18 = vmul.f32 %v7827_v37, %v8413_v0  ;;  %v8454_v16 = vmul.f32 %v8413_v0, %v7843_v51  ;;  %v10088_v4 = vld [vmem:[#allocation6_spill] sm:$0xff]  ;;  %v10091_v53 = vld [vmem:[#allocation11_spill] sm:$0xff] }
 0x1a2   :  { %v8458_v28 = vmul.f32 %v7841_v49, %v8413_v0  ;;  %v8462_v25 = vmul.f32 %v8413_v0, %v7857_v63  ;;  %v8466_v39 = vmul.f32 %v7855_v61, %v8413_v0  ;;  %v8470_v37 = vmul.f32 %v8413_v0, %v7871_v13 }
 0x1a3   :  { %v1160_v40 = vadd.f32 %v8442_v30, %v1090_v2  ;;  %v8475_v51 = vmul.f32 %v7869_v11, %v8413_v0  ;;  %v8479_v49 = vmul.f32 %v8413_v0, %v7885_v29  ;;  %v8483_v63 = vmul.f32 %v7883_v26, %v8413_v0 }
 0x1a4   :  { %v8487_v61 = vmul.f32 %v8413_v0, %v7899_v43  ;;  %v8491_v13 = vmul.f32 %v7897_v41, %v8413_v0  ;;  %v8495_v11 = vmul.f32 %v8413_v0, %v7913_v57  ;;  %v8499_v29 = vmul.f32 %v7911_v55, %v8413_v0 }
 0x1a5   :  { %v1224_v58 = vmax.f32 %v1160_v40, 0.0  ;;  %v8503_v26 = vmul.f32 %v8413_v0, %v7927_v8  ;;  %v8507_v43 = vmul.f32 %v7925_v5, %v8413_v0  ;;  %v8511_v41 = vmul.f32 %v8413_v0, %v7941_v27  ;;  %v10092_v40 = vld [vmem:[#allocation10_spill] sm:$0xff] }
 0x1a6   :  { %v8515_v57 = vmul.f32 %v7939_v23, %v8413_v0  ;;  %v8519_v55 = vmul.f32 %v8413_v0, %v7955_v45  ;;  %v8523_v8 = vmul.f32 %v7953_v42, %v8413_v0  ;;  %v8527_v5 = vmul.f32 %v8413_v0, %v7969_v62 }
 0x1a7   :  { %1368 = vst.msk [vmem:[#allocation2 + $0x331] sm:$0xff] %vm680_vm2, %v1224_v58  ;;  %v8532_v27 = vmul.f32 %v7967_v59, %v8413_v0  ;;  %v8536_v23 = vmul.f32 %v8413_v0, %v7983_v19  ;;  %v8540_v45 = vmul.f32 %v7981_v15, %v8413_v0  ;;  %v8544_v42 = vmul.f32 %v8413_v0, %v7997_v38 }
 0x1a8   :  { %v8548_v62 = vmul.f32 %v7995_v35, %v8413_v0  ;;  %v8552_v59 = vmul.f32 %v8413_v0, %v8011_v60  ;;  %v8556_v19 = vmul.f32 %v8009_v56, %v8413_v0  ;;  %v8560_v15 = vmul.f32 %v8413_v0, %v8025_v21 }
 0x1a9   :  { %v8564_v38 = vmul.f32 %v8023_v17, %v8413_v0  ;;  %v8568_v35 = vmul.f32 %v8413_v0, %v8039_v47  ;;  %v8572_v60 = vmul.f32 %v8037_v44, %v8413_v0  ;;  %v8576_v56 = vmul.f32 %v8413_v0, %v8053_v6 }
 0x1aa   :  { %v8580_v21 = vmul.f32 %v10084_v33, %v8413_v0  ;;  %v8584_v17 = vmul.f32 %v8413_v0, %v10085_v36  ;;  %v8588_v47 = vmul.f32 %v10086_v3, %v8413_v0  ;;  %v8592_v44 = vmul.f32 %v8413_v0, %v10087_v1  ;;  %v10093_v33 = vld [vmem:[#allocation13_spill] sm:$0xff]  ;;  %v10094_v3 = vld [vmem:[#allocation12_spill] sm:$0xff] }
 0x1ab   :  { %v8596_v6 = vmul.f32 %v10088_v4, %v8413_v0  ;;  %v8600_v46 = vmul.f32 %v8413_v0, %v10089_v50  ;;  %v8604_v32 = vmul.f32 %v10090_v20, %v8413_v0  ;;  %v8608_v2 = vmul.f32 %v8413_v0, %v10091_v53  ;;  %v10095_v4 = vld [vmem:[#allocation15_spill] sm:$0xff]  ;;  %v10096_v20 = vld [vmem:[#allocation14_spill] sm:$0xff] }
 0x1ac   :  { %v8612_v58 = vmul.f32 %v10092_v40, %v8413_v0  ;;  %v8616_v36 = vmul.f32 %v8413_v0, %v10093_v33  ;;  %v8620_v1 = vmul.f32 %v10094_v3, %v8413_v0  ;;  %v8624_v50 = vmul.f32 %v8413_v0, %v10095_v4 }
 0x1ad   :  { %v8628_v53 = vmul.f32 %v10096_v20, %v8413_v0  ;;  %v8632_v40 = vmul.f32 %v8413_v0, %v10098_v14  ;;  %v8636_v33 = vmul.f32 %v10100_v54, %v8413_v0  ;;  %v8640_v3 = vmul.f32 %v8413_v0, %v10102_v31 }
 0x1ae   :  { %v8644_v4 = vmul.f32 %v10104_v22, %v8413_v0  ;;  %v8648_v20 = vmul.f32 %v8413_v0, %v10106_v12 }
 0x1af   :  { %10097 = vst [vmem:[#allocation3_spill] sm:$0xff] %v8628_v53  ;;  %10099 = vst [vmem:[#allocation5_spill] sm:$0xff] %v8632_v40  ;;  %v10108_v53 = vld [vmem:[#allocation20_spill] sm:$0xff]  ;;  %v10109_v40 = vld [vmem:[#allocation23_spill] sm:$0xff] }
 0x1b0   :  { %10101 = vst [vmem:[#allocation4_spill] sm:$0xff] %v8636_v33  ;;  %10103 = vst [vmem:[#allocation7_spill] sm:$0xff] %v8640_v3  ;;  %v8652_v14 = vmul.f32 %v10108_v53, %v8413_v0  ;;  %v8656_v54 = vmul.f32 %v8413_v0, %v10109_v40  ;;  %v10110_v33 = vld [vmem:[#allocation22_spill] sm:$0xff]  ;;  %v10111_v3 = vld [vmem:[#allocation25_spill] sm:$0xff]  ;;  %v8676_v40 = vadd.f32 %v8442_v30, %v8420_v24 }
 0x1b1   :  { %10105 = vst [vmem:[#allocation6_spill] sm:$0xff] %v8644_v4  ;;  %10107 = vst [vmem:[#allocation9_spill] sm:$0xff] %v8648_v20  ;;  %v8660_v31 = vmul.f32 %v10110_v33, %v8413_v0  ;;  %v8664_v22 = vmul.f32 %v8413_v0, %v10111_v3  ;;  %v10112_v4 = vld [vmem:[#allocation24_spill] sm:$0xff]  ;;  %v10113_v20 = vld [vmem:[#allocation26_spill] sm:$0xff]  ;;  %v8680_v33 = vadd.f32 %v8442_v30, %v8424_v34 }
 0x1b2   :  { %v8668_v12 = vmul.f32 %v10112_v4, %v8413_v0  ;;  %v8672_v53 = vmul.f32 %v10113_v20, %v8413_v0  ;;  %v8684_v3 = vadd.f32 %v8442_v30, %v8428_v9  ;;  %v8688_v4 = vadd.f32 %v8442_v30, %v8432_v48 }
 0x1b3   :  { %v8692_v0 = vadd.f32 %v8442_v30, %v8436_v52  ;;  %v8696_v24 = vadd.f32 %v8442_v30, %v8440_v10  ;;  %v8700_v34 = vadd.f32 %v8442_v30, %v8446_v7  ;;  %v8704_v9 = vadd.f32 %v8442_v30, %v8450_v18 }
 0x1b4   :  { %v8708_v48 = vadd.f32 %v8442_v30, %v8454_v16  ;;  %v8712_v52 = vadd.f32 %v8442_v30, %v8458_v28  ;;  %v8716_v10 = vadd.f32 %v8442_v30, %v8462_v25  ;;  %v8720_v7 = vadd.f32 %v8442_v30, %v8466_v39 }
 0x1b5   :  { %v8724_v18 = vadd.f32 %v8442_v30, %v8470_v37  ;;  %v8728_v16 = vadd.f32 %v8442_v30, %v8475_v51  ;;  %v8732_v28 = vadd.f32 %v8442_v30, %v8479_v49  ;;  %v8736_v25 = vadd.f32 %v8442_v30, %v8483_v63 }
 0x1b6   :  { %v8740_v39 = vadd.f32 %v8442_v30, %v8487_v61  ;;  %v8744_v37 = vadd.f32 %v8442_v30, %v8491_v13  ;;  %v8748_v51 = vadd.f32 %v8442_v30, %v8495_v11  ;;  %v8752_v49 = vadd.f32 %v8442_v30, %v8499_v29  ;;  %v10119_v20 = vld [vmem:[#allocation3_spill] sm:$0xff] }
 0x1b7   :  { %v8756_v63 = vadd.f32 %v8442_v30, %v8503_v26  ;;  %v8760_v61 = vadd.f32 %v8442_v30, %v8507_v43  ;;  %v8764_v13 = vadd.f32 %v8442_v30, %v8511_v41  ;;  %v8768_v11 = vadd.f32 %v8442_v30, %v8515_v57 }
 0x1b8   :  { %v8772_v29 = vadd.f32 %v8442_v30, %v8519_v55  ;;  %v8776_v26 = vadd.f32 %v8442_v30, %v8523_v8  ;;  %v8780_v43 = vadd.f32 %v8442_v30, %v8527_v5  ;;  %v8784_v41 = vadd.f32 %v8442_v30, %v8532_v27 }
 0x1b9   :  { %v8788_v57 = vadd.f32 %v8442_v30, %v8536_v23  ;;  %v8792_v55 = vadd.f32 %v8442_v30, %v8540_v45  ;;  %v8796_v8 = vadd.f32 %v8442_v30, %v8544_v42  ;;  %v8800_v5 = vadd.f32 %v8442_v30, %v8548_v62 }
 0x1ba   :  { %v8804_v27 = vadd.f32 %v8442_v30, %v8552_v59  ;;  %v8808_v23 = vadd.f32 %v8442_v30, %v8556_v19  ;;  %v8812_v45 = vadd.f32 %v8442_v30, %v8560_v15  ;;  %v8816_v42 = vadd.f32 %v8442_v30, %v8564_v38 }
 0x1bb   :  { %v8820_v62 = vadd.f32 %v8442_v30, %v8568_v35  ;;  %v8824_v59 = vadd.f32 %v8442_v30, %v8572_v60  ;;  %v8828_v19 = vadd.f32 %v8442_v30, %v8576_v56  ;;  %v8832_v15 = vadd.f32 %v8442_v30, %v8580_v21 }
 0x1bc   :  { %v8836_v38 = vadd.f32 %v8442_v30, %v8584_v17  ;;  %v8840_v35 = vadd.f32 %v8442_v30, %v8588_v47  ;;  %v8844_v60 = vadd.f32 %v8442_v30, %v8592_v44  ;;  %v8848_v56 = vadd.f32 %v8442_v30, %v8596_v6 }
 0x1bd   :  { %v8852_v21 = vadd.f32 %v8442_v30, %v8600_v46  ;;  %v8856_v17 = vadd.f32 %v8442_v30, %v8604_v32  ;;  %v8860_v47 = vadd.f32 %v8442_v30, %v8608_v2  ;;  %v8864_v44 = vadd.f32 %v8442_v30, %v8612_v58 }
 0x1be   :  { %v8868_v6 = vadd.f32 %v8442_v30, %v8616_v36  ;;  %v8872_v46 = vadd.f32 %v8442_v30, %v8620_v1  ;;  %v8876_v32 = vadd.f32 %v8442_v30, %v8624_v50  ;;  %v8880_v2 = vadd.f32 %v8442_v30, %v10119_v20 }
 0x1bf   :  { %10114 = vst [vmem:[#allocation8_spill] sm:$0xff] %v8860_v47  ;;  %10115 = vst [vmem:[#allocation11_spill] sm:$0xff] %v8864_v44  ;;  %v10120_v47 = vld [vmem:[#allocation5_spill] sm:$0xff]  ;;  %v10121_v44 = vld [vmem:[#allocation4_spill] sm:$0xff] }
 0x1c0   :  { %10116 = vst [vmem:[#allocation10_spill] sm:$0xff] %v8868_v6  ;;  %10117 = vst [vmem:[#allocation13_spill] sm:$0xff] %v8872_v46  ;;  %v8884_v58 = vadd.f32 %v8442_v30, %v10120_v47  ;;  %v8888_v36 = vadd.f32 %v8442_v30, %v10121_v44  ;;  %v10122_v6 = vld [vmem:[#allocation7_spill] sm:$0xff]  ;;  %v10123_v46 = vld [vmem:[#allocation6_spill] sm:$0xff]  ;;  %v8904_v47 = vadd.f32 %v8442_v30, %v8652_v14 }
 0x1c1   :  { %10118 = vst [vmem:[#allocation12_spill] sm:$0xff] %v8876_v32  ;;  %v8892_v1 = vadd.f32 %v8442_v30, %v10122_v6  ;;  %v8896_v50 = vadd.f32 %v8442_v30, %v10123_v46  ;;  %v10124_v32 = vld [vmem:[#allocation9_spill] sm:$0xff]  ;;  %v8908_v44 = vadd.f32 %v8442_v30, %v8656_v54  ;;  %v8912_v6 = vadd.f32 %v8442_v30, %v8660_v31 }
 0x1c2   :  { %v8900_v20 = vadd.f32 %v8442_v30, %v10124_v32  ;;  %10125 = vst [vmem:[#allocation15_spill] sm:$0xff] %v8904_v47  ;;  %v8916_v46 = vadd.f32 %v8442_v30, %v8664_v22  ;;  %v8920_v32 = vadd.f32 %v8442_v30, %v8668_v12  ;;  %v8924_v14 = vadd.f32 %v8442_v30, %v8672_v53 }
 0x1c3   :  { %10126 = vst [vmem:[#allocation14_spill] sm:$0xff] %v8908_v44  ;;  %10127 = vst [vmem:[#allocation17_spill] sm:$0xff] %v8912_v6  ;;  %v1162_v47 = vmax.f32 %v8676_v40, 0.0  ;;  %v1163_v54 = vmax.f32 %v8680_v33, 0.0  ;;  %v1164_v44 = vmax.f32 %v8684_v3, 0.0  ;;  %v1165_v31 = vmax.f32 %v8688_v4, 0.0 }
 0x1c4   :  { %10128 = vst [vmem:[#allocation16_spill] sm:$0xff] %v8916_v46  ;;  %10129 = vst [vmem:[#allocation19_spill] sm:$0xff] %v8920_v32  ;;  %v1166_v6 = vmax.f32 %v8692_v0, 0.0  ;;  %v1167_v22 = vmax.f32 %v8696_v24, 0.0  ;;  %v1168_v46 = vmax.f32 %v8700_v34, 0.0  ;;  %v1169_v12 = vmax.f32 %v8704_v9, 0.0 }
 0x1c5   :  { %v1170_v32 = vmax.f32 %v8708_v48, 0.0  ;;  %1306 = vst.msk [vmem:[#allocation2 + $0x19] sm:$0xff] %vm680_vm2, %v1162_v47  ;;  %v1171_v30 = vmax.f32 %v8712_v52, 0.0  ;;  %v1172_v53 = vmax.f32 %v8716_v10, 0.0  ;;  %v1173_v40 = vmax.f32 %v8720_v7, 0.0  ;;  %1307 = vst.msk [vmem:[#allocation2 + $0x21] sm:$0xff] %vm680_vm2, %v1163_v54 }
 0x1c6   :  { %v1174_v33 = vmax.f32 %v8724_v18, 0.0  ;;  %1308 = vst.msk [vmem:[#allocation2 + $0x31] sm:$0xff] %vm680_vm2, %v1164_v44  ;;  %1309 = vst.msk [vmem:[#allocation2 + $0x39] sm:$0xff] %vm680_vm2, %v1165_v31  ;;  %v1175_v3 = vmax.f32 %v8728_v16, 0.0  ;;  %v1176_v4 = vmax.f32 %v8732_v28, 0.0  ;;  %v1177_v0 = vmax.f32 %v8736_v25, 0.0 }
 0x1c7   :  { %1310 = vst.msk [vmem:[#allocation2 + $0x49] sm:$0xff] %vm680_vm2, %v1166_v6  ;;  %v1178_v24 = vmax.f32 %v8740_v39, 0.0  ;;  %1311 = vst.msk [vmem:[#allocation2 + $0x51] sm:$0xff] %vm680_vm2, %v1167_v22  ;;  %v1179_v34 = vmax.f32 %v8744_v37, 0.0  ;;  %v1180_v9 = vmax.f32 %v8748_v51, 0.0  ;;  %v1181_v48 = vmax.f32 %v8752_v49, 0.0 }
 0x1c8   :  { %1312 = vst.msk [vmem:[#allocation2 + $0x61] sm:$0xff] %vm680_vm2, %v1168_v46  ;;  %1313 = vst.msk [vmem:[#allocation2 + $0x69] sm:$0xff] %vm680_vm2, %v1169_v12  ;;  %v1182_v52 = vmax.f32 %v8756_v63, 0.0  ;;  %v1183_v10 = vmax.f32 %v8760_v61, 0.0  ;;  %v1184_v7 = vmax.f32 %v8764_v13, 0.0  ;;  %v1185_v18 = vmax.f32 %v8768_v11, 0.0 }
 0x1c9   :  { %1314 = vst.msk [vmem:[#allocation2 + $0x79] sm:$0xff] %vm680_vm2, %v1170_v32  ;;  %1315 = vst.msk [vmem:[#allocation2 + $0x81] sm:$0xff] %vm680_vm2, %v1171_v30  ;;  %v1186_v16 = vmax.f32 %v8772_v29, 0.0  ;;  %v1187_v28 = vmax.f32 %v8776_v26, 0.0  ;;  %v1188_v25 = vmax.f32 %v8780_v43, 0.0  ;;  %v1189_v39 = vmax.f32 %v8784_v41, 0.0 }
 0x1ca   :  { %1316 = vst.msk [vmem:[#allocation2 + $0x91] sm:$0xff] %vm680_vm2, %v1172_v53  ;;  %1317 = vst.msk [vmem:[#allocation2 + $0x99] sm:$0xff] %vm680_vm2, %v1173_v40  ;;  %v1190_v37 = vmax.f32 %v8788_v57, 0.0  ;;  %v1191_v51 = vmax.f32 %v8792_v55, 0.0  ;;  %v1192_v49 = vmax.f32 %v8796_v8, 0.0  ;;  %v1193_v63 = vmax.f32 %v8800_v5, 0.0 }
 0x1cb   :  { %1318 = vst.msk [vmem:[#allocation2 + $0xa9] sm:$0xff] %vm680_vm2, %v1174_v33  ;;  %1319 = vst.msk [vmem:[#allocation2 + $0xb1] sm:$0xff] %vm680_vm2, %v1175_v3  ;;  %v1194_v61 = vmax.f32 %v8804_v27, 0.0  ;;  %v1195_v13 = vmax.f32 %v8808_v23, 0.0  ;;  %v1196_v11 = vmax.f32 %v8812_v45, 0.0  ;;  %v1197_v29 = vmax.f32 %v8816_v42, 0.0 }
 0x1cc   :  { %1320 = vst.msk [vmem:[#allocation2 + $0xc1] sm:$0xff] %vm680_vm2, %v1176_v4  ;;  %1321 = vst.msk [vmem:[#allocation2 + $0xc9] sm:$0xff] %vm680_vm2, %v1177_v0  ;;  %v1198_v26 = vmax.f32 %v8820_v62, 0.0  ;;  %v1199_v43 = vmax.f32 %v8824_v59, 0.0  ;;  %v1200_v41 = vmax.f32 %v8828_v19, 0.0  ;;  %v1201_v57 = vmax.f32 %v8832_v15, 0.0 }
 0x1cd   :  { %1322 = vst.msk [vmem:[#allocation2 + $0xd9] sm:$0xff] %vm680_vm2, %v1178_v24  ;;  %1323 = vst.msk [vmem:[#allocation2 + $0xe1] sm:$0xff] %vm680_vm2, %v1179_v34  ;;  %v1202_v55 = vmax.f32 %v8836_v38, 0.0  ;;  %v1203_v8 = vmax.f32 %v8840_v35, 0.0  ;;  %v1204_v5 = vmax.f32 %v8844_v60, 0.0  ;;  %v1205_v27 = vmax.f32 %v8848_v56, 0.0 }
 0x1ce   :  { %1324 = vst.msk [vmem:[#allocation2 + $0xf1] sm:$0xff] %vm680_vm2, %v1180_v9  ;;  %1325 = vst.msk [vmem:[#allocation2 + $0xf9] sm:$0xff] %vm680_vm2, %v1181_v48  ;;  %v1206_v23 = vmax.f32 %v8852_v21, 0.0  ;;  %v1207_v45 = vmax.f32 %v8856_v17, 0.0  ;;  %v10130_v42 = vld [vmem:[#allocation8_spill] sm:$0xff]  ;;  %v10131_v59 = vld [vmem:[#allocation11_spill] sm:$0xff] }
 0x1cf   :  { %1326 = vst.msk [vmem:[#allocation2 + $0x109] sm:$0xff] %vm680_vm2, %v1182_v52  ;;  %1327 = vst.msk [vmem:[#allocation2 + $0x111] sm:$0xff] %vm680_vm2, %v1183_v10  ;;  %v1208_v62 = vmax.f32 %v10130_v42, 0.0  ;;  %v1209_v19 = vmax.f32 %v10131_v59, 0.0  ;;  %v10132_v15 = vld [vmem:[#allocation10_spill] sm:$0xff]  ;;  %v2990_v60 = vld [vmem:[#allocation2 + $0x21] sm:$0xff] }
 0x1d0   :  { %1328 = vst.msk [vmem:[#allocation2 + $0x121] sm:$0xff] %vm680_vm2, %v1184_v7  ;;  %1329 = vst.msk [vmem:[#allocation2 + $0x129] sm:$0xff] %vm680_vm2, %v1185_v18  ;;  %v1210_v38 = vmax.f32 %v10132_v15, 0.0  ;;  %v2989_v35 = vld [vmem:[#allocation2 + $0x19] sm:$0xff]  ;;  %v10133_v56 = vld [vmem:[#allocation13_spill] sm:$0xff]  ;;  %v1213_v44 = vmax.f32 %v8880_v2, 0.0 }
 0x1d1   :  { %1330 = vst.msk [vmem:[#allocation2 + $0x139] sm:$0xff] %vm680_vm2, %v1186_v16  ;;  %1331 = vst.msk [vmem:[#allocation2 + $0x141] sm:$0xff] %vm680_vm2, %v1187_v28  ;;  %v1211_v21 = vmax.f32 %v10133_v56, 0.0  ;;  %v10134_v47 = vld [vmem:[#allocation12_spill] sm:$0xff]  ;;  %v1214_v6 = vmax.f32 %v8884_v58, 0.0  ;;  %v1215_v54 = vmax.f32 %v8888_v36, 0.0 }
 0x1d2   :  { %1332 = vst.msk [vmem:[#allocation2 + $0x151] sm:$0xff] %vm680_vm2, %v1188_v25  ;;  %1333 = vst.msk [vmem:[#allocation2 + $0x159] sm:$0xff] %vm680_vm2, %v1189_v39  ;;  %v1212_v17 = vmax.f32 %v10134_v47, 0.0  ;;  %v1216_v31 = vmax.f32 %v8892_v1, 0.0  ;;  %v1217_v22 = vmax.f32 %v8896_v50, 0.0  ;;  %v1218_v2 = vmax.f32 %v8900_v20, 0.0 }
 0x1d3   :  { %1334 = vst.msk [vmem:[#allocation2 + $0x169] sm:$0xff] %vm680_vm2, %v1190_v37  ;;  %1335 = vst.msk [vmem:[#allocation2 + $0x171] sm:$0xff] %vm680_vm2, %v1191_v51  ;;  %v1451_v46 = vld [vmem:[#allocation2 + $0xc1] sm:$0xff]  ;;  %v1452_v32 = vld [vmem:[#allocation2 + $0xc9] sm:$0xff]  ;;  %v1225_v9 = vmax.f32 %v8924_v14, 0.0  ;;  %v6949_v14 = vpack.c.bf16 %v2990_v60, %v2989_v35 }
 0x1d4   :  { %1336 = vst.msk [vmem:[#allocation2 + $0x181] sm:$0xff] %vm680_vm2, %v1192_v49  ;;  %1337 = vst.msk [vmem:[#allocation2 + $0x189] sm:$0xff] %vm680_vm2, %v1193_v63  ;;  %v3005_v58 = vld [vmem:[#allocation2 + $0xd9] sm:$0xff]  ;;  %v3006_v12 = vld [vmem:[#allocation2 + $0xe1] sm:$0xff]  ;;  %v9052_v48 = vpack.c.bf16 %v1452_v32, %v1451_v46 }
 0x1d5   :  { %1338 = vst.msk [vmem:[#allocation2 + $0x1c9] sm:$0xff] %vm680_vm2, %v1194_v61  ;;  %1339 = vst.msk [vmem:[#allocation2 + $0x1d1] sm:$0xff] %vm680_vm2, %v1195_v13  ;;  %v10135_v30 = vld [vmem:[#allocation15_spill] sm:$0xff]  ;;  %v10136_v40 = vld [vmem:[#allocation14_spill] sm:$0xff]  ;;  %v6946_v52 = vpack.c.bf16 %v3006_v12, %v3005_v58 }
 0x1d6   :  { %1340 = vst.msk [vmem:[#allocation2 + $0x1e1] sm:$0xff] %vm680_vm2, %v1196_v11  ;;  %1341 = vst.msk [vmem:[#allocation2 + $0x1e9] sm:$0xff] %vm680_vm2, %v1197_v29  ;;  %v1219_v53 = vmax.f32 %v10135_v30, 0.0  ;;  %v1220_v36 = vmax.f32 %v10136_v40, 0.0  ;;  %v10137_v33 = vld [vmem:[#allocation17_spill] sm:$0xff]  ;;  %v10138_v3 = vld [vmem:[#allocation16_spill] sm:$0xff]  ;;  %6564 = vmatprep.subr.msk.bf16.mxu0 %vm9042_vm5, %v9052_v48 }
 0x1d7   :  { %1342 = vst.msk [vmem:[#allocation2 + $0x1f9] sm:$0xff] %vm680_vm2, %v1198_v26  ;;  %1343 = vst.msk [vmem:[#allocation2 + $0x201] sm:$0xff] %vm680_vm2, %v1199_v43  ;;  %v1221_v1 = vmax.f32 %v10137_v33, 0.0  ;;  %v1222_v50 = vmax.f32 %v10138_v3, 0.0  ;;  %v3007_v4 = vld [vmem:[#allocation2 + $0xf1] sm:$0xff]  ;;  %v3008_v0 = vld [vmem:[#allocation2 + $0xf9] sm:$0xff]  ;;  %6948 = vmatprep.subr.msk.bf16.mxu1 %vm9042_vm5, %v6946_v52 }
 0x1d8   :  { %1344 = vst.msk [vmem:[#allocation2 + $0x211] sm:$0xff] %vm680_vm2, %v1200_v41  ;;  %1345 = vst.msk [vmem:[#allocation2 + $0x219] sm:$0xff] %vm680_vm2, %v1201_v57  ;;  %v10141_v24 = vld [vmem:[#allocation19_spill] sm:$0xff]  ;;  %v6952_v10 = vpack.c.bf16 %v3008_v0, %v3007_v4  ;;  %v10142_v7 = vld [vmem:[#allocation30_spill] sm:$0xff]  ;;  %6951 = vmatpush3.bf16.xpose.msk.msra.mxu1 %vm9042_vm5, %v6949_v14 }
 0x1d9   :  { %1346 = vst.msk [vmem:[#allocation2 + $0x229] sm:$0xff] %vm680_vm2, %v1202_v55  ;;  %1347 = vst.msk [vmem:[#allocation2 + $0x231] sm:$0xff] %vm680_vm2, %v1203_v8  ;;  %v1223_v34 = vmax.f32 %v10141_v24, 0.0  ;;  %v10143_v18 = vld [vmem:[#allocation29_spill] sm:$0xff]  ;;  %v2992_v25 = vld [vmem:[#allocation2 + $0x39] sm:$0xff] }
 0x1da   :  { %1348 = vst.msk [vmem:[#allocation2 + $0x241] sm:$0xff] %vm680_vm2, %v1204_v5  ;;  %1349 = vst.msk [vmem:[#allocation2 + $0x249] sm:$0xff] %vm680_vm2, %v1205_v27  ;;  %v10144_v16 = vpack.c.bf16 %v10142_v7, %v10143_v18  ;;  %6954 = vmatprep.subr.msk.bf16.mxu1 %vm9042_vm5, %v6952_v10  ;;  %v2991_v28 = vld [vmem:[#allocation2 + $0x31] sm:$0xff]  ;;  %v3009_v39 = vld [vmem:[#allocation2 + $0x109] sm:$0xff] }
 0x1db   :  { %1350 = vst.msk [vmem:[#allocation2 + $0x259] sm:$0xff] %vm680_vm2, %v1206_v23  ;;  %1351 = vst.msk [vmem:[#allocation2 + $0x261] sm:$0xff] %vm680_vm2, %v1207_v45  ;;  %v3010_v37 = vld [vmem:[#allocation2 + $0x111] sm:$0xff]  ;;  %v6955_v51 = vpack.c.bf16 %v2992_v25, %v2991_v28  ;;  %v2993_v63 = vld [vmem:[#allocation2 + $0x49] sm:$0xff] }
 0x1dc   :  { %1352 = vst.msk [vmem:[#allocation2 + $0x271] sm:$0xff] %vm680_vm2, %v1208_v62  ;;  %1353 = vst.msk [vmem:[#allocation2 + $0x279] sm:$0xff] %vm680_vm2, %v1209_v19  ;;  %6567 = vmatpush3.bf16.xpose.msk.msra.mxu0 %vm9042_vm5, %v10144_v16  ;;  %v6958_v49 = vpack.c.bf16 %v3010_v37, %v3009_v39  ;;  %v2994_v61 = vld [vmem:[#allocation2 + $0x51] sm:$0xff]  ;;  %v3011_v13 = vld [vmem:[#allocation2 + $0x121] sm:$0xff] }
 0x1dd   :  { %1354 = vst.msk [vmem:[#allocation2 + $0x289] sm:$0xff] %vm680_vm2, %v1210_v38  ;;  %1355 = vst.msk [vmem:[#allocation2 + $0x291] sm:$0xff] %vm680_vm2, %v1211_v21  ;;  %6570 = vmatprep.subr.msk.bf16.mxu0 %vm9042_vm5, %v6946_v52  ;;  %v3012_v11 = vld [vmem:[#allocation2 + $0x129] sm:$0xff]  ;;  %v6961_v29 = vpack.c.bf16 %v2994_v61, %v2993_v63  ;;  %v2995_v43 = vld [vmem:[#allocation2 + $0x61] sm:$0xff] }
 0x1de   :  { %1356 = vst.msk [vmem:[#allocation2 + $0x2a1] sm:$0xff] %vm680_vm2, %v1212_v17  ;;  %1357 = vst.msk [vmem:[#allocation2 + $0x2a9] sm:$0xff] %vm680_vm2, %v1213_v44  ;;  %v6964_v26 = vpack.c.bf16 %v3012_v11, %v3011_v13  ;;  %v2996_v41 = vld [vmem:[#allocation2 + $0x69] sm:$0xff]  ;;  %v3013_v57 = vld [vmem:[#allocation2 + $0x139] sm:$0xff] }
 0x1df   :  { %1358 = vst.msk [vmem:[#allocation2 + $0x2b9] sm:$0xff] %vm680_vm2, %v1214_v6  ;;  %1359 = vst.msk [vmem:[#allocation2 + $0x2c1] sm:$0xff] %vm680_vm2, %v1215_v54  ;;  %v3014_v55 = vld [vmem:[#allocation2 + $0x141] sm:$0xff]  ;;  %v6967_v8 = vpack.c.bf16 %v2996_v41, %v2995_v43  ;;  %v2997_v27 = vld [vmem:[#allocation2 + $0x79] sm:$0xff] }
 0x1e0   :  { %1360 = vst.msk [vmem:[#allocation2 + $0x2d1] sm:$0xff] %vm680_vm2, %v1216_v31  ;;  %1361 = vst.msk [vmem:[#allocation2 + $0x2d9] sm:$0xff] %vm680_vm2, %v1217_v22  ;;  %6957 = vmatpush3.bf16.xpose.msk.msra.mxu1 %vm9042_vm5, %v6955_v51  ;;  %v6970_v5 = vpack.c.bf16 %v3014_v55, %v3013_v57  ;;  %v2998_v23 = vld [vmem:[#allocation2 + $0x81] sm:$0xff]  ;;  %v3015_v45 = vld [vmem:[#allocation2 + $0x151] sm:$0xff] }
 0x1e1   :  { %1362 = vst.msk [vmem:[#allocation2 + $0x2e9] sm:$0xff] %vm680_vm2, %v1218_v2  ;;  %1363 = vst.msk [vmem:[#allocation2 + $0x2f1] sm:$0xff] %vm680_vm2, %v1219_v53  ;;  %6960 = vmatprep.subr.msk.bf16.mxu1 %vm9042_vm5, %v6958_v49  ;;  %v3016_v42 = vld [vmem:[#allocation2 + $0x159] sm:$0xff]  ;;  %v6973_v62 = vpack.c.bf16 %v2998_v23, %v2997_v27  ;;  %v2999_v19 = vld [vmem:[#allocation2 + $0x91] sm:$0xff] }
 0x1e2   :  { %1364 = vst.msk [vmem:[#allocation2 + $0x301] sm:$0xff] %vm680_vm2, %v1220_v36  ;;  %1365 = vst.msk [vmem:[#allocation2 + $0x309] sm:$0xff] %vm680_vm2, %v1221_v1  ;;  %v6976_v59 = vpack.c.bf16 %v3016_v42, %v3015_v45  ;;  %v3000_v15 = vld [vmem:[#allocation2 + $0x99] sm:$0xff]  ;;  %v3017_v38 = vld [vmem:[#allocation2 + $0x169] sm:$0xff] }
 0x1e3   :  { %1366 = vst.msk [vmem:[#allocation2 + $0x319] sm:$0xff] %vm680_vm2, %v1222_v50  ;;  %1367 = vst.msk [vmem:[#allocation2 + $0x321] sm:$0xff] %vm680_vm2, %v1223_v34  ;;  %v3018_v35 = vld [vmem:[#allocation2 + $0x171] sm:$0xff]  ;;  %v6979_v60 = vpack.c.bf16 %v3000_v15, %v2999_v19  ;;  %v3001_v21 = vld [vmem:[#allocation2 + $0xa9] sm:$0xff] }
 0x1e4   :  { %1369 = vst.msk [vmem:[#allocation2 + $0x339] sm:$0xff] %vm680_vm2, %v1225_v9  ;;  %6573 = vmatpush3.bf16.xpose.msk.msra.mxu0 %vm9042_vm5, %v6949_v14  ;;  %v6982_v56 = vpack.c.bf16 %v3018_v35, %v3017_v38  ;;  %v3002_v47 = vld [vmem:[#allocation2 + $0xb1] sm:$0xff]  ;;  %v3019_v17 = vld [vmem:[#allocation2 + $0x181] sm:$0xff]  ;;  %v3020_v44 = vld [vmem:[#allocation2 + $0x189] sm:$0xff] }
 0x1e5   :  { %6576 = vmatprep.subr.msk.bf16.mxu0 %vm9042_vm5, %v6952_v10  ;;  %v6985_v6 = vpack.c.bf16 %v3002_v47, %v3001_v21  ;;  %v6988_v46 = vpack.c.bf16 %v3020_v44, %v3019_v17  ;;  %v1483_v32 = vld [vmem:[#allocation2 + $0x271] sm:$0xff]  ;;  %v1484_v54 = vld [vmem:[#allocation2 + $0x279] sm:$0xff]  ;;  %v3037_v31 = vld [vmem:[#allocation2 + $0x289] sm:$0xff] }
 0x1e6   :  { %v3038_v22 = vld [vmem:[#allocation2 + $0x291] sm:$0xff]  ;;  %v9124_v2 = vpack.c.bf16 %v1484_v54, %v1483_v32  ;;  %v1468_v30 = vld [vmem:[#allocation2 + $0x1b9] sm:$0xff]  ;;  %v3021_v53 = vld [vmem:[#allocation2 + $0x1c9] sm:$0xff] }
 0x1e7   :  { %v6994_v58 = vpack.c.bf16 %v3038_v22, %v3037_v31  ;;  %v1467_v12 = vld [vmem:[#allocation2 + $0x1b1] sm:$0xff]  ;;  %v3039_v33 = vld [vmem:[#allocation2 + $0x2a1] sm:$0xff]  ;;  %v3040_v1 = vld [vmem:[#allocation2 + $0x2a9] sm:$0xff] }
 0x1e8   :  { %6963 = vmatpush3.bf16.xpose.msk.msra.mxu1 %vm9042_vm5, %v6961_v29  ;;  %v3022_v40 = vld [vmem:[#allocation2 + $0x1d1] sm:$0xff]  ;;  %v6613_v36 = vpack.c.bf16 %v1468_v30, %v1467_v12  ;;  %v10145_v50 = vld [vmem:[#allocation27_spill] sm:$0xff]  ;;  %v10146_v4 = vld [vmem:[#allocation28_spill] sm:$0xff]  ;;  %v7000_v0 = vpack.c.bf16 %v3040_v1, %v3039_v33 }
 0x1e9   :  { %6966 = vmatprep.subr.msk.bf16.mxu1 %vm9042_vm5, %v6964_v26  ;;  %v6997_v3 = vpack.c.bf16 %v3022_v40, %v3021_v53  ;;  %v3023_v24 = vld [vmem:[#allocation2 + $0x1e1] sm:$0xff]  ;;  %v3024_v34 = vld [vmem:[#allocation2 + $0x1e9] sm:$0xff]  ;;  %v3041_v9 = vld [vmem:[#allocation2 + $0x2b9] sm:$0xff] }
 0x1ea   :  { %v7003_v52 = vpack.c.bf16 %v3024_v34, %v3023_v24  ;;  %v3025_v10 = vld [vmem:[#allocation2 + $0x1f9] sm:$0xff]  ;;  %v3026_v7 = vld [vmem:[#allocation2 + $0x201] sm:$0xff]  ;;  %v3043_v18 = vld [vmem:[#allocation2 + $0x2d1] sm:$0xff] }
 0x1eb   :  { %v3044_v16 = vld [vmem:[#allocation2 + $0x2d9] sm:$0xff]  ;;  %v7009_v28 = vpack.c.bf16 %v3026_v7, %v3025_v10  ;;  %v3027_v39 = vld [vmem:[#allocation2 + $0x211] sm:$0xff]  ;;  %v3029_v13 = vld [vmem:[#allocation2 + $0x229] sm:$0xff] }
 0x1ec   :  { %6579 = vmatpush3.bf16.xpose.msk.msra.mxu0 %vm9042_vm5, %v6955_v51  ;;  %v7012_v25 = vpack.c.bf16 %v3044_v16, %v3043_v18  ;;  %v3028_v37 = vld [vmem:[#allocation2 + $0x219] sm:$0xff]  ;;  %v3045_v51 = vld [vmem:[#allocation2 + $0x2e9] sm:$0xff]  ;;  %v3030_v11 = vld [vmem:[#allocation2 + $0x231] sm:$0xff] }
 0x1ed   :  { %6582 = vmatprep.subr.msk.bf16.mxu0 %vm9042_vm5, %v6958_v49  ;;  %v3046_v49 = vld [vmem:[#allocation2 + $0x2f1] sm:$0xff]  ;;  %v7015_v63 = vpack.c.bf16 %v3028_v37, %v3027_v39  ;;  %v7021_v43 = vpack.c.bf16 %v3030_v11, %v3029_v13  ;;  %v3031_v57 = vld [vmem:[#allocation2 + $0x241] sm:$0xff]  ;;  %v3032_v55 = vld [vmem:[#allocation2 + $0x249] sm:$0xff] }
 0x1ee   :  { %v7018_v61 = vpack.c.bf16 %v3046_v49, %v3045_v51  ;;  %v7027_v27 = vpack.c.bf16 %v3032_v55, %v3031_v57  ;;  %v3033_v45 = vld [vmem:[#allocation2 + $0x259] sm:$0xff]  ;;  %v3034_v42 = vld [vmem:[#allocation2 + $0x261] sm:$0xff]  ;;  %v9233_v40 = vld [vmem:[%s10014_s3 + $0x14] sm:$0xf] }
 0x1ef   :  { %v7033_v19 = vpack.c.bf16 %v3034_v42, %v3033_v45  ;;  %v1386_v38 = vld [vmem:[#allocation2 + $0xc0] sm:$0xff]  ;;  %v1387_v35 = vld [vmem:[#allocation2 + $0xc8] sm:$0xff]  ;;  %v1388_v32 = vld [vmem:[#allocation2 + $0xd8] sm:$0xff] }
 0x1f0   :  { %6969 = vmatpush3.bf16.xpose.msk.msra.mxu1 %vm9042_vm5, %v6967_v8  ;;  %v9200_v21 = vpack.c.bf16 %v1387_v35, %v1386_v38  ;;  %v1370_v17 = vld [vmem:[#allocation2] sm:$0xff]  ;;  %v1371_v44 = vld [vmem:[#allocation2 + $0x8] sm:$0xff]  ;;  %v3414_v22 = vld [vmem:[#allocation2 + $0xf2] sm:$0xff] }
 0x1f1   :  { %6972 = vmatprep.subr.msk.bf16.mxu1 %vm9042_vm5, %v6970_v5  ;;  %v6661_v54 = vpack.c.bf16 %v1371_v44, %v1370_v17  ;;  %v1389_v31 = vld [vmem:[#allocation2 + $0xe0] sm:$0xff]  ;;  %v3398_v1 = vld [vmem:[#allocation2 + $0x32] sm:$0xff]  ;;  %v3400_v7 = vld [vmem:[#allocation2 + $0x4a] sm:$0xff] }
 0x1f2   :  { %v9228_v53 = vld [vmem:[%s10014_s3] sm:$0xf]  ;;  %v3417_v24 = vld [vmem:[#allocation2 + $0x112] sm:$0xff]  ;;  %v1392_v16 = vld [vmem:[#allocation2 + $0x108] sm:$0xff] }
 0x1f3   :  { %v1373_v33 = vld [vmem:[#allocation2 + $0x20] sm:$0xff]  ;;  %v1375_v10 = vld [vmem:[#allocation2 + $0x38] sm:$0xff]  ;;  %v3419_v39 = vld [vmem:[#allocation2 + $0x12a] sm:$0xff] }
 0x1f4   :  { %6585 = vmatpush3.bf16.xpose.msk.msra.mxu0 %vm9042_vm5, %v6961_v29  ;;  %v3047_v29 = vld [vmem:[#allocation2 + $0x301] sm:$0xff]  ;;  %v3401_v18 = vld [vmem:[#allocation2 + $0x52] sm:$0xff] }
 0x1f5   :  { %6588 = vmatprep.subr.msk.bf16.mxu0 %vm9042_vm5, %v6964_v26  ;;  %v3048_v26 = vld [vmem:[#allocation2 + $0x309] sm:$0xff]  ;;  %v9269_v51 = vpack.c.bf16 %v3401_v18, %v3400_v7  ;;  %v3404_v42 = vld [vmem:[#allocation2 + $0x7a] sm:$0xff] }
 0x1f6   :  { %v7024_v41 = vpack.c.bf16 %v3048_v26, %v3047_v29  ;;  %v1377_v13 = vld [vmem:[#allocation2 + $0x50] sm:$0xff]  ;;  %v3402_v11 = vld [vmem:[#allocation2 + $0x62] sm:$0xff]  ;;  %v3423_v38 = vld [vmem:[#allocation2 + $0x15a] sm:$0xff] }
 0x1f7   :  { %v3403_v29 = vld [vmem:[#allocation2 + $0x6a] sm:$0xff]  ;;  %v1394_v26 = vld [vmem:[#allocation2 + $0x120] sm:$0xff]  ;;  %v1380_v44 = vld [vmem:[#allocation2 + $0x78] sm:$0xff] }
 0x1f8   :  { %6975 = vmatpush3.bf16.xpose.msk.msra.mxu1 %vm9042_vm5, %v6973_v62  ;;  %v3421_v57 = vld [vmem:[#allocation2 + $0x142] sm:$0xff]  ;;  %v3427_v7 = vld [vmem:[#allocation2 + $0x18a] sm:$0xff] }
 0x1f9   :  { %6978 = vmatprep.subr.msk.bf16.mxu1 %vm9042_vm5, %v6976_v59  ;;  %v1379_v45 = vld [vmem:[#allocation2 + $0x68] sm:$0xff] }
 0x1fc   :  { %6591 = vmatpush3.bf16.xpose.msk.msra.mxu0 %vm9042_vm5, %v6967_v8  ;;  %v3049_v8 = vld [vmem:[#allocation2 + $0x319] sm:$0xff] }
 0x1fd   :  { %6594 = vmatprep.subr.msk.bf16.mxu0 %vm9042_vm5, %v6970_v5  ;;  %v3050_v5 = vld [vmem:[#allocation2 + $0x321] sm:$0xff] }
 0x1fe   :  { %v7030_v23 = vpack.c.bf16 %v3050_v5, %v3049_v8  ;;  %v9289_v8 = vpack.c.bf16 %v3403_v29, %v3402_v11  ;;  %v3411_v11 = vld [vmem:[#allocation2 + $0xca] sm:$0xff] }
 0x1ff   :  { %v1418_v29 = vld [vmem:[#allocation2 + $0x270] sm:$0xff] }
 0x200   :  { %6981 = vmatpush3.bf16.xpose.msk.msra.mxu1 %vm9042_vm5, %v6979_v60 }
 0x201   :  { %6984 = vmatprep.subr.msk.bf16.mxu1 %vm9042_vm5, %v6982_v56 }
 0x204   :  { %6597 = vmatpush3.bf16.xpose.msk.msra.mxu0 %vm9042_vm5, %v6973_v62  ;;  %v3051_v62 = vld [vmem:[#allocation2 + $0x331] sm:$0xff] }
 0x205   :  { %6600 = vmatprep.subr.msk.bf16.mxu0 %vm9042_vm5, %v6976_v59  ;;  %v3052_v59 = vld [vmem:[#allocation2 + $0x339] sm:$0xff] }
 0x206   :  { %v7036_v15 = vpack.c.bf16 %v3052_v59, %v3051_v62  ;;  %v3405_v62 = vld [vmem:[#allocation2 + $0x82] sm:$0xff]  ;;  %v1396_v59 = vld [vmem:[#allocation2 + $0x138] sm:$0xff] }
 0x208   :  { %6987 = vmatpush3.bf16.xpose.msk.msra.mxu1 %vm9042_vm5, %v6985_v6 }
 0x209   :  { %6990 = vmatprep.subr.msk.bf16.mxu1 %vm9042_vm5, %v6988_v46  ;;  %v3397_v46 = vld [vmem:[#allocation2 + $0x22] sm:$0xff] }
 0x20c   :  { %6603 = vmatpush3.bf16.xpose.msk.msra.mxu0 %vm9042_vm5, %v6979_v60  ;;  %v3412_v60 = vld [vmem:[#allocation2 + $0xda] sm:$0xff] }
 0x20d   :  { %6606 = vmatprep.subr.msk.bf16.mxu0 %vm9042_vm5, %v6982_v56  ;;  %v3413_v56 = vld [vmem:[#allocation2 + $0xe2] sm:$0xff] }
 0x20e   :  { %v9202_v47 = vpack.c.bf16 %v3413_v56, %v3412_v60  ;;  %v9309_v60 = vpack.c.bf16 %v3405_v62, %v3404_v42  ;;  %v1402_v62 = vld [vmem:[#allocation2 + $0x1b0] sm:$0xff] }
 0x210   :  { %6993 = vmatpush3.bf16.xpose.msk.msra.mxu1 %vm9042_vm5, %v9052_v48  ;;  %v3042_v48 = vld [vmem:[#allocation2 + $0x2c1] sm:$0xff] }
 0x211   :  { %6996 = vmatprep.subr.msk.bf16.mxu1 %vm9042_vm5, %v6994_v58  ;;  %v7006_v14 = vpack.c.bf16 %v3042_v48, %v3041_v9 }
 0x214   :  { %6609 = vmatpush3.bf16.xpose.msk.msra.mxu0 %vm9042_vm5, %v6985_v6  ;;  %v3396_v6 = vld [vmem:[#allocation2 + $0x1a] sm:$0xff] }
 0x215   :  { %6612 = vmatprep.subr.msk.bf16.mxu0 %vm9042_vm5, %v9124_v2  ;;  %v9215_v12 = vpack.c.bf16 %v3397_v46, %v3396_v6  ;;  %v1381_v6 = vld [vmem:[#allocation2 + $0x80] sm:$0xff]  ;;  %v3406_v46 = vld [vmem:[#allocation2 + $0x92] sm:$0xff] }
 0x217   :  { %6141 = vmatmul.mubr.msk.f32.vlgmr.msra.gmra.mrb[0].mxu1 %vm680_vm2, %v10146_v4 }
 0x218   :  { %6999 = vmatpush3.bf16.xpose.msk.msra.mxu1 %vm9042_vm5, %v6997_v3  ;;  %6174 = vmatprep.mubr.msk.f32.mxu1 %vm680_vm2, %v10146_v4 }
 0x219   :  { %7002 = vmatprep.subr.msk.bf16.mxu1 %vm9042_vm5, %v7000_v0 }
 0x21b   :  { %5869 = vmatmul.mubr.msk.f32.vlgmr.msra.gmra.mrb[64].mxu0 %vm680_vm2, %v10145_v50 }
 0x21c   :  { %6615 = vmatpush3.bf16.xpose.msk.msra.mxu0 %vm9042_vm5, %v6613_v36  ;;  %5902 = vmatprep.mubr.msk.f32.mxu0 %vm680_vm2, %v10145_v50  ;;  %v1372_v36 = vld [vmem:[#allocation2 + $0x18] sm:$0xff] }
 0x21d   :  { %6618 = vmatprep.subr.msk.bf16.mxu0 %vm9042_vm5, %v6994_v58  ;;  %v3415_v58 = vld [vmem:[#allocation2 + $0xfa] sm:$0xff]  ;;  %v6667_v34 = vpack.c.bf16 %v1373_v33, %v1372_v36  ;;  %v9327_v36 = vpack.c.bf16 %v1381_v6, %v1380_v44  ;;  %v1421_v6 = vld [vmem:[#allocation2 + $0x290] sm:$0xff] }
 0x21e   :  { %v9223_v30 = vpack.c.bf16 %v3415_v58, %v3414_v22  ;;  %v3424_v22 = vld [vmem:[#allocation2 + $0x16a] sm:$0xff]  ;;  %v3425_v58 = vld [vmem:[#allocation2 + $0x172] sm:$0xff] }
 0x220   :  { %7005 = vmatpush3.bf16.xpose.msk.msra.mxu1 %vm9042_vm5, %v7003_v52 }
 0x221   :  { %7008 = vmatprep.subr.msk.bf16.mxu1 %vm9042_vm5, %v7006_v14 }
 0x224   :  { %6621 = vmatpush3.bf16.xpose.msk.msra.mxu0 %vm9042_vm5, %v6997_v3  ;;  %v3399_v3 = vld [vmem:[#allocation2 + $0x3a] sm:$0xff] }
 0x225   :  { %6624 = vmatprep.subr.msk.bf16.mxu0 %vm9042_vm5, %v7000_v0  ;;  %v3416_v0 = vld [vmem:[#allocation2 + $0x10a] sm:$0xff]  ;;  %v9250_v9 = vpack.c.bf16 %v3399_v3, %v3398_v1  ;;  %v9333_v3 = vpack.c.bf16 %v3425_v58, %v3424_v22 }
 0x226   :  { %v1404_v58 = vld [vmem:[#allocation2 + $0x1c8] sm:$0xff] }
 0x228   :  { %7011 = vmatpush3.bf16.xpose.msk.msra.mxu1 %vm9042_vm5, %v7009_v28 }
 0x229   :  { %7014 = vmatprep.subr.msk.bf16.mxu1 %vm9042_vm5, %v7012_v25 }
 0x22c   :  { %6627 = vmatpush3.bf16.xpose.msk.msra.mxu0 %vm9042_vm5, %v7003_v52  ;;  %v9254_v52 = vpack.c.bf16 %v3417_v24, %v3416_v0  ;;  %v3408_v0 = vld [vmem:[#allocation2 + $0xaa] sm:$0xff]  ;;  %v3409_v24 = vld [vmem:[#allocation2 + $0xb2] sm:$0xff] }
 0x22d   :  { %6630 = vmatprep.subr.msk.bf16.mxu0 %vm9042_vm5, %v7006_v14  ;;  %v1374_v14 = vld [vmem:[#allocation2 + $0x30] sm:$0xff] }
 0x22e   :  { %v9267_v37 = vpack.c.bf16 %v1375_v10, %v1374_v14  ;;  %v1401_v14 = vld [vmem:[#allocation2 + $0x170] sm:$0xff]  ;;  %v3426_v10 = vld [vmem:[#allocation2 + $0x182] sm:$0xff] }
 0x230   :  { %7017 = vmatpush3.bf16.xpose.msk.msra.mxu1 %vm9042_vm5, %v7015_v63 }
 0x231   :  { %7020 = vmatprep.subr.msk.bf16.mxu1 %vm9042_vm5, %v7018_v61 }
 0x234   :  { %6633 = vmatpush3.bf16.xpose.msk.msra.mxu0 %vm9042_vm5, %v7009_v28  ;;  %v1393_v28 = vld [vmem:[#allocation2 + $0x110] sm:$0xff] }
 0x235   :  { %6636 = vmatprep.subr.msk.bf16.mxu0 %vm9042_vm5, %v7012_v25  ;;  %v3418_v25 = vld [vmem:[#allocation2 + $0x122] sm:$0xff]  ;;  %v9271_v49 = vpack.c.bf16 %v1393_v28, %v1392_v16  ;;  %v9349_v16 = vpack.c.bf16 %v3409_v24, %v3408_v0  ;;  %v3431_v0 = vld [vmem:[#allocation2 + $0x1ea] sm:$0xff] }
 0x236   :  { %v1422_v24 = vld [vmem:[#allocation2 + $0x2a0] sm:$0xff] }
 0x238   :  { %7023 = vmatpush3.bf16.xpose.msk.msra.mxu1 %vm9042_vm5, %v7021_v43 }
 0x239   :  { %7026 = vmatprep.subr.msk.bf16.mxu1 %vm9042_vm5, %v7024_v41 }
 0x23c   :  { %6639 = vmatpush3.bf16.xpose.msk.msra.mxu0 %vm9042_vm5, %v7015_v63  ;;  %v9273_v63 = vpack.c.bf16 %v3419_v39, %v3418_v25  ;;  %v7084_v25 = vpack.c.bf16 %v3427_v7, %v3426_v10  ;;  %v1384_v39 = vld [vmem:[#allocation2 + $0xa8] sm:$0xff] }
 0x23d   :  { %6642 = vmatprep.subr.msk.bf16.mxu0 %vm9042_vm5, %v7018_v61  ;;  %v1376_v61 = vld [vmem:[#allocation2 + $0x48] sm:$0xff] }
 0x23e   :  { %v9287_v55 = vpack.c.bf16 %v1377_v13, %v1376_v61  ;;  %v1385_v61 = vld [vmem:[#allocation2 + $0xb0] sm:$0xff]  ;;  %v3410_v13 = vld [vmem:[#allocation2 + $0xc2] sm:$0xff] }
 0x23f   :  { %v3449_v10 = vld [vmem:[#allocation2 + $0x2c2] sm:$0xff] }
 0x240   :  { %7029 = vmatpush3.bf16.xpose.msk.msra.mxu1 %vm9042_vm5, %v7027_v27 }
 0x241   :  { %7032 = vmatprep.subr.msk.bf16.mxu1 %vm9042_vm5, %v7030_v23 }
 0x244   :  { %6645 = vmatpush3.bf16.xpose.msk.msra.mxu0 %vm9042_vm5, %v7021_v43  ;;  %v1395_v43 = vld [vmem:[#allocation2 + $0x128] sm:$0xff] }
 0x245   :  { %6648 = vmatprep.subr.msk.bf16.mxu0 %vm9042_vm5, %v7024_v41  ;;  %v3420_v41 = vld [vmem:[#allocation2 + $0x13a] sm:$0xff]  ;;  %v9291_v5 = vpack.c.bf16 %v1395_v43, %v1394_v26  ;;  %v3444_v43 = vld [vmem:[#allocation2 + $0x28a] sm:$0xff] }
 0x246   :  { %v1419_v26 = vld [vmem:[#allocation2 + $0x278] sm:$0xff] }
 0x248   :  { %7035 = vmatpush3.bf16.xpose.msk.msra.mxu1 %vm9042_vm5, %v7033_v19 }
 0x249   :  { %7038 = vmatprep.subr.msk.bf16.mxu1 %vm9042_vm5, %v7036_v15  ;;  %v3422_v15 = vld [vmem:[#allocation2 + $0x152] sm:$0xff] }
 0x24a   :  { %v9313_v17 = vpack.c.bf16 %v3423_v38, %v3422_v15  ;;  %v3429_v15 = vld [vmem:[#allocation2 + $0x1d2] sm:$0xff]  ;;  %v1420_v38 = vld [vmem:[#allocation2 + $0x288] sm:$0xff] }
 0x24c   :  { %6651 = vmatpush3.bf16.xpose.msk.msra.mxu0 %vm9042_vm5, %v7027_v27  ;;  %v9293_v27 = vpack.c.bf16 %v3421_v57, %v3420_v41  ;;  %v3445_v41 = vld [vmem:[#allocation2 + $0x292] sm:$0xff]  ;;  %v9364_v57 = vpack.c.bf16 %v1385_v61, %v1384_v39 }
 0x24d   :  { %6654 = vmatprep.subr.msk.bf16.mxu0 %vm9042_vm5, %v7030_v23  ;;  %v1378_v23 = vld [vmem:[#allocation2 + $0x60] sm:$0xff]  ;;  %v9370_v42 = vpack.c.bf16 %v3445_v41, %v3444_v43  ;;  %v1424_v43 = vld [vmem:[#allocation2 + $0x2b8] sm:$0xff] }
 0x24e   :  { %v9307_v35 = vpack.c.bf16 %v1379_v45, %v1378_v23  ;;  %v9366_v23 = vpack.c.bf16 %v3411_v11, %v3410_v13  ;;  %v9368_v45 = vpack.c.bf16 %v1419_v26, %v1418_v29  ;;  %v1406_v13 = vld [vmem:[#allocation2 + $0x1e0] sm:$0xff]  ;;  %v1407_v11 = vld [vmem:[#allocation2 + $0x1e8] sm:$0xff] }
 0x24f   :  { %v3432_v29 = vld [vmem:[#allocation2 + $0x1fa] sm:$0xff]  ;;  %v3433_v26 = vld [vmem:[#allocation2 + $0x202] sm:$0xff] }
 0x250   :  { %7041 = vmatpush3.bf16.xpose.msk.msra.mxu1 %vm9042_vm5, %v9124_v2  ;;  %v9221_v2 = vpack.c.bf16 %v1389_v31, %v1388_v32  ;;  %v3407_v32 = vld [vmem:[#allocation2 + $0x9a] sm:$0xff]  ;;  %10147 = vst [vmem:[#allocation18_spill] sm:$0xff] %v9368_v45 }
 0x251   :  { %7044 = vmatprep.subr.msk.bf16.mxu1 %vm9042_vm5, %v9202_v47  ;;  %v1399_v31 = vld [vmem:[#allocation2 + $0x158] sm:$0xff]  ;;  %v9329_v33 = vpack.c.bf16 %v3407_v32, %v3406_v46  ;;  %v3446_v46 = vld [vmem:[#allocation2 + $0x2a2] sm:$0xff]  ;;  %v3447_v32 = vld [vmem:[#allocation2 + $0x2aa] sm:$0xff] }
 0x252   :  { %v9392_v22 = vpack.c.bf16 %v3447_v32, %v3446_v46  ;;  %v1425_v41 = vld [vmem:[#allocation2 + $0x2c0] sm:$0xff]  ;;  %v3434_v32 = vld [vmem:[#allocation2 + $0x212] sm:$0xff] }
 0x253   :  { %v1409_v46 = vld [vmem:[#allocation2 + $0x200] sm:$0xff] }
 0x254   :  { %6657 = vmatpush3.bf16.xpose.msk.msra.mxu0 %vm9042_vm5, %v7033_v19  ;;  %v1397_v19 = vld [vmem:[#allocation2 + $0x140] sm:$0xff] }
 0x255   :  { %6660 = vmatprep.subr.msk.bf16.mxu0 %vm9042_vm5, %v9200_v21  ;;  %v9311_v56 = vpack.c.bf16 %v1397_v19, %v1396_v59  ;;  %v1403_v59 = vld [vmem:[#allocation2 + $0x1b8] sm:$0xff]  ;;  %v3428_v19 = vld [vmem:[#allocation2 + $0x1ca] sm:$0xff] }
 0x256   :  { %v6709_v44 = vpack.c.bf16 %v1403_v59, %v1402_v62  ;;  %v3450_v62 = vld [vmem:[#allocation2 + $0x2d2] sm:$0xff]  ;;  %v3451_v59 = vld [vmem:[#allocation2 + $0x2da] sm:$0xff] }
 0x257   :  { %6175 = vmatmul.mubr.msk.f32.vlgmr.msra.gmra.mrb[2].mxu1 %vm680_vm2, %v10146_v4  ;;  %v1391_v4 = vld [vmem:[#allocation2 + $0xf8] sm:$0xff] }
 0x258   :  { %7047 = vmatpush3.bf16.xpose.msk.msra.mxu1 %vm9042_vm5, %v9215_v12  ;;  %6208 = vmatprep.mubr.msk.f32.mxu1 %vm680_vm2, %v9233_v40 }
 0x259   :  { %7050 = vmatprep.subr.msk.bf16.mxu1 %vm9042_vm5, %v9223_v30 }
 0x25b   :  { %5903 = vmatmul.mubr.msk.f32.vlgmr.msra.gmra.mrb[66].mxu0 %vm680_vm2, %v10145_v50  ;;  %v1390_v50 = vld [vmem:[#allocation2 + $0xf0] sm:$0xff] }
 0x25c   :  { %6663 = vmatpush3.bf16.xpose.msk.msra.mxu0 %vm9042_vm5, %v6661_v54  ;;  %5936 = vmatprep.mubr.msk.f32.mxu0 %vm680_vm2, %v9228_v53  ;;  %v9252_v48 = vpack.c.bf16 %v1391_v4, %v1390_v50  ;;  %v1398_v54 = vld [vmem:[#allocation2 + $0x150] sm:$0xff]  ;;  %v1383_v4 = vld [vmem:[#allocation2 + $0x98] sm:$0xff] }
 0x25d   :  { %6666 = vmatprep.subr.msk.bf16.mxu0 %vm9042_vm5, %v9221_v2  ;;  %v9331_v1 = vpack.c.bf16 %v1399_v31, %v1398_v54  ;;  %v1382_v50 = vld [vmem:[#allocation2 + $0x90] sm:$0xff]  ;;  %v9384_v54 = vpack.c.bf16 %v3429_v15, %v3428_v19  ;;  %v9390_v31 = vpack.c.bf16 %v1421_v6, %v1420_v38  ;;  %v9426_v19 = vpack.c.bf16 %v1407_v11, %v1406_v13  ;;  %v1408_v6 = vld [vmem:[#allocation2 + $0x1f8] sm:$0xff] }
 0x25e   :  { %v9347_v18 = vpack.c.bf16 %v1383_v4, %v1382_v50  ;;  %v1405_v50 = vld [vmem:[#allocation2 + $0x1d0] sm:$0xff]  ;;  %v3430_v4 = vld [vmem:[#allocation2 + $0x1e2] sm:$0xff]  ;;  %v9428_v15 = vpack.c.bf16 %v3433_v26, %v3432_v29  ;;  %v9430_v38 = vpack.c.bf16 %v1425_v41, %v1424_v43  ;;  %v1411_v11 = vld [vmem:[#allocation2 + $0x218] sm:$0xff] }
 0x25f   :  { %10148 = vst [vmem:[#allocation21_spill] sm:$0xff] %v9390_v31  ;;  %v6715_v7 = vpack.c.bf16 %v1405_v50, %v1404_v58  ;;  %v3435_v58 = vld [vmem:[#allocation2 + $0x21a] sm:$0xff]  ;;  %v1426_v50 = vld [vmem:[#allocation2 + $0x2d0] sm:$0xff]  ;;  %v1428_v43 = vld [vmem:[#allocation2 + $0x2e8] sm:$0xff] }
 0x260   :  { %7053 = vmatpush3.bf16.xpose.msk.msra.mxu1 %vm9042_vm5, %v9250_v9  ;;  %v1410_v13 = vld [vmem:[#allocation2 + $0x210] sm:$0xff] }
 0x261   :  { %7056 = vmatprep.subr.msk.bf16.mxu1 %vm9042_vm5, %v9254_v52  ;;  %v3436_v29 = vld [vmem:[#allocation2 + $0x22a] sm:$0xff]  ;;  %v3437_v26 = vld [vmem:[#allocation2 + $0x232] sm:$0xff] }
 0x262   :  { %v1429_v41 = vld [vmem:[#allocation2 + $0x2f0] sm:$0xff] }
 0x264   :  { %6669 = vmatpush3.bf16.xpose.msk.msra.mxu0 %vm9042_vm5, %v6667_v34  ;;  %v1400_v34 = vld [vmem:[#allocation2 + $0x168] sm:$0xff] }
 0x265   :  { %6672 = vmatprep.subr.msk.bf16.mxu0 %vm9042_vm5, %v9252_v48  ;;  %v9351_v28 = vpack.c.bf16 %v1401_v14, %v1400_v34  ;;  %v1423_v34 = vld [vmem:[#allocation2 + $0x2a8] sm:$0xff]  ;;  %v3448_v14 = vld [vmem:[#allocation2 + $0x2ba] sm:$0xff] }
 0x266   :  { %v9411_v39 = vpack.c.bf16 %v1423_v34, %v1422_v24  ;;  %v9413_v61 = vpack.c.bf16 %v3449_v10, %v3448_v14  ;;  %v3453_v24 = vld [vmem:[#allocation2 + $0x2f2] sm:$0xff]  ;;  %v9446_v34 = vpack.c.bf16 %v1409_v46, %v1408_v6  ;;  %v9448_v14 = vpack.c.bf16 %v3435_v58, %v3434_v32 }
 0x267   :  { %v9466_v6 = vpack.c.bf16 %v1411_v11, %v1410_v13  ;;  %v9468_v46 = vpack.c.bf16 %v3437_v26, %v3436_v29  ;;  %v9470_v32 = vpack.c.bf16 %v1429_v41, %v1428_v43  ;;  %v1430_v13 = vld [vmem:[#allocation2 + $0x300] sm:$0xff]  ;;  %v1431_v11 = vld [vmem:[#allocation2 + $0x308] sm:$0xff] }
 0x268   :  { %7059 = vmatpush3.bf16.xpose.msk.msra.mxu1 %vm9042_vm5, %v9269_v51  ;;  %v3456_v29 = vld [vmem:[#allocation2 + $0x31a] sm:$0xff]  ;;  %v3457_v26 = vld [vmem:[#allocation2 + $0x322] sm:$0xff] }
 0x269   :  { %7062 = vmatprep.subr.msk.bf16.mxu1 %vm9042_vm5, %v9273_v63 }
 0x26c   :  { %6675 = vmatpush3.bf16.xpose.msk.msra.mxu0 %vm9042_vm5, %v9267_v37 }
 0x26d   :  { %6678 = vmatprep.subr.msk.bf16.mxu0 %vm9042_vm5, %v9271_v49 }
 0x270   :  { %7065 = vmatpush3.bf16.xpose.msk.msra.mxu1 %vm9042_vm5, %v9289_v8 }
 0x271   :  { %7068 = vmatprep.subr.msk.bf16.mxu1 %vm9042_vm5, %v9293_v27 }
 0x274   :  { %6681 = vmatpush3.bf16.xpose.msk.msra.mxu0 %vm9042_vm5, %v9287_v55 }
 0x275   :  { %6684 = vmatprep.subr.msk.bf16.mxu0 %vm9042_vm5, %v9291_v5 }
 0x278   :  { %7071 = vmatpush3.bf16.xpose.msk.msra.mxu1 %vm9042_vm5, %v9309_v60 }
 0x279   :  { %7074 = vmatprep.subr.msk.bf16.mxu1 %vm9042_vm5, %v9313_v17 }
 0x27c   :  { %6687 = vmatpush3.bf16.xpose.msk.msra.mxu0 %vm9042_vm5, %v9307_v35 }
 0x27d   :  { %6690 = vmatprep.subr.msk.bf16.mxu0 %vm9042_vm5, %v9311_v56 }
 0x280   :  { %7077 = vmatpush3.bf16.xpose.msk.msra.mxu1 %vm9042_vm5, %v9329_v33 }
 0x281   :  { %7080 = vmatprep.subr.msk.bf16.mxu1 %vm9042_vm5, %v9333_v3 }
 0x284   :  { %6693 = vmatpush3.bf16.xpose.msk.msra.mxu0 %vm9042_vm5, %v9327_v36 }
 0x285   :  { %6696 = vmatprep.subr.msk.bf16.mxu0 %vm9042_vm5, %v9331_v1 }
 0x288   :  { %7083 = vmatpush3.bf16.xpose.msk.msra.mxu1 %vm9042_vm5, %v9349_v16 }
 0x289   :  { %7086 = vmatprep.subr.msk.bf16.mxu1 %vm9042_vm5, %v7084_v25  ;;  %v9409_v25 = vpack.c.bf16 %v3431_v0, %v3430_v4  ;;  %v1427_v4 = vld [vmem:[#allocation2 + $0x2d8] sm:$0xff]  ;;  %v3452_v0 = vld [vmem:[#allocation2 + $0x2ea] sm:$0xff] }
 0x28a   :  { %v9450_v10 = vpack.c.bf16 %v1427_v4, %v1426_v50  ;;  %v1412_v50 = vld [vmem:[#allocation2 + $0x228] sm:$0xff]  ;;  %v1413_v4 = vld [vmem:[#allocation2 + $0x230] sm:$0xff] }
 0x28b   :  { %v9486_v43 = vpack.c.bf16 %v1413_v4, %v1412_v50  ;;  %v1414_v50 = vld [vmem:[#allocation2 + $0x240] sm:$0xff]  ;;  %v1415_v4 = vld [vmem:[#allocation2 + $0x248] sm:$0xff] }
 0x28c   :  { %6699 = vmatpush3.bf16.xpose.msk.msra.mxu0 %vm9042_vm5, %v9347_v18 }
 0x28d   :  { %6702 = vmatprep.subr.msk.bf16.mxu0 %vm9042_vm5, %v9351_v28 }
 0x290   :  { %7089 = vmatpush3.bf16.xpose.msk.msra.mxu1 %vm9042_vm5, %v9366_v23 }
 0x291   :  { %7092 = vmatprep.subr.msk.bf16.mxu1 %vm9042_vm5, %v9370_v42 }
 0x294   :  { %6705 = vmatpush3.bf16.xpose.msk.msra.mxu0 %vm9042_vm5, %v9364_v57 }
 0x295   :  { %6708 = vmatprep.subr.msk.bf16.mxu0 %vm9042_vm5, %v9368_v45 }
 0x297   :  { %6209 = vmatmul.mubr.msk.f32.vlgmr.msra.gmra.mrb[0].mxu1 %vm680_vm2, %v9233_v40 }
 0x298   :  { %7095 = vmatpush3.bf16.xpose.msk.msra.mxu1 %vm9042_vm5, %v9384_v54  ;;  %6242 = vmatprep.mubr.msk.f32.mxu1 %vm680_vm2, %v9233_v40 }
 0x299   :  { %7098 = vmatprep.subr.msk.bf16.mxu1 %vm9042_vm5, %v9392_v22 }
 0x29b   :  { %5937 = vmatmul.mubr.msk.f32.vlgmr.msra.gmra.mrb[64].mxu0 %vm680_vm2, %v9228_v53 }
 0x29c   :  { %6711 = vmatpush3.bf16.xpose.msk.msra.mxu0 %vm9042_vm5, %v6709_v44  ;;  %5970 = vmatprep.mubr.msk.f32.mxu0 %vm680_vm2, %v9228_v53  ;;  %v9432_v44 = vpack.c.bf16 %v3451_v59, %v3450_v62  ;;  %v3454_v62 = vld [vmem:[#allocation2 + $0x302] sm:$0xff]  ;;  %v3455_v59 = vld [vmem:[#allocation2 + $0x30a] sm:$0xff] }
 0x29d   :  { %6714 = vmatprep.subr.msk.bf16.mxu0 %vm9042_vm5, %v9390_v31  ;;  %v9472_v58 = vpack.c.bf16 %v3455_v59, %v3454_v62  ;;  %v9490_v62 = vpack.c.bf16 %v1431_v11, %v1430_v13  ;;  %v9492_v59 = vpack.c.bf16 %v3457_v26, %v3456_v29  ;;  %v1432_v13 = vld [vmem:[#allocation2 + $0x318] sm:$0xff]  ;;  %v1433_v11 = vld [vmem:[#allocation2 + $0x320] sm:$0xff]  ;;  %v9506_v31 = vpack.c.bf16 %v1415_v4, %v1414_v50 }
 0x29e   :  { %v3458_v29 = vld [vmem:[#allocation2 + $0x332] sm:$0xff]  ;;  %v3459_v26 = vld [vmem:[#allocation2 + $0x33a] sm:$0xff] }
 0x29f   :  { %10149 = vst [vmem:[#allocation20_spill] sm:$0xff] %v9472_v58  ;;  %v1416_v50 = vld [vmem:[#allocation2 + $0x258] sm:$0xff]  ;;  %v1417_v4 = vld [vmem:[#allocation2 + $0x260] sm:$0xff] }
 0x2a0   :  { %7101 = vmatpush3.bf16.xpose.msk.msra.mxu1 %vm9042_vm5, %v9409_v25 }
 0x2a1   :  { %7104 = vmatprep.subr.msk.bf16.mxu1 %vm9042_vm5, %v9413_v61 }
 0x2a4   :  { %6717 = vmatpush3.bf16.xpose.msk.msra.mxu0 %vm9042_vm5, %v6715_v7  ;;  %v9452_v7 = vpack.c.bf16 %v3453_v24, %v3452_v0  ;;  %v3438_v0 = vld [vmem:[#allocation2 + $0x242] sm:$0xff]  ;;  %v3439_v24 = vld [vmem:[#allocation2 + $0x24a] sm:$0xff] }
 0x2a5   :  { %6720 = vmatprep.subr.msk.bf16.mxu0 %vm9042_vm5, %v9411_v39  ;;  %v9488_v41 = vpack.c.bf16 %v3439_v24, %v3438_v0  ;;  %v3440_v0 = vld [vmem:[#allocation2 + $0x25a] sm:$0xff]  ;;  %v3441_v24 = vld [vmem:[#allocation2 + $0x262] sm:$0xff] }
 0x2a6   :  { %v9508_v45 = vpack.c.bf16 %v3441_v24, %v3440_v0  ;;  %v3442_v0 = vld [vmem:[#allocation2 + $0x272] sm:$0xff]  ;;  %v3443_v24 = vld [vmem:[#allocation2 + $0x27a] sm:$0xff] }
 0x2a7   :  { %10150 = vst [vmem:[#allocation23_spill] sm:$0xff] %v9488_v41 }
 0x2a8   :  { %7107 = vmatpush3.bf16.xpose.msk.msra.mxu1 %vm9042_vm5, %v9428_v15 }
 0x2a9   :  { %7110 = vmatprep.subr.msk.bf16.mxu1 %vm9042_vm5, %v9432_v44 }
 0x2ac   :  { %6723 = vmatpush3.bf16.xpose.msk.msra.mxu0 %vm9042_vm5, %v9426_v19 }
 0x2ad   :  { %6726 = vmatprep.subr.msk.bf16.mxu0 %vm9042_vm5, %v9430_v38 }
 0x2b0   :  { %7113 = vmatpush3.bf16.xpose.msk.msra.mxu1 %vm9042_vm5, %v9448_v14 }
 0x2b1   :  { %7116 = vmatprep.subr.msk.bf16.mxu1 %vm9042_vm5, %v9452_v7 }
 0x2b4   :  { %6729 = vmatpush3.bf16.xpose.msk.msra.mxu0 %vm9042_vm5, %v9446_v34 }
 0x2b5   :  { %6732 = vmatprep.subr.msk.bf16.mxu0 %vm9042_vm5, %v9450_v10 }
 0x2b8   :  { %7119 = vmatpush3.bf16.xpose.msk.msra.mxu1 %vm9042_vm5, %v9468_v46 }
 0x2b9   :  { %7122 = vmatprep.subr.msk.bf16.mxu1 %vm9042_vm5, %v9472_v58  ;;  %v7132_v58 = vpack.c.bf16 %v3459_v26, %v3458_v29  ;;  %v2176_v29 = vld [vmem:[#allocation2 + $0xa] sm:$0xff] }
 0x2bc   :  { %6735 = vmatpush3.bf16.xpose.msk.msra.mxu0 %vm9042_vm5, %v9466_v6 }
 0x2bd   :  { %6738 = vmatprep.subr.msk.bf16.mxu0 %vm9042_vm5, %v9470_v32 }
 0x2c0   :  { %7125 = vmatpush3.bf16.xpose.msk.msra.mxu1 %vm9042_vm5, %v9488_v41  ;;  %v9510_v41 = vpack.c.bf16 %v1433_v11, %v1432_v13  ;;  %v9523_v13 = vpack.c.bf16 %v1417_v4, %v1416_v50  ;;  %v7135_v11 = vpack.c.bf16 %v3443_v24, %v3442_v0  ;;  %v9543_v50 = vld [vmem:[%s10014_s3 + $0x8] sm:$0xf]  ;;  %v4233_v0 = vld [vmem:[#allocation2 + $0x139] sm:$0xff] }
 0x2c1   :  { %7128 = vmatprep.subr.msk.bf16.mxu1 %vm9042_vm5, %v9492_v59  ;;  %v2605_v4 = vld [vmem:[#allocation2 + $0x128] sm:$0xff] }
 0x2c2   :  { %v4234_v24 = vld [vmem:[#allocation2 + $0x141] sm:$0xff] }
 0x2c4   :  { %6741 = vmatpush3.bf16.xpose.msk.msra.mxu0 %vm9042_vm5, %v9486_v43 }
 0x2c5   :  { %6744 = vmatprep.subr.msk.bf16.mxu0 %vm9042_vm5, %v9490_v62 }
 0x2c8   :  { %7131 = vmatpush3.bf16.xpose.msk.msra.mxu1 %vm9042_vm5, %v9508_v45 }
 0x2c9   :  { %7134 = vmatprep.subr.msk.bf16.mxu1 %vm9042_vm5, %v7132_v58  ;;  %v2175_v58 = vld [vmem:[#allocation2 + $0x2] sm:$0xff] }
 0x2ca   :  { %v6757_v26 = vpack.c.bf16 %v2176_v29, %v2175_v58  ;;  %v7252_v29 = vpack.c.bf16 %v4234_v24, %v4233_v0 }
 0x2cc   :  { %6747 = vmatpush3.bf16.xpose.msk.msra.mxu0 %vm9042_vm5, %v9506_v31 }
 0x2cd   :  { %6750 = vmatprep.subr.msk.bf16.mxu0 %vm9042_vm5, %v9510_v41 }
 0x2d0   :  { %7137 = vmatpush3.bf16.xpose.msk.msra.mxu1 %vm9042_vm5, %v7135_v11 }
 0x2d1   :  { %7140 = vmatprep.subr.msk.bf16.mxu1 %vm9042_vm5, %v9252_v48  ;;  %v2208_v48 = vld [vmem:[#allocation2 + $0x1ba] sm:$0xff] }
 0x2d4   :  { %6753 = vmatpush3.bf16.xpose.msk.msra.mxu0 %vm9042_vm5, %v9523_v13 }
 0x2d5   :  { %6756 = vmatprep.subr.msk.bf16.mxu0 %vm9042_vm5, %v9366_v23  ;;  %v9548_v23 = vld [vmem:[%s10014_s3 + $0x18] sm:$0xf] }
 0x2d7   :  { %6243 = vmatmul.mubr.msk.f32.vlgmr.msra.gmra.mrb[2].mxu1 %vm680_vm2, %v9233_v40  ;;  %v3835_v40 = vld [vmem:[#allocation2 + $0x1a0] sm:$0xff] }
 0x2d8   :  { %7143 = vmatpush3.bf16.xpose.msk.msra.mxu1 %vm9042_vm5, %v9267_v37  ;;  %6276 = vmatprep.mubr.msk.f32.mxu1 %vm680_vm2, %v9548_v23  ;;  %v3864_v37 = vld [vmem:[#allocation2 + $0x330] sm:$0xff] }
 0x2d9   :  { %7146 = vmatprep.subr.msk.bf16.mxu1 %vm9042_vm5, %v9271_v49 }
 0x2db   :  { %5971 = vmatmul.mubr.msk.f32.vlgmr.msra.gmra.mrb[66].mxu0 %vm680_vm2, %v9228_v53  ;;  %v3834_v53 = vld [vmem:[#allocation2 + $0x198] sm:$0xff] }
 0x2dc   :  { %6759 = vmatpush3.bf16.xpose.msk.msra.mxu0 %vm9042_vm5, %v6757_v26  ;;  %6004 = vmatprep.mubr.msk.f32.mxu0 %vm680_vm2, %v9543_v50  ;;  %v2588_v26 = vld [vmem:[#allocation2 + $0x60] sm:$0xff] }
 0x2dd   :  { %6762 = vmatprep.subr.msk.bf16.mxu0 %vm9042_vm5, %v9202_v47  ;;  %v3832_v47 = vld [vmem:[#allocation2 + $0x180] sm:$0xff] }
 0x2e0   :  { %7149 = vmatpush3.bf16.xpose.msk.msra.mxu1 %vm9042_vm5, %v9287_v55  ;;  %v3866_v55 = vld [vmem:[#allocation2 + $0x348] sm:$0xff] }
 0x2e1   :  { %7152 = vmatprep.subr.msk.bf16.mxu1 %vm9042_vm5, %v9291_v5 }
 0x2e4   :  { %6765 = vmatpush3.bf16.xpose.msk.msra.mxu0 %vm9042_vm5, %v9215_v12  ;;  %v3833_v12 = vld [vmem:[#allocation2 + $0x188] sm:$0xff] }
 0x2e5   :  { %6768 = vmatprep.subr.msk.bf16.mxu0 %vm9042_vm5, %v9223_v30  ;;  %v9613_v30 = vpack.c.bf16 %v3833_v12, %v3832_v47  ;;  %v4218_v47 = vld [vmem:[#allocation2 + $0x81] sm:$0xff]  ;;  %v2606_v12 = vld [vmem:[#allocation2 + $0x138] sm:$0xff] }
 0x2e8   :  { %7155 = vmatpush3.bf16.xpose.msk.msra.mxu1 %vm9042_vm5, %v9307_v35  ;;  %v10153_v35 = vld [vmem:[#allocation18_spill] sm:$0xff] }
 0x2e9   :  { %7158 = vmatprep.subr.msk.bf16.mxu1 %vm9042_vm5, %v9311_v56  ;;  %v4228_v56 = vld [vmem:[#allocation2 + $0xf9] sm:$0xff] }
 0x2ec   :  { %6771 = vmatpush3.bf16.xpose.msk.msra.mxu0 %vm9042_vm5, %v9250_v9  ;;  %v7180_v9 = vpack.c.bf16 %v3835_v40, %v3834_v53  ;;  %v2607_v53 = vld [vmem:[#allocation2 + $0x140] sm:$0xff]  ;;  %v4235_v40 = vld [vmem:[#allocation2 + $0x151] sm:$0xff] }
 0x2ed   :  { %6774 = vmatprep.subr.msk.bf16.mxu0 %vm9042_vm5, %v9254_v52 }
 0x2f0   :  { %7161 = vmatpush3.bf16.xpose.msk.msra.mxu1 %vm9042_vm5, %v9327_v36  ;;  %v10154_v36 = vld [vmem:[#allocation21_spill] sm:$0xff] }
 0x2f1   :  { %7164 = vmatprep.subr.msk.bf16.mxu1 %vm9042_vm5, %v9331_v1  ;;  %v2583_v1 = vld [vmem:[#allocation2 + $0x20] sm:$0xff] }
 0x2f4   :  { %6777 = vmatpush3.bf16.xpose.msk.msra.mxu0 %vm9042_vm5, %v9269_v51  ;;  %v3865_v51 = vld [vmem:[#allocation2 + $0x338] sm:$0xff] }
 0x2f5   :  { %6780 = vmatprep.subr.msk.bf16.mxu0 %vm9042_vm5, %v9273_v63  ;;  %v9716_v49 = vpack.c.bf16 %v3865_v51, %v3864_v37  ;;  %v10151_v63 = vld [vmem:[#allocation20_spill] sm:$0xff]  ;;  %v2590_v51 = vld [vmem:[#allocation2 + $0x78] sm:$0xff] }
 0x2f8   :  { %7167 = vmatpush3.bf16.xpose.msk.msra.mxu1 %vm9042_vm5, %v9347_v18  ;;  %v4212_v18 = vld [vmem:[#allocation2 + $0x39] sm:$0xff] }
 0x2f9   :  { %7170 = vmatprep.subr.msk.bf16.mxu1 %vm9042_vm5, %v9351_v28  ;;  %v2601_v28 = vld [vmem:[#allocation2 + $0xf8] sm:$0xff] }
 0x2fc   :  { %6783 = vmatpush3.bf16.xpose.msk.msra.mxu0 %vm9042_vm5, %v9289_v8  ;;  %v3867_v8 = vld [vmem:[#allocation2 + $0x350] sm:$0xff] }
 0x2fd   :  { %6786 = vmatprep.subr.msk.bf16.mxu0 %vm9042_vm5, %v9293_v27  ;;  %v7228_v5 = vpack.c.bf16 %v3867_v8, %v3866_v55  ;;  %v10152_v27 = vld [vmem:[#allocation23_spill] sm:$0xff]  ;;  %v4219_v55 = vld [vmem:[#allocation2 + $0x91] sm:$0xff] }
 0x2fe   :  { %v4220_v8 = vld [vmem:[#allocation2 + $0x99] sm:$0xff] }
 0x300   :  { %7173 = vmatpush3.bf16.xpose.msk.msra.mxu1 %vm9042_vm5, %v9364_v57  ;;  %v4229_v57 = vld [vmem:[#allocation2 + $0x109] sm:$0xff] }
 0x301   :  { %7176 = vmatprep.subr.msk.bf16.mxu1 %vm9042_vm5, %v9613_v30 }
 0x304   :  { %6789 = vmatpush3.bf16.xpose.msk.msra.mxu0 %vm9042_vm5, %v9309_v60  ;;  %v4227_v60 = vld [vmem:[#allocation2 + $0xf1] sm:$0xff] }
 0x305   :  { %6792 = vmatprep.subr.msk.bf16.mxu0 %vm9042_vm5, %v9313_v17  ;;  %v7234_v17 = vpack.c.bf16 %v4228_v56, %v4227_v60  ;;  %v4238_v60 = vld [vmem:[#allocation2 + $0x171] sm:$0xff] }
 0x308   :  { %7179 = vmatpush3.bf16.xpose.msk.msra.mxu1 %vm9042_vm5, %v9200_v21  ;;  %v2207_v21 = vld [vmem:[#allocation2 + $0x1b2] sm:$0xff] }
 0x309   :  { %7182 = vmatprep.subr.msk.bf16.mxu1 %vm9042_vm5, %v7180_v9  ;;  %v6805_v52 = vpack.c.bf16 %v2208_v48, %v2207_v21  ;;  %v4236_v9 = vld [vmem:[#allocation2 + $0x159] sm:$0xff] }
 0x30a   :  { %v7258_v37 = vpack.c.bf16 %v4236_v9, %v4235_v40  ;;  %v2616_v40 = vld [vmem:[#allocation2 + $0x1e0] sm:$0xff]  ;;  %v2617_v9 = vld [vmem:[#allocation2 + $0x1e8] sm:$0xff] }
 0x30c   :  { %6795 = vmatpush3.bf16.xpose.msk.msra.mxu0 %vm9042_vm5, %v9329_v33  ;;  %v2582_v33 = vld [vmem:[#allocation2 + $0x18] sm:$0xff] }
 0x30d   :  { %6798 = vmatprep.subr.msk.bf16.mxu0 %vm9042_vm5, %v9333_v3  ;;  %v4211_v3 = vld [vmem:[#allocation2 + $0x31] sm:$0xff] }
 0x310   :  { %7185 = vmatpush3.bf16.xpose.msk.msra.mxu1 %vm9042_vm5, %v9221_v2 }
 0x311   :  { %7188 = vmatprep.subr.msk.bf16.mxu1 %vm9042_vm5, %v9411_v39  ;;  %v2584_v39 = vld [vmem:[#allocation2 + $0x30] sm:$0xff] }
 0x314   :  { %6801 = vmatpush3.bf16.xpose.msk.msra.mxu0 %vm9042_vm5, %v9349_v16  ;;  %v2600_v16 = vld [vmem:[#allocation2 + $0xf0] sm:$0xff] }
 0x315   :  { %6804 = vmatprep.subr.msk.bf16.mxu0 %vm9042_vm5, %v7135_v11 }
 0x317   :  { %6277 = vmatmul.mubr.msk.f32.vlgmr.msra.gmra.mrb[0].mxu1 %vm680_vm2, %v9548_v23 }
 0x318   :  { %7191 = vmatpush3.bf16.xpose.msk.msra.mxu1 %vm9042_vm5, %v9426_v19  ;;  %6310 = vmatprep.mubr.msk.f32.mxu1 %vm680_vm2, %v9548_v23  ;;  %v4213_v19 = vld [vmem:[#allocation2 + $0x49] sm:$0xff] }
 0x319   :  { %7194 = vmatprep.subr.msk.bf16.mxu1 %vm9042_vm5, %v9430_v38  ;;  %v2602_v38 = vld [vmem:[#allocation2 + $0x108] sm:$0xff] }
 0x31b   :  { %6005 = vmatmul.mubr.msk.f32.vlgmr.msra.gmra.mrb[64].mxu0 %vm680_vm2, %v9543_v50 }
 0x31c   :  { %6807 = vmatpush3.bf16.xpose.msk.msra.mxu0 %vm9042_vm5, %v6805_v52  ;;  %6038 = vmatprep.mubr.msk.f32.mxu0 %vm680_vm2, %v9543_v50  ;;  %v6874_v52 = vpack.c.bf16 %v2607_v53, %v2606_v12 }
 0x31d   :  { %6810 = vmatprep.subr.msk.bf16.mxu0 %vm9042_vm5, %v9370_v42  ;;  %v4230_v42 = vld [vmem:[#allocation2 + $0x111] sm:$0xff] }
 0x320   :  { %7197 = vmatpush3.bf16.xpose.msk.msra.mxu1 %vm9042_vm5, %v9446_v34  ;;  %v4231_v34 = vld [vmem:[#allocation2 + $0x121] sm:$0xff] }
 0x321   :  { %7200 = vmatprep.subr.msk.bf16.mxu1 %vm9042_vm5, %v9450_v10 }
 0x324   :  { %6813 = vmatpush3.bf16.xpose.msk.msra.mxu0 %vm9042_vm5, %v9384_v54  ;;  %v7237_v54 = vpack.c.bf16 %v4212_v18, %v4211_v3  ;;  %v2592_v3 = vld [vmem:[#allocation2 + $0x90] sm:$0xff]  ;;  %v2593_v18 = vld [vmem:[#allocation2 + $0x98] sm:$0xff] }
 0x325   :  { %6816 = vmatprep.subr.msk.bf16.mxu0 %vm9042_vm5, %v9392_v22  ;;  %v9759_v22 = vld [vmem:[%s10014_s3 + $0xc] sm:$0xf] }
 0x328   :  { %7203 = vmatpush3.bf16.xpose.msk.msra.mxu1 %vm9042_vm5, %v9466_v6 }
 0x329   :  { %7206 = vmatprep.subr.msk.bf16.mxu1 %vm9042_vm5, %v9470_v32  ;;  %v2586_v32 = vld [vmem:[#allocation2 + $0x48] sm:$0xff] }
 0x32c   :  { %6819 = vmatpush3.bf16.xpose.msk.msra.mxu0 %vm9042_vm5, %v9409_v25  ;;  %v9764_v25 = vld [vmem:[%s10014_s3 + $0x1c] sm:$0xf] }
 0x32d   :  { %6822 = vmatprep.subr.msk.bf16.mxu0 %vm9042_vm5, %v9413_v61  ;;  %v2585_v61 = vld [vmem:[#allocation2 + $0x38] sm:$0xff] }
 0x32e   :  { %v6859_v10 = vpack.c.bf16 %v2585_v61, %v2584_v39 }
 0x330   :  { %7209 = vmatpush3.bf16.xpose.msk.msra.mxu1 %vm9042_vm5, %v9486_v43  ;;  %v2587_v43 = vld [vmem:[#allocation2 + $0x50] sm:$0xff] }
 0x331   :  { %7212 = vmatprep.subr.msk.bf16.mxu1 %vm9042_vm5, %v9490_v62  ;;  %v4216_v62 = vld [vmem:[#allocation2 + $0x69] sm:$0xff] }
 0x334   :  { %6825 = vmatpush3.bf16.xpose.msk.msra.mxu0 %vm9042_vm5, %v9428_v15  ;;  %v4214_v15 = vld [vmem:[#allocation2 + $0x51] sm:$0xff] }
 0x335   :  { %6828 = vmatprep.subr.msk.bf16.mxu0 %vm9042_vm5, %v9432_v44  ;;  %v2603_v44 = vld [vmem:[#allocation2 + $0x110] sm:$0xff] }
 0x336   :  { %v6862_v6 = vpack.c.bf16 %v2603_v44, %v2602_v38  ;;  %v4242_v38 = vld [vmem:[#allocation2 + $0x1a1] sm:$0xff]  ;;  %v2595_v44 = vld [vmem:[#allocation2 + $0xb0] sm:$0xff] }
 0x338   :  { %7215 = vmatpush3.bf16.xpose.msk.msra.mxu1 %vm9042_vm5, %v9506_v31  ;;  %v7240_v31 = vpack.c.bf16 %v4230_v42, %v4229_v57  ;;  %v2610_v57 = vld [vmem:[#allocation2 + $0x168] sm:$0xff]  ;;  %v2611_v42 = vld [vmem:[#allocation2 + $0x170] sm:$0xff] }
 0x339   :  { %7218 = vmatprep.subr.msk.bf16.mxu1 %vm9042_vm5, %v9510_v41  ;;  %v4215_v41 = vld [vmem:[#allocation2 + $0x61] sm:$0xff]  ;;  %v6886_v39 = vpack.c.bf16 %v2611_v42, %v2610_v57 }
 0x33a   :  { %v7249_v11 = vpack.c.bf16 %v4216_v62, %v4215_v41  ;;  %v4226_v41 = vld [vmem:[#allocation2 + $0xe1] sm:$0xff] }
 0x33b   :  { %v4259_v62 = vld [vmem:[#allocation2 + $0x2a1] sm:$0xff] }
 0x33c   :  { %6831 = vmatpush3.bf16.xpose.msk.msra.mxu0 %vm9042_vm5, %v9448_v14  ;;  %v4232_v14 = vld [vmem:[#allocation2 + $0x129] sm:$0xff] }
 0x33d   :  { %6834 = vmatprep.subr.msk.bf16.mxu0 %vm9042_vm5, %v9452_v7  ;;  %v7243_v7 = vpack.c.bf16 %v4214_v15, %v4213_v19  ;;  %v2594_v19 = vld [vmem:[#allocation2 + $0xa8] sm:$0xff]  ;;  %v4241_v15 = vld [vmem:[#allocation2 + $0x199] sm:$0xff] }
 0x340   :  { %7221 = vmatpush3.bf16.xpose.msk.msra.mxu1 %vm9042_vm5, %v9523_v13  ;;  %v6865_v13 = vpack.c.bf16 %v2587_v43, %v2586_v32  ;;  %v2597_v32 = vld [vmem:[#allocation2 + $0xc8] sm:$0xff]  ;;  %v4225_v43 = vld [vmem:[#allocation2 + $0xd9] sm:$0xff] }
 0x341   :  { %7224 = vmatprep.subr.msk.bf16.mxu1 %vm9042_vm5, %v9716_v49  ;;  %v7279_v0 = vpack.c.bf16 %v4226_v41, %v4225_v43  ;;  %v2641_v43 = vld [vmem:[#allocation2 + $0x308] sm:$0xff]  ;;  %v4269_v41 = vld [vmem:[#allocation2 + $0x319] sm:$0xff] }
 0x344   :  { %6837 = vmatpush3.bf16.xpose.msk.msra.mxu0 %vm9042_vm5, %v9468_v46  ;;  %v7246_v46 = vpack.c.bf16 %v4232_v14, %v4231_v34  ;;  %v4223_v34 = vld [vmem:[#allocation2 + $0xc1] sm:$0xff]  ;;  %v4224_v14 = vld [vmem:[#allocation2 + $0xc9] sm:$0xff] }
 0x345   :  { %6840 = vmatprep.subr.msk.bf16.mxu0 %vm9042_vm5, %v10151_v63  ;;  %v2591_v63 = vld [vmem:[#allocation2 + $0x80] sm:$0xff] }
 0x346   :  { %v6877_v56 = vpack.c.bf16 %v2591_v63, %v2590_v51  ;;  %v4263_v51 = vld [vmem:[#allocation2 + $0x2d1] sm:$0xff]  ;;  %v4264_v63 = vld [vmem:[#allocation2 + $0x2d9] sm:$0xff] }
 0x348   :  { %7227 = vmatpush3.bf16.xpose.msk.msra.mxu1 %vm9042_vm5, %v10153_v35  ;;  %v4237_v35 = vld [vmem:[#allocation2 + $0x169] sm:$0xff] }
 0x349   :  { %7230 = vmatprep.subr.msk.bf16.mxu1 %vm9042_vm5, %v7228_v5  ;;  %v2608_v5 = vld [vmem:[#allocation2 + $0x150] sm:$0xff] }
 0x34c   :  { %6843 = vmatpush3.bf16.xpose.msk.msra.mxu0 %vm9042_vm5, %v10152_v27  ;;  %v2609_v27 = vld [vmem:[#allocation2 + $0x158] sm:$0xff] }
 0x34d   :  { %6846 = vmatprep.subr.msk.bf16.mxu0 %vm9042_vm5, %v9492_v59  ;;  %v2604_v59 = vld [vmem:[#allocation2 + $0x120] sm:$0xff] }
 0x34e   :  { %v6868_v58 = vpack.c.bf16 %v2605_v4, %v2604_v59  ;;  %v4260_v59 = vld [vmem:[#allocation2 + $0x2a9] sm:$0xff] }
 0x34f   :  { %v7282_v24 = vpack.c.bf16 %v4260_v59, %v4259_v62  ;;  %v4270_v62 = vld [vmem:[#allocation2 + $0x321] sm:$0xff] }
 0x350   :  { %7233 = vmatpush3.bf16.xpose.msk.msra.mxu1 %vm9042_vm5, %v10154_v36 }
 0x351   :  { %7236 = vmatprep.subr.msk.bf16.mxu1 %vm9042_vm5, %v7234_v17  ;;  %v7261_v17 = vpack.c.bf16 %v4220_v8, %v4219_v55  ;;  %v6907_v55 = vpack.c.bf16 %v2617_v9, %v2616_v40  ;;  %v2626_v40 = vld [vmem:[#allocation2 + $0x258] sm:$0xff]  ;;  %v4273_v9 = vld [vmem:[#allocation2 + $0x349] sm:$0xff] }
 0x354   :  { %6849 = vmatpush3.bf16.xpose.msk.msra.mxu0 %vm9042_vm5, %v9508_v45  ;;  %v6853_v45 = vpack.c.bf16 %v2583_v1, %v2582_v33  ;;  %v6880_v33 = vpack.c.bf16 %v2609_v27, %v2608_v5  ;;  %v7264_v1 = vpack.c.bf16 %v4238_v60, %v4237_v35  ;;  %v7294_v27 = vpack.c.bf16 %v4264_v63, %v4263_v51  ;;  %v2618_v35 = vld [vmem:[#allocation2 + $0x1f8] sm:$0xff]  ;;  %v2619_v60 = vld [vmem:[#allocation2 + $0x200] sm:$0xff] }
 0x355   :  { %6852 = vmatprep.subr.msk.bf16.mxu0 %vm9042_vm5, %v9221_v2  ;;  %v6856_v2 = vpack.c.bf16 %v2601_v28, %v2600_v16  ;;  %v4221_v16 = vld [vmem:[#allocation2 + $0xa9] sm:$0xff]  ;;  %v4222_v28 = vld [vmem:[#allocation2 + $0xb1] sm:$0xff] }
 0x357   :  { %6311 = vmatmul.mubr.msk.f32.vlgmr.msra.gmra.mrb[2].mxu1 %vm680_vm2, %v9548_v23  ;;  %v4217_v23 = vld [vmem:[#allocation2 + $0x79] sm:$0xff] }
 0x358   :  { %7239 = vmatpush3.bf16.xpose.msk.msra.mxu1 %vm9042_vm5, %v7237_v54  ;;  %6344 = vmatprep.mubr.msk.f32.mxu1 %vm680_vm2, %v9764_v25  ;;  %v7255_v48 = vpack.c.bf16 %v4218_v47, %v4217_v23  ;;  %v4240_v54 = vld [vmem:[#allocation2 + $0x189] sm:$0xff]  ;;  %v4262_v23 = vld [vmem:[#allocation2 + $0x2c1] sm:$0xff] }
 0x359   :  { %7242 = vmatprep.subr.msk.bf16.mxu1 %vm9042_vm5, %v7240_v31  ;;  %v7267_v31 = vpack.c.bf16 %v4222_v28, %v4221_v16  ;;  %v6913_v16 = vpack.c.bf16 %v2619_v60, %v2618_v35  ;;  %v4258_v35 = vld [vmem:[#allocation2 + $0x291] sm:$0xff] }
 0x35a   :  { %v4634_v60 = vld [vmem:[#allocation2 + $0xf2] sm:$0xff] }
 0x35b   :  { %6039 = vmatmul.mubr.msk.f32.vlgmr.msra.gmra.mrb[66].mxu0 %vm680_vm2, %v9543_v50  ;;  %v2589_v50 = vld [vmem:[#allocation2 + $0x68] sm:$0xff] }
 0x35c   :  { %6855 = vmatpush3.bf16.xpose.msk.msra.mxu0 %vm9042_vm5, %v6853_v45  ;;  %6072 = vmatprep.mubr.msk.f32.mxu0 %vm680_vm2, %v9759_v22  ;;  %v6871_v21 = vpack.c.bf16 %v2589_v50, %v2588_v26  ;;  %v4239_v45 = vld [vmem:[#allocation2 + $0x181] sm:$0xff]  ;;  %v4261_v50 = vld [vmem:[#allocation2 + $0x2b9] sm:$0xff] }
 0x35d   :  { %6858 = vmatprep.subr.msk.bf16.mxu0 %vm9042_vm5, %v6856_v2  ;;  %v6883_v2 = vpack.c.bf16 %v2593_v18, %v2592_v3  ;;  %v7270_v61 = vpack.c.bf16 %v4240_v54, %v4239_v45  ;;  %v2633_v26 = vld [vmem:[#allocation2 + $0x2a8] sm:$0xff]  ;;  %v7288_v53 = vpack.c.bf16 %v4262_v23, %v4261_v50  ;;  %v4266_v18 = vld [vmem:[#allocation2 + $0x2f1] sm:$0xff]  ;;  %v2643_v50 = vld [vmem:[#allocation2 + $0x320] sm:$0xff] }
 0x35e   :  { %v4265_v3 = vld [vmem:[#allocation2 + $0x2e9] sm:$0xff]  ;;  %v2621_v54 = vld [vmem:[#allocation2 + $0x218] sm:$0xff] }
 0x35f   :  { %v7300_v42 = vpack.c.bf16 %v4266_v18, %v4265_v3  ;;  %v2620_v45 = vld [vmem:[#allocation2 + $0x210] sm:$0xff]  ;;  %v4272_v23 = vld [vmem:[#allocation2 + $0x339] sm:$0xff] }
 0x360   :  { %7245 = vmatpush3.bf16.xpose.msk.msra.mxu1 %vm9042_vm5, %v7243_v7  ;;  %v6889_v7 = vpack.c.bf16 %v2595_v44, %v2594_v19  ;;  %v4267_v19 = vld [vmem:[#allocation2 + $0x301] sm:$0xff]  ;;  %v4636_v18 = vld [vmem:[#allocation2 + $0x10a] sm:$0xff] }
 0x361   :  { %7248 = vmatprep.subr.msk.bf16.mxu1 %vm9042_vm5, %v7246_v46  ;;  %v2596_v46 = vld [vmem:[#allocation2 + $0xc0] sm:$0xff] }
 0x362   :  { %v6895_v4 = vpack.c.bf16 %v2597_v32, %v2596_v46  ;;  %v4252_v46 = vld [vmem:[#allocation2 + $0x249] sm:$0xff]  ;;  %v2640_v32 = vld [vmem:[#allocation2 + $0x300] sm:$0xff] }
 0x363   :  { %v4619_v3 = vld [vmem:[#allocation2 + $0x3a] sm:$0xff] }
 0x364   :  { %6861 = vmatpush3.bf16.xpose.msk.msra.mxu0 %vm9042_vm5, %v6859_v10  ;;  %v7276_v10 = vpack.c.bf16 %v4242_v38, %v4241_v15  ;;  %v4268_v15 = vld [vmem:[#allocation2 + $0x309] sm:$0xff]  ;;  %v6919_v38 = vpack.c.bf16 %v2621_v54, %v2620_v45  ;;  %v4621_v54 = vld [vmem:[#allocation2 + $0x52] sm:$0xff] }
 0x365   :  { %6864 = vmatprep.subr.msk.bf16.mxu0 %vm9042_vm5, %v6862_v6  ;;  %v7273_v6 = vpack.c.bf16 %v4224_v14, %v4223_v34  ;;  %v7306_v14 = vpack.c.bf16 %v4268_v15, %v4267_v19  ;;  %v4620_v45 = vld [vmem:[#allocation2 + $0x4a] sm:$0xff]  ;;  %v4640_v19 = vld [vmem:[#allocation2 + $0x13a] sm:$0xff]  ;;  %v4641_v15 = vld [vmem:[#allocation2 + $0x142] sm:$0xff] }
 0x368   :  { %7251 = vmatpush3.bf16.xpose.msk.msra.mxu1 %vm9042_vm5, %v7249_v11  ;;  %v4243_v11 = vld [vmem:[#allocation2 + $0x1e1] sm:$0xff] }
 0x369   :  { %7254 = vmatprep.subr.msk.bf16.mxu1 %vm9042_vm5, %v7252_v29  ;;  %v2632_v29 = vld [vmem:[#allocation2 + $0x2a0] sm:$0xff] }
 0x36c   :  { %6867 = vmatpush3.bf16.xpose.msk.msra.mxu0 %vm9042_vm5, %v6865_v13  ;;  %v2615_v13 = vld [vmem:[#allocation2 + $0x1d0] sm:$0xff] }
 0x36d   :  { %6870 = vmatprep.subr.msk.bf16.mxu0 %vm9042_vm5, %v6868_v58  ;;  %v4244_v58 = vld [vmem:[#allocation2 + $0x1e9] sm:$0xff] }
 0x36e   :  { %v7285_v12 = vpack.c.bf16 %v4244_v58, %v4243_v11  ;;  %v2625_v11 = vld [vmem:[#allocation2 + $0x248] sm:$0xff]  ;;  %v4253_v58 = vld [vmem:[#allocation2 + $0x259] sm:$0xff] }
 0x370   :  { %7257 = vmatpush3.bf16.xpose.msk.msra.mxu1 %vm9042_vm5, %v7255_v48  ;;  %v4246_v48 = vld [vmem:[#allocation2 + $0x201] sm:$0xff] }
 0x371   :  { %7260 = vmatprep.subr.msk.bf16.mxu1 %vm9042_vm5, %v7258_v37  ;;  %v2635_v37 = vld [vmem:[#allocation2 + $0x2c0] sm:$0xff] }
 0x374   :  { %6873 = vmatpush3.bf16.xpose.msk.msra.mxu0 %vm9042_vm5, %v6871_v21  ;;  %v4245_v21 = vld [vmem:[#allocation2 + $0x1f9] sm:$0xff] }
 0x375   :  { %6876 = vmatprep.subr.msk.bf16.mxu0 %vm9042_vm5, %v6874_v52  ;;  %v2634_v52 = vld [vmem:[#allocation2 + $0x2b8] sm:$0xff]  ;;  %v7291_v8 = vpack.c.bf16 %v4246_v48, %v4245_v21  ;;  %v2627_v48 = vld [vmem:[#allocation2 + $0x260] sm:$0xff] }
 0x376   :  { %v6910_v5 = vpack.c.bf16 %v2635_v37, %v2634_v52  ;;  %v4274_v21 = vld [vmem:[#allocation2 + $0x351] sm:$0xff]  ;;  %v4256_v37 = vld [vmem:[#allocation2 + $0x279] sm:$0xff]  ;;  %v6937_v63 = vpack.c.bf16 %v2627_v48, %v2626_v40  ;;  %v4666_v40 = vld [vmem:[#allocation2 + $0x2a2] sm:$0xff] }
 0x377   :  { %v4255_v52 = vld [vmem:[#allocation2 + $0x271] sm:$0xff]  ;;  %v7324_v51 = vpack.c.bf16 %v4274_v21, %v4273_v9 }
 0x378   :  { %7263 = vmatpush3.bf16.xpose.msk.msra.mxu1 %vm9042_vm5, %v7261_v17  ;;  %v4248_v17 = vld [vmem:[#allocation2 + $0x219] sm:$0xff]  ;;  %v4667_v9 = vld [vmem:[#allocation2 + $0x2aa] sm:$0xff] }
 0x379   :  { %7266 = vmatprep.subr.msk.bf16.mxu1 %vm9042_vm5, %v7264_v1  ;;  %v2637_v1 = vld [vmem:[#allocation2 + $0x2d8] sm:$0xff]  ;;  %v7378_v48 = vpack.c.bf16 %v4667_v9, %v4666_v40 }
 0x37c   :  { %6879 = vmatpush3.bf16.xpose.msk.msra.mxu0 %vm9042_vm5, %v6877_v56  ;;  %v4247_v56 = vld [vmem:[#allocation2 + $0x211] sm:$0xff] }
 0x37d   :  { %6882 = vmatprep.subr.msk.bf16.mxu0 %vm9042_vm5, %v6880_v33  ;;  %v2636_v33 = vld [vmem:[#allocation2 + $0x2d0] sm:$0xff]  ;;  %v7297_v28 = vpack.c.bf16 %v4248_v17, %v4247_v56  ;;  %v4635_v56 = vld [vmem:[#allocation2 + $0xfa] sm:$0xff] }
 0x37e   :  { %v6916_v57 = vpack.c.bf16 %v2637_v1, %v2636_v33  ;;  %v7330_v1 = vpack.c.bf16 %v4635_v56, %v4634_v60  ;;  %v4671_v60 = vld [vmem:[#allocation2 + $0x2da] sm:$0xff] }
 0x380   :  { %7269 = vmatpush3.bf16.xpose.msk.msra.mxu1 %vm9042_vm5, %v7267_v31  ;;  %v4250_v31 = vld [vmem:[#allocation2 + $0x231] sm:$0xff] }
 0x381   :  { %7272 = vmatprep.subr.msk.bf16.mxu1 %vm9042_vm5, %v7270_v61  ;;  %v2639_v61 = vld [vmem:[#allocation2 + $0x2f0] sm:$0xff] }
 0x384   :  { %6885 = vmatpush3.bf16.xpose.msk.msra.mxu0 %vm9042_vm5, %v6883_v2  ;;  %v4249_v2 = vld [vmem:[#allocation2 + $0x229] sm:$0xff] }
 0x385   :  { %6888 = vmatprep.subr.msk.bf16.mxu0 %vm9042_vm5, %v6886_v39  ;;  %v2638_v39 = vld [vmem:[#allocation2 + $0x2e8] sm:$0xff]  ;;  %v7303_v44 = vpack.c.bf16 %v4250_v31, %v4249_v2 }
 0x386   :  { %v6922_v34 = vpack.c.bf16 %v2639_v61, %v2638_v39  ;;  %v4638_v2 = vld [vmem:[#allocation2 + $0x122] sm:$0xff]  ;;  %v4639_v31 = vld [vmem:[#allocation2 + $0x12a] sm:$0xff]  ;;  %v7339_v39 = vpack.c.bf16 %v4621_v54, %v4620_v45 }
 0x387   :  { %v7342_v61 = vpack.c.bf16 %v4639_v31, %v4638_v2  ;;  %v4674_v45 = vld [vmem:[#allocation2 + $0x302] sm:$0xff]  ;;  %v4675_v54 = vld [vmem:[#allocation2 + $0x30a] sm:$0xff] }
 0x388   :  { %7275 = vmatpush3.bf16.xpose.msk.msra.mxu1 %vm9042_vm5, %v7273_v6  ;;  %v4251_v6 = vld [vmem:[#allocation2 + $0x241] sm:$0xff]  ;;  %v7402_v31 = vpack.c.bf16 %v4675_v54, %v4674_v45 }
 0x389   :  { %7278 = vmatprep.subr.msk.bf16.mxu1 %vm9042_vm5, %v7276_v10  ;;  %v2622_v10 = vld [vmem:[#allocation2 + $0x228] sm:$0xff] }
 0x38c   :  { %6891 = vmatpush3.bf16.xpose.msk.msra.mxu0 %vm9042_vm5, %v6889_v7  ;;  %v2623_v7 = vld [vmem:[#allocation2 + $0x230] sm:$0xff] }
 0x38d   :  { %6894 = vmatprep.subr.msk.bf16.mxu0 %vm9042_vm5, %v9613_v30  ;;  %v2614_v30 = vld [vmem:[#allocation2 + $0x1c8] sm:$0xff]  ;;  %v6925_v59 = vpack.c.bf16 %v2623_v7, %v2622_v10  ;;  %v4642_v10 = vld [vmem:[#allocation2 + $0x152] sm:$0xff]  ;;  %v4643_v7 = vld [vmem:[#allocation2 + $0x15a] sm:$0xff] }
 0x38e   :  { %v6901_v47 = vpack.c.bf16 %v2615_v13, %v2614_v30  ;;  %v2624_v30 = vld [vmem:[#allocation2 + $0x240] sm:$0xff]  ;;  %v4271_v13 = vld [vmem:[#allocation2 + $0x331] sm:$0xff] }
 0x390   :  { %7281 = vmatpush3.bf16.xpose.msk.msra.mxu1 %vm9042_vm5, %v7279_v0  ;;  %v6928_v0 = vpack.c.bf16 %v2641_v43, %v2640_v32  ;;  %v4626_v32 = vld [vmem:[#allocation2 + $0x92] sm:$0xff]  ;;  %v4627_v43 = vld [vmem:[#allocation2 + $0x9a] sm:$0xff] }
 0x391   :  { %7284 = vmatprep.subr.msk.bf16.mxu1 %vm9042_vm5, %v7282_v24  ;;  %v7312_v24 = vpack.c.bf16 %v4270_v62, %v4269_v41  ;;  %v4644_v41 = vld [vmem:[#allocation2 + $0x16a] sm:$0xff]  ;;  %v4645_v62 = vld [vmem:[#allocation2 + $0x172] sm:$0xff] }
 0x394   :  { %6897 = vmatpush3.bf16.xpose.msk.msra.mxu0 %vm9042_vm5, %v6895_v4  ;;  %v7309_v4 = vpack.c.bf16 %v4252_v46, %v4251_v6  ;;  %v7354_v46 = vpack.c.bf16 %v4643_v7, %v4642_v10 }
 0x395   :  { %6900 = vmatprep.subr.msk.bf16.mxu0 %vm9042_vm5, %v10154_v36  ;;  %v6904_v36 = vpack.c.bf16 %v2633_v26, %v2632_v29  ;;  %v4254_v29 = vld [vmem:[#allocation2 + $0x261] sm:$0xff]  ;;  %v2642_v26 = vld [vmem:[#allocation2 + $0x318] sm:$0xff] }
 0x397   :  { %6345 = vmatmul.mubr.msk.f32.vlgmr.msra.gmra.mrb[0].mxu1 %vm680_vm2, %v9764_v25 }
 0x398   :  { %7287 = vmatpush3.bf16.xpose.msk.msra.mxu1 %vm9042_vm5, %v7285_v12  ;;  %6378 = vmatprep.mubr.msk.f32.mxu1 %vm680_vm2, %v9764_v25  ;;  %v7315_v12 = vpack.c.bf16 %v4254_v29, %v4253_v58  ;;  %v4648_v29 = vld [vmem:[#allocation2 + $0x19a] sm:$0xff] }
 0x399   :  { %7290 = vmatprep.subr.msk.bf16.mxu1 %vm9042_vm5, %v7288_v53  ;;  %v7318_v53 = vpack.c.bf16 %v4272_v23, %v4271_v13  ;;  %v4647_v13 = vld [vmem:[#allocation2 + $0x18a] sm:$0xff] }
 0x39a   :  { %v4631_v23 = vld [vmem:[#allocation2 + $0xca] sm:$0xff] }
 0x39b   :  { %6073 = vmatmul.mubr.msk.f32.vlgmr.msra.gmra.mrb[64].mxu0 %vm680_vm2, %v9759_v22 }
 0x39c   :  { %6903 = vmatpush3.bf16.xpose.msk.msra.mxu0 %vm9042_vm5, %v6901_v47  ;;  %6106 = vmatprep.mubr.msk.f32.mxu0 %vm680_vm2, %v9759_v22  ;;  %v6931_v47 = vpack.c.bf16 %v2625_v11, %v2624_v30  ;;  %v4646_v30 = vld [vmem:[#allocation2 + $0x182] sm:$0xff] }
 0x39d   :  { %6906 = vmatprep.subr.msk.bf16.mxu0 %vm9042_vm5, %v6904_v36  ;;  %v6934_v36 = vpack.c.bf16 %v2643_v50, %v2642_v26  ;;  %v7366_v58 = vpack.c.bf16 %v4647_v13, %v4646_v30  ;;  %v4649_v26 = vld [vmem:[#allocation2 + $0x1a2] sm:$0xff] }
 0x39e   :  { %v4630_v50 = vld [vmem:[#allocation2 + $0xc2] sm:$0xff] }
 0x3a0   :  { %7293 = vmatpush3.bf16.xpose.msk.msra.mxu1 %vm9042_vm5, %v7291_v8  ;;  %v2628_v8 = vld [vmem:[#allocation2 + $0x270] sm:$0xff] }
 0x3a1   :  { %7296 = vmatprep.subr.msk.bf16.mxu1 %vm9042_vm5, %v7294_v27  ;;  %v4257_v27 = vld [vmem:[#allocation2 + $0x289] sm:$0xff] }
 0x3a2   :  { %v7327_v33 = vpack.c.bf16 %v4258_v35, %v4257_v27  ;;  %v4653_v27 = vld [vmem:[#allocation2 + $0x202] sm:$0xff]  ;;  %v4670_v35 = vld [vmem:[#allocation2 + $0x2d2] sm:$0xff] }
 0x3a4   :  { %6909 = vmatpush3.bf16.xpose.msk.msra.mxu0 %vm9042_vm5, %v6907_v55  ;;  %v7321_v55 = vpack.c.bf16 %v4256_v37, %v4255_v52  ;;  %v4650_v52 = vld [vmem:[#allocation2 + $0x1e2] sm:$0xff]  ;;  %v4651_v37 = vld [vmem:[#allocation2 + $0x1ea] sm:$0xff] }
 0x3a5   :  { %6912 = vmatprep.subr.msk.bf16.mxu0 %vm9042_vm5, %v6910_v5  ;;  %v2629_v5 = vld [vmem:[#allocation2 + $0x278] sm:$0xff] }
 0x3a6   :  { %v6943_v17 = vpack.c.bf16 %v2629_v5, %v2628_v8  ;;  %v4652_v5 = vld [vmem:[#allocation2 + $0x1fa] sm:$0xff] }
 0x3a7   :  { %v7387_v56 = vpack.c.bf16 %v4653_v27, %v4652_v5 }
 0x3a8   :  { %7299 = vmatpush3.bf16.xpose.msk.msra.mxu1 %vm9042_vm5, %v7297_v28  ;;  %v9910_v28 = vld [vmem:[%s10014_s3 + $0x20] sm:$0xf] }
 0x3a9   :  { %7302 = vmatprep.subr.msk.bf16.mxu1 %vm9042_vm5, %v7300_v42 }
 0x3ac   :  { %6915 = vmatpush3.bf16.xpose.msk.msra.mxu0 %vm9042_vm5, %v6913_v16  ;;  %v4637_v16 = vld [vmem:[#allocation2 + $0x112] sm:$0xff] }
 0x3ad   :  { %6918 = vmatprep.subr.msk.bf16.mxu0 %vm9042_vm5, %v6916_v57  ;;  %v7336_v42 = vpack.c.bf16 %v4637_v16, %v4636_v18 }
 0x3b0   :  { %7305 = vmatpush3.bf16.xpose.msk.msra.mxu1 %vm9042_vm5, %v7303_v44  ;;  %v7348_v44 = vpack.c.bf16 %v4641_v15, %v4640_v19 }
 0x3b1   :  { %7308 = vmatprep.subr.msk.bf16.mxu1 %vm9042_vm5, %v7306_v14  ;;  %v4625_v14 = vld [vmem:[#allocation2 + $0x82] sm:$0xff] }
 0x3b4   :  { %6921 = vmatpush3.bf16.xpose.msk.msra.mxu0 %vm9042_vm5, %v6919_v38 }
 0x3b5   :  { %6924 = vmatprep.subr.msk.bf16.mxu0 %vm9042_vm5, %v6922_v34  ;;  %v4624_v34 = vld [vmem:[#allocation2 + $0x7a] sm:$0xff] }
 0x3b6   :  { %v7351_v6 = vpack.c.bf16 %v4625_v14, %v4624_v34  ;;  %v4678_v34 = vld [vmem:[#allocation2 + $0x332] sm:$0xff]  ;;  %v4679_v14 = vld [vmem:[#allocation2 + $0x33a] sm:$0xff] }
 0x3b7   :  { %v7414_v7 = vpack.c.bf16 %v4679_v14, %v4678_v34 }
 0x3b8   :  { %7311 = vmatpush3.bf16.xpose.msk.msra.mxu1 %vm9042_vm5, %v7309_v4  ;;  %v7360_v4 = vpack.c.bf16 %v4645_v62, %v4644_v41 }
 0x3b9   :  { %7314 = vmatprep.subr.msk.bf16.mxu1 %vm9042_vm5, %v7312_v24  ;;  %v4629_v24 = vld [vmem:[#allocation2 + $0xb2] sm:$0xff] }
 0x3bc   :  { %6927 = vmatpush3.bf16.xpose.msk.msra.mxu0 %vm9042_vm5, %v6925_v59  ;;  %v7357_v59 = vpack.c.bf16 %v4627_v43, %v4626_v32  ;;  %v4662_v32 = vld [vmem:[#allocation2 + $0x272] sm:$0xff]  ;;  %v4663_v43 = vld [vmem:[#allocation2 + $0x27a] sm:$0xff] }
 0x3bd   :  { %6930 = vmatprep.subr.msk.bf16.mxu0 %vm9042_vm5, %v6928_v0  ;;  %v4628_v0 = vld [vmem:[#allocation2 + $0xaa] sm:$0xff]  ;;  %v7417_v62 = vpack.c.bf16 %v4663_v43, %v4662_v32  ;;  %v5080_v43 = vld [vmem:[%s10019_s1] sm:$0xff] }
 0x3be   :  { %v7363_v11 = vpack.c.bf16 %v4629_v24, %v4628_v0 }
 0x3c0   :  { %7317 = vmatpush3.bf16.xpose.msk.msra.mxu1 %vm9042_vm5, %v7315_v12  ;;  %v7369_v12 = vpack.c.bf16 %v4631_v23, %v4630_v50 }
 0x3c1   :  { %7320 = vmatprep.subr.msk.bf16.mxu1 %vm9042_vm5, %v7318_v53  ;;  %v4633_v53 = vld [vmem:[#allocation2 + $0xe2] sm:$0xff] }
 0x3c4   :  { %6933 = vmatpush3.bf16.xpose.msk.msra.mxu0 %vm9042_vm5, %v6931_v47  ;;  %v7372_v47 = vpack.c.bf16 %v4649_v26, %v4648_v29 }
 0x3c5   :  { %6936 = vmatprep.subr.msk.bf16.mxu0 %vm9042_vm5, %v6934_v36  ;;  %v4632_v36 = vld [vmem:[#allocation2 + $0xda] sm:$0xff] }
 0x3c6   :  { %v7375_v21 = vpack.c.bf16 %v4633_v53, %v4632_v36 }
 0x3c8   :  { %7323 = vmatpush3.bf16.xpose.msk.msra.mxu1 %vm9042_vm5, %v7321_v55  ;;  %v7381_v55 = vpack.c.bf16 %v4651_v37, %v4650_v52 }
 0x3c9   :  { %7326 = vmatprep.subr.msk.bf16.mxu1 %vm9042_vm5, %v7324_v51  ;;  %v4668_v51 = vld [vmem:[#allocation2 + $0x2ba] sm:$0xff] }
 0x3cc   :  { %6939 = vmatpush3.bf16.xpose.msk.msra.mxu0 %vm9042_vm5, %v6937_v63  ;;  %v4669_v63 = vld [vmem:[#allocation2 + $0x2c2] sm:$0xff] }
 0x3cd   :  { %6942 = vmatprep.subr.msk.bf16.mxu0 %vm9042_vm5, %v9716_v49  ;;  %v4618_v49 = vld [vmem:[#allocation2 + $0x32] sm:$0xff]  ;;  %v7384_v8 = vpack.c.bf16 %v4669_v63, %v4668_v51 }
 0x3ce   :  { %v7333_v57 = vpack.c.bf16 %v4619_v3, %v4618_v49  ;;  %v4672_v49 = vld [vmem:[#allocation2 + $0x2ea] sm:$0xff]  ;;  %v4673_v3 = vld [vmem:[#allocation2 + $0x2f2] sm:$0xff] }
 0x3cf   :  { %v7396_v16 = vpack.c.bf16 %v4673_v3, %v4672_v49 }
 0x3d0   :  { %7329 = vmatpush3.bf16.xpose.msk.msra.mxu1 %vm9042_vm5, %v7327_v33  ;;  %v4654_v33 = vld [vmem:[#allocation2 + $0x212] sm:$0xff] }
 0x3d1   :  { %7332 = vmatprep.subr.msk.bf16.mxu1 %vm9042_vm5, %v7330_v1  ;;  %v4655_v1 = vld [vmem:[#allocation2 + $0x21a] sm:$0xff] }
 0x3d2   :  { %v7393_v18 = vpack.c.bf16 %v4655_v1, %v4654_v33 }
 0x3d4   :  { %6945 = vmatpush3.bf16.xpose.msk.msra.mxu0 %vm9042_vm5, %v6943_v17  ;;  %v7390_v17 = vpack.c.bf16 %v4671_v60, %v4670_v35 }
 0x3d7   :  { %6379 = vmatmul.mubr.msk.f32.vlgmr.msra.gmra.mrb[2].mxu1 %vm680_vm2, %v9764_v25  ;;  %v4623_v25 = vld [vmem:[#allocation2 + $0x6a] sm:$0xff] }
 0x3d8   :  { %7335 = vmatpush3.bf16.xpose.msk.msra.mxu1 %vm9042_vm5, %v7333_v57  ;;  %6412 = vmatprep.mubr.msk.f32.mxu1 %vm680_vm2, %v9910_v28  ;;  %v4656_v57 = vld [vmem:[#allocation2 + $0x22a] sm:$0xff] }
 0x3d9   :  { %7338 = vmatprep.subr.msk.bf16.mxu1 %vm9042_vm5, %v7336_v42  ;;  %v4657_v42 = vld [vmem:[#allocation2 + $0x232] sm:$0xff] }
 0x3da   :  { %v7399_v2 = vpack.c.bf16 %v4657_v42, %v4656_v57  ;;  %v5051_v42 = vld [vmem:[%s10017_s6] sm:$0xf] }
 0x3db   :  { %6107 = vmatmul.mubr.msk.f32.vlgmr.msra.gmra.mrb[66].mxu0 %vm680_vm2, %v9759_v22  ;;  %v4622_v22 = vld [vmem:[#allocation2 + $0x62] sm:$0xff] }
 0x3dc   :  { %v7345_v38 = vpack.c.bf16 %v4623_v25, %v4622_v22  ;;  %v4676_v22 = vld [vmem:[#allocation2 + $0x31a] sm:$0xff]  ;;  %v4677_v25 = vld [vmem:[#allocation2 + $0x322] sm:$0xff] }
 0x3dd   :  { %v7408_v15 = vpack.c.bf16 %v4677_v25, %v4676_v22 }
 0x3e0   :  { %7341 = vmatpush3.bf16.xpose.msk.msra.mxu1 %vm9042_vm5, %v7339_v39  ;;  %v4658_v39 = vld [vmem:[#allocation2 + $0x242] sm:$0xff] }
 0x3e1   :  { %7344 = vmatprep.subr.msk.bf16.mxu1 %vm9042_vm5, %v7342_v61  ;;  %v4659_v61 = vld [vmem:[#allocation2 + $0x24a] sm:$0xff] }
 0x3e2   :  { %v7405_v19 = vpack.c.bf16 %v4659_v61, %v4658_v39 }
 0x3e8   :  { %7347 = vmatpush3.bf16.xpose.msk.msra.mxu1 %vm9042_vm5, %v7345_v38  ;;  %v4660_v38 = vld [vmem:[#allocation2 + $0x25a] sm:$0xff] }
 0x3e9   :  { %7350 = vmatprep.subr.msk.bf16.mxu1 %vm9042_vm5, %v7348_v44  ;;  %v4661_v44 = vld [vmem:[#allocation2 + $0x262] sm:$0xff] }
 0x3ea   :  { %v7411_v10 = vpack.c.bf16 %v4661_v44, %v4660_v38 }
 0x3f0   :  { %7353 = vmatpush3.bf16.xpose.msk.msra.mxu1 %vm9042_vm5, %v7351_v6  ;;  %v4680_v6 = vld [vmem:[#allocation2 + $0x34a] sm:$0xff] }
 0x3f1   :  { %7356 = vmatprep.subr.msk.bf16.mxu1 %vm9042_vm5, %v7354_v46  ;;  %v4681_v46 = vld [vmem:[#allocation2 + $0x352] sm:$0xff] }
 0x3f2   :  { %v7420_v41 = vpack.c.bf16 %v4681_v46, %v4680_v6 }
 0x3f8   :  { %7359 = vmatpush3.bf16.xpose.msk.msra.mxu1 %vm9042_vm5, %v7357_v59  ;;  %v4664_v59 = vld [vmem:[#allocation2 + $0x28a] sm:$0xff] }
 0x3f9   :  { %7362 = vmatprep.subr.msk.bf16.mxu1 %vm9042_vm5, %v7360_v4  ;;  %v4665_v4 = vld [vmem:[#allocation2 + $0x292] sm:$0xff] }
 0x3fa   :  { %v7423_v0 = vpack.c.bf16 %v4665_v4, %v4664_v59 }
 0x400   :  { %7365 = vmatpush3.bf16.xpose.msk.msra.mxu1 %vm9042_vm5, %v7363_v11 }
 0x401   :  { %7368 = vmatprep.subr.msk.bf16.mxu1 %vm9042_vm5, %v7366_v58 }
 0x408   :  { %7371 = vmatpush3.bf16.xpose.msk.msra.mxu1 %vm9042_vm5, %v7369_v12 }
 0x409   :  { %7374 = vmatprep.subr.msk.bf16.mxu1 %vm9042_vm5, %v7372_v47 }
 0x410   :  { %7377 = vmatpush3.bf16.xpose.msk.msra.mxu1 %vm9042_vm5, %v7375_v21 }
 0x411   :  { %7380 = vmatprep.subr.msk.bf16.mxu1 %vm9042_vm5, %v7378_v48 }
 0x417   :  { %6413 = vmatmul.mubr.msk.f32.vlgmr.msra.gmra.mrb[0].mxu1 %vm680_vm2, %v9910_v28 }
 0x418   :  { %7383 = vmatpush3.bf16.xpose.msk.msra.mxu1 %vm9042_vm5, %v7381_v55  ;;  %6446 = vmatprep.mubr.msk.f32.mxu1 %vm680_vm2, %v9910_v28 }
 0x419   :  { %7386 = vmatprep.subr.msk.bf16.mxu1 %vm9042_vm5, %v7384_v8 }
 0x420   :  { %7389 = vmatpush3.bf16.xpose.msk.msra.mxu1 %vm9042_vm5, %v7387_v56 }
 0x421   :  { %7392 = vmatprep.subr.msk.bf16.mxu1 %vm9042_vm5, %v7390_v17  ;;  %v7467_v17 = vmov 0  }
 0x422   :  { %7460 = vset.pattern.permute.xlu1 %v7467_v17  ;;  %7461 = vset.pattern.permute.xlu0 %v7467_v17 }
 0x428   :  { %7395 = vmatpush3.bf16.xpose.msk.msra.mxu1 %vm9042_vm5, %v7393_v18 }
 0x429   :  { %7398 = vmatprep.subr.msk.bf16.mxu1 %vm9042_vm5, %v7396_v16 }
 0x430   :  { %7401 = vmatpush3.bf16.xpose.msk.msra.mxu1 %vm9042_vm5, %v7399_v2  ;;  %v5055_v2 = vld [vmem:[%s10018_s7] sm:$0xf] }
 0x431   :  { %7404 = vmatprep.subr.msk.bf16.mxu1 %vm9042_vm5, %v7402_v31 }
 0x438   :  { %7407 = vmatpush3.bf16.xpose.msk.msra.mxu1 %vm9042_vm5, %v7405_v19 }
 0x439   :  { %7410 = vmatprep.subr.msk.bf16.mxu1 %vm9042_vm5, %v7408_v15 }
 0x440   :  { %7413 = vmatpush3.bf16.xpose.msk.msra.mxu1 %vm9042_vm5, %v7411_v10 }
 0x441   :  { %7416 = vmatprep.subr.msk.bf16.mxu1 %vm9042_vm5, %v7414_v7 }
 0x448   :  { %7419 = vmatpush3.bf16.xpose.msk.msra.mxu1 %vm9042_vm5, %v7417_v62 }
 0x449   :  { %7422 = vmatprep.subr.msk.bf16.mxu1 %vm9042_vm5, %v7420_v41  ;;  %v5081_v41 = vld [vmem:[%s10019_s1 + $0x8] sm:$0xff] }
 0x450   :  { %7425 = vmatpush3.bf16.xpose.msk.msra.mxu1 %vm9042_vm5, %v7423_v0 }
 0x457   :  { %6447 = vmatmul.mubr.msk.f32.vlgmr.msra.gmra.mrb[2].mxu1 %vm680_vm2, %v9910_v28 }
 0x46e   :  { %v2909_v24 = vpop.f32.mrb[64].mxu0 }
 0x46f   :  { %v2911_v30 = vpop.f32.mrb[65].mxu0 }
 0x4ae   :  { %v2980_v13 = vpop.f32.mrb[66].mxu0 }
 0x4af   :  { %v2982_v11 = vpop.f32.mrb[67].mxu0 }
 0x4ea   :  { %v4945_v58 = vpop.f32.mrb[0].mxu1 }
 0x4eb   :  { %v7426_v29 = vadd.f32 %v4945_v58, %v2909_v24  ;;  %v4947_v26 = vpop.f32.mrb[1].mxu1 }
 0x4ec   :  { %v7427_v50 = vadd.f32 %v4947_v26, %v2911_v30 }
 0x4ed   :  { %v5035_v23 = vmul.f32 %v7426_v29, %v7426_v29  ;;  %v5025_v12 = vsel %vm291_vm1, %v7426_v29, 0.0 }
 0x4ee   :  { %v5036_v47 = vmul.f32 %v7427_v50, %v7427_v50  ;;  %v5026_v36 = vsel %vm291_vm1, %v7427_v50, 0.0 }
 0x4ef   :  { %v5039_v9 = vsel %vm291_vm1, %v5035_v23, 0.0  ;;  %v5027_v48 = vadd.f32 %v5026_v36, %v5025_v12 }
 0x4f0   :  { %v5040_v28 = vsel %vm291_vm1, %v5036_v47, 0.0 }
 0x4f1   :  { %v5041_v8 = vadd.f32 %v5040_v28, %v5039_v9 }
 0x52a   :  { %v5016_v53 = vpop.f32.mrb[2].mxu1 }
 0x52b   :  { %v7428_v20 = vadd.f32 %v5016_v53, %v2980_v13  ;;  %v5018_v40 = vpop.f32.mrb[3].mxu1 }
 0x52c   :  { %v7429_v21 = vadd.f32 %v5018_v40, %v2982_v11 }
 0x52d   :  { %v5037_v52 = vmul.f32 %v7428_v20, %v7428_v20  ;;  %v5028_v37 = vsel %vm291_vm1, %v7428_v20, 0.0 }
 0x52e   :  { %v5029_v51 = vadd.f32 %v5028_v37, %v5027_v48  ;;  %v5030_v63 = vsel %vm291_vm1, %v7429_v21, 0.0  ;;  %v5038_v55 = vmul.f32 %v7429_v21, %v7429_v21 }
 0x52f   :  { %v5042_v5 = vsel %vm291_vm1, %v5037_v52, 0.0 }
 0x530   :  { %v5031_v27 = vadd.f32 %v5030_v63, %v5029_v51  ;;  %v5043_v35 = vadd.f32 %v5042_v5, %v5041_v8  ;;  %v5044_v60 = vsel %vm291_vm1, %v5038_v55, 0.0 }
 0x532   :  { %5032 = vadd.xlane.f32.xlu0 %v5031_v27  ;;  %v5045_v56 = vadd.f32 %v5044_v60, %v5043_v35 }
 0x536   :  { %5046 = vadd.xlane.f32.xlu0 %v5045_v56 }
 0x5bf   :  { %v5033_v33 = vpop.xlane.xlu0 %5032 }
 0x5c0   :  { %v5034_v1 = vmul.f32 0.001953125, %v5033_v33 }
 0x5c2   :  { %v5049_v3 = vmul.f32 %v5034_v1, %v5034_v1 }
 0x5c3   :  { %v5047_v49 = vpop.xlane.xlu0 %5046 }
 0x5c4   :  { %v5048_v18 = vmul.f32 0.001953125, %v5047_v49 }
 0x5c6   :  { %v5050_v16 = vsub.f32 %v5048_v18, %v5049_v3 }
 0x5c8   :  { %v5052_v57 = vadd.f32 1e-05, %v5050_v16 }
 0x5ca   :  { %7464 = vrsqrt.f32 %v5052_v57 }
 0x5d4   :  { %v7465_v45 = vpop.eup %7464 }
 0x5d5   :  { %v5054_v54 = vmul.f32 %v7465_v45, %v5051_v42 }
 0x5d7   :  { %5060 = vperm.xlu1 %7460, %v5054_v54   ;;  %v5056_v31 = vmul.f32 %v5054_v54, %v5034_v1 }
 0x5d9   :  { %v5057_v39 = vsub.f32 %v5055_v2, %v5056_v31 }
 0x5db   :  { %5069 = vperm.xlu1 %7460, %v5057_v39  }
 0x656   :  { %v5061_v61 = vpop.permute.xlu1 %5060 }
 0x657   :  { %v5063_v22 = vmul.f32 %v7426_v29, %v5061_v61  ;;  %v5064_v25 = vmul.f32 %v7427_v50, %v5061_v61  ;;  %v5065_v19 = vmul.f32 %v7428_v20, %v5061_v61  ;;  %v5066_v15 = vmul.f32 %v7429_v21, %v5061_v61 }
 0x65a   :  { %v5070_v38 = vpop.permute.xlu1 %5069 }
 0x65b   :  { %v5072_v44 = vadd.f32 %v5070_v38, %v5063_v22  ;;  %v5073_v34 = vadd.f32 %v5070_v38, %v5064_v25  ;;  %v5074_v14 = vadd.f32 %v5070_v38, %v5065_v19  ;;  %v5075_v10 = vadd.f32 %v5070_v38, %v5066_v15 }
 0x65d   :  { %v5076_v7 = vmax.f32 %v5072_v44, 0.0  ;;  %v5077_v6 = vmax.f32 %v5073_v34, 0.0  ;;  %v5078_v46 = vmax.f32 %v5074_v14, 0.0  ;;  %v5079_v32 = vmax.f32 %v5075_v10, 0.0 }
 0x65f   :  { %v5086_v62 = vcombine.low %v5076_v7, %v5077_v6  ;;  %v5087_v59 = vcombine.low %v5078_v46, %v5079_v32 }
 0x661   :  { %v5090_v4 = vadd.f32 %v5086_v62, %v5080_v43  ;;  %v5091_v0 = vadd.f32 %v5087_v59, %v5081_v41 }
 0x663   :  { %v5092_v24 = vmax.f32 %v5090_v4, 0.0  ;;  %v5093_v30 = vmax.f32 %v5091_v0, 0.0 }
 0x665   :  { %5094 = vst [vmem:[%s10020_s8] sm:$0xff] %v5092_v24  ;;  %5095 = vst [vmem:[%s10020_s8 + $0x8] sm:$0xff] %v5093_v30 }

</bundles_post_ra>
